<compile_context>
chip_gen: v7x
topology: tpu7x:2x2x1
jax: 0.10.0
libtpu: 0.0.40
codegen_flags: <defaults>
</compile_context>

<pallas_src>
import functools
import math

import numpy as np
import jax
import jax.numpy as jnp
from jax import lax
from jax.experimental import pallas as pl
from jax.experimental.pallas import tpu as pltpu

FILTER_SIZE = 5
STD = 1.0
HALO = 5          # rows/cols of context per tile: 2 (gauss) + 1 (sobel) + 1 (NMS) + 1 (connect)
ROW_TILE = 32     # default output-row tile (multiple of 8)


def _gaussian_window(m: int, std: float) -> np.ndarray:
    # scipy.signal.windows.gaussian (UNNORMALIZED), cast to float32 like `.float()`
    n = np.arange(m, dtype=np.float64) - (m - 1) / 2.0
    return np.exp(-0.5 * (n / std) ** 2).astype(np.float32)


_GAUSS = tuple(float(v) for v in _gaussian_window(FILTER_SIZE, STD))

# directional_filter[k] applied to grad_mag  ==  grad_mag - grad_mag[(h,w)+_OFFS[k]]
_OFFS = ((0, 1), (1, 1), (1, 0), (1, -1), (0, -1), (-1, -1), (-1, 0), (-1, 1))

_PI = math.pi
_PI_2 = math.pi / 2.0
_PI_4 = math.pi / 4.0
_TAN_PI_8 = 0.4142135623730951


def _atan2(y, x):
    """Elementwise atan2 from VPU/EUP-friendly ops (abs/min/max, approx reciprocal,
    polynomial, selects).  Result is binned to 45-degree buckets downstream, so the
    ~1e-7 rad approximation error is immaterial."""
    ax = jnp.abs(x)
    ay = jnp.abs(y)
    mx = jnp.maximum(ax, ay)
    mn = jnp.minimum(ax, ay)
    inv = pl.reciprocal(jnp.maximum(mx, 1e-30), approx=True)   # EUP, not VALU divide
    t = jnp.where(mx > 0.0, mn * inv, 0.0)                     # t in [0, 1]; atan2(0,0)->0
    hi = t > _TAN_PI_8
    t = jnp.where(hi, (t - 1.0) * pl.reciprocal(t + 1.0, approx=True), t)
    z = t * t
    p = ((((8.05374449538e-2 * z - 1.38776856032e-1) * z
           + 1.99777106478e-1) * z - 3.33329491539e-1) * z) * t + t
    a = jnp.where(hi, p + _PI_4, p)
    a = jnp.where(ay > ax, _PI_2 - a, a)
    a = jnp.where(x < 0.0, _PI - a, a)
    a = jnp.where(y < 0.0, -a, a)
    return a


def _canny_kernel(win_ref, out_ref, *, t1, t2, B, C, H, W, TH):
    BC = B * C
    RW = TH + 10      # window rows     (abs rows r0-5 .. r0+TH+4)
    RB = TH + 6       # blurred rows    (abs rows r0-3 .. r0+TH+2)
    RG = TH + 4       # gradient rows   (abs rows r0-2 .. r0+TH+1)
    RT = TH + 2       # thin/NMS rows   (abs rows r0-1 .. r0+TH)
    CW = W + 10       # window cols     (abs cols  -5 .. W+4)
    CB = W + 6        # blurred cols    (abs cols  -3 .. W+2)
    CG = W + 4        # gradient cols   (abs cols  -2 .. W+1)
    CT = W + 2        # thin cols       (abs cols  -1 .. W)
    r0 = pl.program_id(0) * TH

    x = win_ref[0]                                    # (BC, RW, CW) f32, zero halo

    # ---- separable Gaussian blur; image zero padding comes from the halo ----
    bx = jnp.zeros((BC, RW, CB), jnp.float32)         # along W (padding=(0,2))
    for k in range(FILTER_SIZE):
        bx = bx + _GAUSS[k] * x[:, :, k:k + CB]
    blur = jnp.zeros((BC, RB, CB), jnp.float32)       # along H (padding=(2,0))
    for k in range(FILTER_SIZE):
        blur = blur + _GAUSS[k] * bx[:, k:k + RB, :]

    # Sobel's conv zero-pads the *blurred* image -> zero it outside the image.
    rows_b = r0 - 3 + lax.broadcasted_iota(jnp.int32, (1, RB, CB), 1)
    cols_b = lax.broadcasted_iota(jnp.int32, (1, RB, CB), 2) - 3
    blur = jnp.where((rows_b >= 0) & (rows_b < H) & (cols_b >= 0) & (cols_b < W),
                     blur, 0.0)

    # ---- Sobel gradients (separable: Sx = [1,2,1]^T (x) [1,0,-1], Sy = Sx^T) ----
    d = blur[:, :, 0:CG] - blur[:, :, 2:2 + CG]
    s = blur[:, :, 0:CG] + 2.0 * blur[:, :, 1:1 + CG] + blur[:, :, 2:2 + CG]
    gx = d[:, 0:RG, :] + 2.0 * d[:, 1:1 + RG, :] + d[:, 2:2 + RG, :]     # (BC, RG, CG)
    gy = s[:, 0:RG, :] - s[:, 2:2 + RG, :]

    # ---- gradient magnitude / orientation summed over channels ----
    gx4 = gx.reshape(B, C, RG, CG)
    gy4 = gy.reshape(B, C, RG, CG)
    mag = jnp.zeros((B, RG, CG), jnp.float32)
    for c in range(C):
        gxc = gx4[:, c]
        gyc = gy4[:, c]
        mag = mag + jnp.sqrt(gxc * gxc + gyc * gyc)
    ori = jnp.zeros((B, RT, CT), jnp.float32)
    for c in range(C):                                 # only the rows/cols that need it
        gxc = gx4[:, c, 1:1 + RT, 1:1 + CT]
        gyc = gy4[:, c, 1:1 + RT, 1:1 + CT]
        ori = ori + _atan2(gyc, gxc)
    ori = ori * (180.0 / _PI) + 180.0
    # round(ori/45) as int; ori/45 in (-8, 16] so +16.5 then int-trunc == round-half-up.
    # NOTE: round-half-up instead of torch's round-half-to-even (ties are measure-zero).
    ridx = (ori * (1.0 / 45.0) + 16.5).astype(jnp.int32)
    idx_pos = jnp.bitwise_and(ridx, 7)                 # (ori/45) % 8
    idx_neg = jnp.bitwise_and(ridx + 4, 7)             # (ori/45 + 4) % 8

    # directional conv zero-pads grad_mag -> zero it outside the image
    rows_g = r0 - 2 + lax.broadcasted_iota(jnp.int32, (1, RG, CG), 1)
    cols_g = lax.broadcasted_iota(jnp.int32, (1, RG, CG), 2) - 2
    mag = jnp.where((rows_g >= 0) & (rows_g < H) & (cols_g >= 0) & (cols_g < W),
                    mag, 0.0)

    # ---- directional filter collapsed to  mag - shifted(mag)  (8 neighbour slices) ----
    nbr = [mag[:, 1 + dh:1 + dh + RT, 1 + dw:1 + dw + CT] for dh, dw in _OFFS]
    mag_c = mag[:, 1:1 + RT, 1:1 + CT]                 # (B, RT, CT)

    # Non-max suppression via the reference's flat gather:
    #   all_filtered.view(-1)[idx*B*H*W + b*H*W + h*W + w]
    #     == filter[(idx*B + b) % 8] applied to batch (idx*B + b) // 8
    # (faithfully reproduces the reference's batch/direction mixing for B > 1).
    pos_l, neg_l = [], []
    for b in range(B):
        ipb = idx_pos[b]
        inb = idx_neg[b]
        pos_b = jnp.zeros((RT, CT), jnp.float32)
        neg_b = jnp.zeros((RT, CT), jnp.float32)
        for q in range(8):
            t = q * B + b
            val = mag_c[t // 8] - nbr[t % 8][t // 8]
            pos_b = pos_b + jnp.where(ipb == q, val, 0.0)
            neg_b = neg_b + jnp.where(inb == q, val, 0.0)
        pos_l.append(pos_b[None])
        neg_l.append(neg_b[None])
    pos = jnp.concatenate(pos_l, axis=0)               # (B, RT, CT)
    neg = jnp.concatenate(neg_l, axis=0)

    thin = jnp.where(jnp.minimum(pos, neg) > 0.0, mag_c, 0.0)
    higher = (thin > t2).astype(jnp.float32)           # already 0 outside the image

    # hysteresis "connect" 3x3 (minus centre) conv, evaluated on the output rows/cols
    connect = jnp.zeros((B, TH, W), jnp.float32)
    for i in range(3):
        for j in range(3):
            if (i, j) != (1, 1):
                connect = connect + higher[:, i:i + TH, j:j + W]

    thin_o = thin[:, 1:1 + TH, 1:1 + W]
    edges = thin_o
    edges = jnp.where(thin_o < t1, 0.0, edges)
    edges = jnp.where(thin_o > t2, 1.0, edges)
    middle = jnp.logical_and(thin_o >= t1, thin_o <= t2)
    edges = jnp.where(middle, 0.0, edges)
    connect = jnp.where(middle, connect, 0.0)
    edges = jnp.where(connect > 0.0, 1.0, edges)

    # border zeroing: edges[...,0,:] = edges[...,-1,:] = edges[...,:,0] = edges[...,:,-1] = 0
    rows_o = r0 + lax.broadcasted_iota(jnp.int32, (1, TH, W), 1)
    cols_o = lax.broadcasted_iota(jnp.int32, (1, TH, W), 2)
    interior = (rows_o > 0) & (rows_o < H - 1) & (cols_o > 0) & (cols_o < W - 1)
    edges = jnp.where(interior, edges, 0.0)
    out_ref[...] = (edges > 0.0).astype(jnp.float32).reshape(B, 1, TH, W)


def canny_filter(img, threshold1: float = 10.0, threshold2: float = 100.0,
                 row_tile: int = ROW_TILE):
    assert img.shape[1] == 3, "Image channels must be 3."
    assert threshold1 < threshold2, "Threshold 1 must lower threshold 2."
    B, C, H, W = img.shape

    if H <= row_tile:
        TH, n_tiles = H, 1
    else:
        TH = row_tile                      # multiple of 8 -> output blocks stay (8,128)-legal
        n_tiles = (H + TH - 1) // TH
    H_out = n_tiles * TH

    # zero-pad by the halo and build overlapping row windows once (plain XLA ops),
    # so the kernel uses standard Blocked BlockSpecs and gets auto double-buffering.
    x = img.astype(jnp.float32).reshape(B * C, H, W)
    xp = jnp.pad(x, ((0, 0), (HALO, H_out + HALO - H), (HALO, HALO)))
    wins = jnp.stack(
        [xp[:, i * TH:i * TH + TH + 2 * HALO, :] for i in range(n_tiles)], axis=0
    )                                       # (n_tiles, B*C, TH+10, W+10)

    kernel = functools.partial(_canny_kernel, t1=float(threshold1), t2=float(threshold2),
                               B=B, C=C, H=H, W=W, TH=TH)
    out = pl.pallas_call(
        kernel,
        out_shape=jax.ShapeDtypeStruct((B, 1, H_out, W), jnp.float32),
        grid=(n_tiles,),
        in_specs=[pl.BlockSpec((1, B * C, TH + 2 * HALO, W + 2 * HALO),
                               lambda i: (i, 0, 0, 0))],
        out_specs=pl.BlockSpec((B, 1, TH, W), lambda i: (0, 0, i, 0)),
        compiler_params=pltpu.CompilerParams(
            dimension_semantics=("parallel",),        # v7x megacore splits row tiles
            vmem_limit_bytes=64 * 1024 * 1024,
        ),
    )(wins)
    return out[:, :, :H, :]


if __name__ == "__main__":
    key = jax.random.PRNGKey(0)
    k1, k2 = jax.random.split(key)

    # small shape matching the module (channels must be 3); single-tile path
    B, C, H, W = 2, 3, 16, 16
    img = jax.random.uniform(k1, (B, C, H, W), dtype=jnp.float32) * 255.0
    edges = canny_filter(img, 10.0, 100.0)
    jax.block_until_ready(edges)
    assert edges.shape == (B, 1, H, W)
    assert edges.dtype == jnp.float32

    # also exercise the multi-tile (row-tiled grid with halo) path
    B2, H2, W2 = 1, 40, 128
    img2 = jax.random.uniform(k2, (B2, 3, H2, W2), dtype=jnp.float32) * 255.0
    edges2 = canny_filter(img2, 10.0, 100.0)
    jax.block_until_ready(edges2)
    assert edges2.shape == (B2, 1, H2, W2)

    print("KERNEL_OK")
</pallas_src>

<mosaic_0001>
module attributes {stable_mosaic.version = 11 : i64} {
  func.func @_canny_kernel(%arg0: i32, %arg1: memref<1x6x26x26xf32, #tpu.memory_space<vmem>>, %arg2: memref<2x1x16x16xf32, #tpu.memory_space<vmem>>) attributes {dimension_semantics = [#tpu.dimension_semantics<parallel>], iteration_bounds = array<i64: 1>, scalar_prefetch = 0 : i64, scratch_operands = 0 : i64, tpu.core_type = #tpu.core_type<tc>, window_params = [{transform_indices = @transform_0, window_bounds = array<i64: 1, 6, 26, 26>}, {transform_indices = @transform_1, window_bounds = array<i64: 2, 1, 16, 16>}]} {
    %c16_i32 = arith.constant 16 : i32
    %0 = arith.muli %arg0, %c16_i32 : i32
    %c0 = arith.constant 0 : index
    %c0_0 = arith.constant 0 : index
    %c0_1 = arith.constant 0 : index
    %c0_2 = arith.constant 0 : index
    %1 = vector.load %arg1[%c0, %c0_0, %c0_1, %c0_2] : memref<1x6x26x26xf32, #tpu.memory_space<vmem>>, vector<1x6x26x26xf32>
    %2 = vector.shape_cast %1 : vector<1x6x26x26xf32> to vector<6x26x26xf32>
    %cst = arith.constant 0.000000e+00 : f32
    %3 = vector.broadcast %cst : f32 to vector<6x26x22xf32>
    %4 = vector.extract_strided_slice %2 {offsets = [0, 0, 0], sizes = [6, 26, 22], strides = [1, 1, 1]} : vector<6x26x26xf32> to vector<6x26x22xf32>
    %cst_3 = arith.constant 0.135335281 : f32
    %5 = vector.broadcast %cst_3 : f32 to vector<6x26x22xf32>
    %6 = arith.mulf %5, %4 : vector<6x26x22xf32>
    %7 = arith.addf %3, %6 : vector<6x26x22xf32>
    %8 = vector.extract_strided_slice %2 {offsets = [0, 0, 1], sizes = [6, 26, 22], strides = [1, 1, 1]} : vector<6x26x26xf32> to vector<6x26x22xf32>
    %cst_4 = arith.constant 0.606530666 : f32
    %9 = vector.broadcast %cst_4 : f32 to vector<6x26x22xf32>
    %10 = arith.mulf %9, %8 : vector<6x26x22xf32>
    %11 = arith.addf %7, %10 : vector<6x26x22xf32>
    %12 = vector.extract_strided_slice %2 {offsets = [0, 0, 2], sizes = [6, 26, 22], strides = [1, 1, 1]} : vector<6x26x26xf32> to vector<6x26x22xf32>
    %cst_5 = arith.constant 1.000000e+00 : f32
    %13 = vector.broadcast %cst_5 : f32 to vector<6x26x22xf32>
    %14 = arith.mulf %13, %12 : vector<6x26x22xf32>
    %15 = arith.addf %11, %14 : vector<6x26x22xf32>
    %16 = vector.extract_strided_slice %2 {offsets = [0, 0, 3], sizes = [6, 26, 22], strides = [1, 1, 1]} : vector<6x26x26xf32> to vector<6x26x22xf32>
    %cst_6 = arith.constant 0.606530666 : f32
    %17 = vector.broadcast %cst_6 : f32 to vector<6x26x22xf32>
    %18 = arith.mulf %17, %16 : vector<6x26x22xf32>
    %19 = arith.addf %15, %18 : vector<6x26x22xf32>
    %20 = vector.extract_strided_slice %2 {offsets = [0, 0, 4], sizes = [6, 26, 22], strides = [1, 1, 1]} : vector<6x26x26xf32> to vector<6x26x22xf32>
    %cst_7 = arith.constant 0.135335281 : f32
    %21 = vector.broadcast %cst_7 : f32 to vector<6x26x22xf32>
    %22 = arith.mulf %21, %20 : vector<6x26x22xf32>
    %23 = arith.addf %19, %22 : vector<6x26x22xf32>
    %cst_8 = arith.constant 0.000000e+00 : f32
    %24 = vector.broadcast %cst_8 : f32 to vector<6x22x22xf32>
    %25 = vector.extract_strided_slice %23 {offsets = [0, 0, 0], sizes = [6, 22, 22], strides = [1, 1, 1]} : vector<6x26x22xf32> to vector<6x22x22xf32>
    %cst_9 = arith.constant 0.135335281 : f32
    %26 = vector.broadcast %cst_9 : f32 to vector<6x22x22xf32>
    %27 = arith.mulf %26, %25 : vector<6x22x22xf32>
    %28 = arith.addf %24, %27 : vector<6x22x22xf32>
    %29 = vector.extract_strided_slice %23 {offsets = [0, 1, 0], sizes = [6, 22, 22], strides = [1, 1, 1]} : vector<6x26x22xf32> to vector<6x22x22xf32>
    %cst_10 = arith.constant 0.606530666 : f32
    %30 = vector.broadcast %cst_10 : f32 to vector<6x22x22xf32>
    %31 = arith.mulf %30, %29 : vector<6x22x22xf32>
    %32 = arith.addf %28, %31 : vector<6x22x22xf32>
    %33 = vector.extract_strided_slice %23 {offsets = [0, 2, 0], sizes = [6, 22, 22], strides = [1, 1, 1]} : vector<6x26x22xf32> to vector<6x22x22xf32>
    %cst_11 = arith.constant 1.000000e+00 : f32
    %34 = vector.broadcast %cst_11 : f32 to vector<6x22x22xf32>
    %35 = arith.mulf %34, %33 : vector<6x22x22xf32>
    %36 = arith.addf %32, %35 : vector<6x22x22xf32>
    %37 = vector.extract_strided_slice %23 {offsets = [0, 3, 0], sizes = [6, 22, 22], strides = [1, 1, 1]} : vector<6x26x22xf32> to vector<6x22x22xf32>
    %cst_12 = arith.constant 0.606530666 : f32
    %38 = vector.broadcast %cst_12 : f32 to vector<6x22x22xf32>
    %39 = arith.mulf %38, %37 : vector<6x22x22xf32>
    %40 = arith.addf %36, %39 : vector<6x22x22xf32>
    %41 = vector.extract_strided_slice %23 {offsets = [0, 4, 0], sizes = [6, 22, 22], strides = [1, 1, 1]} : vector<6x26x22xf32> to vector<6x22x22xf32>
    %cst_13 = arith.constant 0.135335281 : f32
    %42 = vector.broadcast %cst_13 : f32 to vector<6x22x22xf32>
    %43 = arith.mulf %42, %41 : vector<6x22x22xf32>
    %44 = arith.addf %40, %43 : vector<6x22x22xf32>
    %c3_i32 = arith.constant 3 : i32
    %45 = arith.subi %0, %c3_i32 : i32
    %46 = tpu.iota {dimensions = array<i32: 1>} : vector<1x22x22xi32>
    %47 = vector.broadcast %45 : i32 to vector<1x22x22xi32>
    %48 = arith.addi %47, %46 : vector<1x22x22xi32>
    %49 = tpu.iota {dimensions = array<i32: 2>} : vector<1x22x22xi32>
    %c3_i32_14 = arith.constant 3 : i32
    %50 = vector.broadcast %c3_i32_14 : i32 to vector<1x22x22xi32>
    %51 = arith.subi %49, %50 : vector<1x22x22xi32>
    %c0_i32 = arith.constant 0 : i32
    %52 = vector.broadcast %c0_i32 : i32 to vector<1x22x22xi32>
    %53 = arith.cmpi sge, %48, %52 : vector<1x22x22xi32>
    %c16_i32_15 = arith.constant 16 : i32
    %54 = vector.broadcast %c16_i32_15 : i32 to vector<1x22x22xi32>
    %55 = arith.cmpi slt, %48, %54 : vector<1x22x22xi32>
    %56 = arith.andi %53, %55 : vector<1x22x22xi1>
    %c0_i32_16 = arith.constant 0 : i32
    %57 = vector.broadcast %c0_i32_16 : i32 to vector<1x22x22xi32>
    %58 = arith.cmpi sge, %51, %57 : vector<1x22x22xi32>
    %59 = arith.andi %56, %58 : vector<1x22x22xi1>
    %c16_i32_17 = arith.constant 16 : i32
    %60 = vector.broadcast %c16_i32_17 : i32 to vector<1x22x22xi32>
    %61 = arith.cmpi slt, %51, %60 : vector<1x22x22xi32>
    %62 = arith.andi %59, %61 : vector<1x22x22xi1>
    %cst_18 = arith.constant 0.000000e+00 : f32
    %63 = vector.shape_cast %62 : vector<1x22x22xi1> to vector<1x22x22xi1>
    %64 = vector.broadcast %63 : vector<1x22x22xi1> to vector<6x22x22xi1>
    %65 = vector.broadcast %cst_18 : f32 to vector<6x22x22xf32>
    %66 = arith.select %64, %44, %65 : vector<6x22x22xi1>, vector<6x22x22xf32>
    %67 = vector.extract_strided_slice %66 {offsets = [0, 0, 0], sizes = [6, 22, 20], strides = [1, 1, 1]} : vector<6x22x22xf32> to vector<6x22x20xf32>
    %68 = vector.extract_strided_slice %66 {offsets = [0, 0, 2], sizes = [6, 22, 20], strides = [1, 1, 1]} : vector<6x22x22xf32> to vector<6x22x20xf32>
    %69 = arith.subf %67, %68 : vector<6x22x20xf32>
    %70 = vector.extract_strided_slice %66 {offsets = [0, 0, 0], sizes = [6, 22, 20], strides = [1, 1, 1]} : vector<6x22x22xf32> to vector<6x22x20xf32>
    %71 = vector.extract_strided_slice %66 {offsets = [0, 0, 1], sizes = [6, 22, 20], strides = [1, 1, 1]} : vector<6x22x22xf32> to vector<6x22x20xf32>
    %cst_19 = arith.constant 2.000000e+00 : f32
    %72 = vector.broadcast %cst_19 : f32 to vector<6x22x20xf32>
    %73 = arith.mulf %72, %71 : vector<6x22x20xf32>
    %74 = arith.addf %70, %73 : vector<6x22x20xf32>
    %75 = vector.extract_strided_slice %66 {offsets = [0, 0, 2], sizes = [6, 22, 20], strides = [1, 1, 1]} : vector<6x22x22xf32> to vector<6x22x20xf32>
    %76 = arith.addf %74, %75 : vector<6x22x20xf32>
    %77 = vector.extract_strided_slice %69 {offsets = [0, 0, 0], sizes = [6, 20, 20], strides = [1, 1, 1]} : vector<6x22x20xf32> to vector<6x20x20xf32>
    %78 = vector.extract_strided_slice %69 {offsets = [0, 1, 0], sizes = [6, 20, 20], strides = [1, 1, 1]} : vector<6x22x20xf32> to vector<6x20x20xf32>
    %cst_20 = arith.constant 2.000000e+00 : f32
    %79 = vector.broadcast %cst_20 : f32 to vector<6x20x20xf32>
    %80 = arith.mulf %79, %78 : vector<6x20x20xf32>
    %81 = arith.addf %77, %80 : vector<6x20x20xf32>
    %82 = vector.extract_strided_slice %69 {offsets = [0, 2, 0], sizes = [6, 20, 20], strides = [1, 1, 1]} : vector<6x22x20xf32> to vector<6x20x20xf32>
    %83 = arith.addf %81, %82 : vector<6x20x20xf32>
    %84 = vector.extract_strided_slice %76 {offsets = [0, 0, 0], sizes = [6, 20, 20], strides = [1, 1, 1]} : vector<6x22x20xf32> to vector<6x20x20xf32>
    %85 = vector.extract_strided_slice %76 {offsets = [0, 2, 0], sizes = [6, 20, 20], strides = [1, 1, 1]} : vector<6x22x20xf32> to vector<6x20x20xf32>
    %86 = arith.subf %84, %85 : vector<6x20x20xf32>
    %87 = vector.shape_cast %83 : vector<6x20x20xf32> to vector<2x3x20x20xf32>
    %88 = vector.shape_cast %86 : vector<6x20x20xf32> to vector<2x3x20x20xf32>
    %cst_21 = arith.constant 0.000000e+00 : f32
    %89 = vector.broadcast %cst_21 : f32 to vector<2x20x20xf32>
    %90 = vector.extract_strided_slice %87 {offsets = [0, 0, 0, 0], sizes = [2, 1, 20, 20], strides = [1, 1, 1, 1]} : vector<2x3x20x20xf32> to vector<2x1x20x20xf32>
    %91 = vector.shape_cast %90 : vector<2x1x20x20xf32> to vector<2x20x20xf32>
    %92 = vector.extract_strided_slice %88 {offsets = [0, 0, 0, 0], sizes = [2, 1, 20, 20], strides = [1, 1, 1, 1]} : vector<2x3x20x20xf32> to vector<2x1x20x20xf32>
    %93 = vector.shape_cast %92 : vector<2x1x20x20xf32> to vector<2x20x20xf32>
    %94 = arith.mulf %91, %91 : vector<2x20x20xf32>
    %95 = arith.mulf %93, %93 : vector<2x20x20xf32>
    %96 = arith.addf %94, %95 : vector<2x20x20xf32>
    %97 = math.sqrt %96 : vector<2x20x20xf32>
    %98 = arith.addf %89, %97 : vector<2x20x20xf32>
    %99 = vector.extract_strided_slice %87 {offsets = [0, 1, 0, 0], sizes = [2, 1, 20, 20], strides = [1, 1, 1, 1]} : vector<2x3x20x20xf32> to vector<2x1x20x20xf32>
    %100 = vector.shape_cast %99 : vector<2x1x20x20xf32> to vector<2x20x20xf32>
    %101 = vector.extract_strided_slice %88 {offsets = [0, 1, 0, 0], sizes = [2, 1, 20, 20], strides = [1, 1, 1, 1]} : vector<2x3x20x20xf32> to vector<2x1x20x20xf32>
    %102 = vector.shape_cast %101 : vector<2x1x20x20xf32> to vector<2x20x20xf32>
    %103 = arith.mulf %100, %100 : vector<2x20x20xf32>
    %104 = arith.mulf %102, %102 : vector<2x20x20xf32>
    %105 = arith.addf %103, %104 : vector<2x20x20xf32>
    %106 = math.sqrt %105 : vector<2x20x20xf32>
    %107 = arith.addf %98, %106 : vector<2x20x20xf32>
    %108 = vector.extract_strided_slice %87 {offsets = [0, 2, 0, 0], sizes = [2, 1, 20, 20], strides = [1, 1, 1, 1]} : vector<2x3x20x20xf32> to vector<2x1x20x20xf32>
    %109 = vector.shape_cast %108 : vector<2x1x20x20xf32> to vector<2x20x20xf32>
    %110 = vector.extract_strided_slice %88 {offsets = [0, 2, 0, 0], sizes = [2, 1, 20, 20], strides = [1, 1, 1, 1]} : vector<2x3x20x20xf32> to vector<2x1x20x20xf32>
    %111 = vector.shape_cast %110 : vector<2x1x20x20xf32> to vector<2x20x20xf32>
    %112 = arith.mulf %109, %109 : vector<2x20x20xf32>
    %113 = arith.mulf %111, %111 : vector<2x20x20xf32>
    %114 = arith.addf %112, %113 : vector<2x20x20xf32>
    %115 = math.sqrt %114 : vector<2x20x20xf32>
    %116 = arith.addf %107, %115 : vector<2x20x20xf32>
    %cst_22 = arith.constant 0.000000e+00 : f32
    %117 = vector.broadcast %cst_22 : f32 to vector<2x18x18xf32>
    %118 = vector.extract_strided_slice %87 {offsets = [0, 0, 1, 1], sizes = [2, 1, 18, 18], strides = [1, 1, 1, 1]} : vector<2x3x20x20xf32> to vector<2x1x18x18xf32>
    %119 = vector.shape_cast %118 : vector<2x1x18x18xf32> to vector<2x18x18xf32>
    %120 = vector.extract_strided_slice %88 {offsets = [0, 0, 1, 1], sizes = [2, 1, 18, 18], strides = [1, 1, 1, 1]} : vector<2x3x20x20xf32> to vector<2x1x18x18xf32>
    %121 = vector.shape_cast %120 : vector<2x1x18x18xf32> to vector<2x18x18xf32>
    %122 = math.absf %119 : vector<2x18x18xf32>
    %123 = math.absf %121 : vector<2x18x18xf32>
    %124 = arith.maximumf %122, %123 : vector<2x18x18xf32>
    %125 = arith.minimumf %122, %123 : vector<2x18x18xf32>
    %cst_23 = arith.constant 1.000000e-30 : f32
    %126 = vector.broadcast %cst_23 : f32 to vector<2x18x18xf32>
    %127 = arith.maximumf %124, %126 : vector<2x18x18xf32>
    %128 = tpu.reciprocal %127 {approx = true} : vector<2x18x18xf32> -> vector<2x18x18xf32>
    %cst_24 = arith.constant 0.000000e+00 : f32
    %129 = vector.broadcast %cst_24 : f32 to vector<2x18x18xf32>
    %130 = arith.cmpf ogt, %124, %129 : vector<2x18x18xf32>
    %131 = arith.mulf %125, %128 : vector<2x18x18xf32>
    %cst_25 = arith.constant 0.000000e+00 : f32
    %132 = vector.broadcast %cst_25 : f32 to vector<2x18x18xf32>
    %133 = arith.select %130, %131, %132 : vector<2x18x18xi1>, vector<2x18x18xf32>
    %cst_26 = arith.constant 0.414213568 : f32
    %134 = vector.broadcast %cst_26 : f32 to vector<2x18x18xf32>
    %135 = arith.cmpf ogt, %133, %134 : vector<2x18x18xf32>
    %cst_27 = arith.constant 1.000000e+00 : f32
    %136 = vector.broadcast %cst_27 : f32 to vector<2x18x18xf32>
    %137 = arith.subf %133, %136 : vector<2x18x18xf32>
    %cst_28 = arith.constant 1.000000e+00 : f32
    %138 = vector.broadcast %cst_28 : f32 to vector<2x18x18xf32>
    %139 = arith.addf %133, %138 : vector<2x18x18xf32>
    %140 = tpu.reciprocal %139 {approx = true} : vector<2x18x18xf32> -> vector<2x18x18xf32>
    %141 = arith.mulf %137, %140 : vector<2x18x18xf32>
    %142 = arith.select %135, %141, %133 : vector<2x18x18xi1>, vector<2x18x18xf32>
    %143 = arith.mulf %142, %142 : vector<2x18x18xf32>
    %cst_29 = arith.constant 0.0805374458 : f32
    %144 = vector.broadcast %cst_29 : f32 to vector<2x18x18xf32>
    %145 = arith.mulf %144, %143 : vector<2x18x18xf32>
    %cst_30 = arith.constant 0.138776854 : f32
    %146 = vector.broadcast %cst_30 : f32 to vector<2x18x18xf32>
    %147 = arith.subf %145, %146 : vector<2x18x18xf32>
    %148 = arith.mulf %147, %143 : vector<2x18x18xf32>
    %cst_31 = arith.constant 0.199777111 : f32
    %149 = vector.broadcast %cst_31 : f32 to vector<2x18x18xf32>
    %150 = arith.addf %148, %149 : vector<2x18x18xf32>
    %151 = arith.mulf %150, %143 : vector<2x18x18xf32>
    %cst_32 = arith.constant 0.333329499 : f32
    %152 = vector.broadcast %cst_32 : f32 to vector<2x18x18xf32>
    %153 = arith.subf %151, %152 : vector<2x18x18xf32>
    %154 = arith.mulf %153, %143 : vector<2x18x18xf32>
    %155 = arith.mulf %154, %142 : vector<2x18x18xf32>
    %156 = arith.addf %155, %142 : vector<2x18x18xf32>
    %cst_33 = arith.constant 0.785398185 : f32
    %157 = vector.broadcast %cst_33 : f32 to vector<2x18x18xf32>
    %158 = arith.addf %156, %157 : vector<2x18x18xf32>
    %159 = arith.select %135, %158, %156 : vector<2x18x18xi1>, vector<2x18x18xf32>
    %160 = arith.cmpf ogt, %123, %122 : vector<2x18x18xf32>
    %cst_34 = arith.constant 1.57079637 : f32
    %161 = vector.broadcast %cst_34 : f32 to vector<2x18x18xf32>
    %162 = arith.subf %161, %159 : vector<2x18x18xf32>
    %163 = arith.select %160, %162, %159 : vector<2x18x18xi1>, vector<2x18x18xf32>
    %cst_35 = arith.constant 0.000000e+00 : f32
    %164 = vector.broadcast %cst_35 : f32 to vector<2x18x18xf32>
    %165 = arith.cmpf olt, %119, %164 : vector<2x18x18xf32>
    %cst_36 = arith.constant 3.14159274 : f32
    %166 = vector.broadcast %cst_36 : f32 to vector<2x18x18xf32>
    %167 = arith.subf %166, %163 : vector<2x18x18xf32>
    %168 = arith.select %165, %167, %163 : vector<2x18x18xi1>, vector<2x18x18xf32>
    %cst_37 = arith.constant 0.000000e+00 : f32
    %169 = vector.broadcast %cst_37 : f32 to vector<2x18x18xf32>
    %170 = arith.cmpf olt, %121, %169 : vector<2x18x18xf32>
    %cst_38 = arith.constant 0.000000e+00 : f32
    %171 = vector.broadcast %cst_38 : f32 to vector<2x18x18xf32>
    %172 = arith.subf %171, %168 : vector<2x18x18xf32>
    %173 = arith.select %170, %172, %168 : vector<2x18x18xi1>, vector<2x18x18xf32>
    %174 = arith.addf %117, %173 : vector<2x18x18xf32>
    %175 = vector.extract_strided_slice %87 {offsets = [0, 1, 1, 1], sizes = [2, 1, 18, 18], strides = [1, 1, 1, 1]} : vector<2x3x20x20xf32> to vector<2x1x18x18xf32>
    %176 = vector.shape_cast %175 : vector<2x1x18x18xf32> to vector<2x18x18xf32>
    %177 = vector.extract_strided_slice %88 {offsets = [0, 1, 1, 1], sizes = [2, 1, 18, 18], strides = [1, 1, 1, 1]} : vector<2x3x20x20xf32> to vector<2x1x18x18xf32>
    %178 = vector.shape_cast %177 : vector<2x1x18x18xf32> to vector<2x18x18xf32>
    %179 = math.absf %176 : vector<2x18x18xf32>
    %180 = math.absf %178 : vector<2x18x18xf32>
    %181 = arith.maximumf %179, %180 : vector<2x18x18xf32>
    %182 = arith.minimumf %179, %180 : vector<2x18x18xf32>
    %cst_39 = arith.constant 1.000000e-30 : f32
    %183 = vector.broadcast %cst_39 : f32 to vector<2x18x18xf32>
    %184 = arith.maximumf %181, %183 : vector<2x18x18xf32>
    %185 = tpu.reciprocal %184 {approx = true} : vector<2x18x18xf32> -> vector<2x18x18xf32>
    %cst_40 = arith.constant 0.000000e+00 : f32
    %186 = vector.broadcast %cst_40 : f32 to vector<2x18x18xf32>
    %187 = arith.cmpf ogt, %181, %186 : vector<2x18x18xf32>
    %188 = arith.mulf %182, %185 : vector<2x18x18xf32>
    %cst_41 = arith.constant 0.000000e+00 : f32
    %189 = vector.broadcast %cst_41 : f32 to vector<2x18x18xf32>
    %190 = arith.select %187, %188, %189 : vector<2x18x18xi1>, vector<2x18x18xf32>
    %cst_42 = arith.constant 0.414213568 : f32
    %191 = vector.broadcast %cst_42 : f32 to vector<2x18x18xf32>
    %192 = arith.cmpf ogt, %190, %191 : vector<2x18x18xf32>
    %cst_43 = arith.constant 1.000000e+00 : f32
    %193 = vector.broadcast %cst_43 : f32 to vector<2x18x18xf32>
    %194 = arith.subf %190, %193 : vector<2x18x18xf32>
    %cst_44 = arith.constant 1.000000e+00 : f32
    %195 = vector.broadcast %cst_44 : f32 to vector<2x18x18xf32>
    %196 = arith.addf %190, %195 : vector<2x18x18xf32>
    %197 = tpu.reciprocal %196 {approx = true} : vector<2x18x18xf32> -> vector<2x18x18xf32>
    %198 = arith.mulf %194, %197 : vector<2x18x18xf32>
    %199 = arith.select %192, %198, %190 : vector<2x18x18xi1>, vector<2x18x18xf32>
    %200 = arith.mulf %199, %199 : vector<2x18x18xf32>
    %cst_45 = arith.constant 0.0805374458 : f32
    %201 = vector.broadcast %cst_45 : f32 to vector<2x18x18xf32>
    %202 = arith.mulf %201, %200 : vector<2x18x18xf32>
    %cst_46 = arith.constant 0.138776854 : f32
    %203 = vector.broadcast %cst_46 : f32 to vector<2x18x18xf32>
    %204 = arith.subf %202, %203 : vector<2x18x18xf32>
    %205 = arith.mulf %204, %200 : vector<2x18x18xf32>
    %cst_47 = arith.constant 0.199777111 : f32
    %206 = vector.broadcast %cst_47 : f32 to vector<2x18x18xf32>
    %207 = arith.addf %205, %206 : vector<2x18x18xf32>
    %208 = arith.mulf %207, %200 : vector<2x18x18xf32>
    %cst_48 = arith.constant 0.333329499 : f32
    %209 = vector.broadcast %cst_48 : f32 to vector<2x18x18xf32>
    %210 = arith.subf %208, %209 : vector<2x18x18xf32>
    %211 = arith.mulf %210, %200 : vector<2x18x18xf32>
    %212 = arith.mulf %211, %199 : vector<2x18x18xf32>
    %213 = arith.addf %212, %199 : vector<2x18x18xf32>
    %cst_49 = arith.constant 0.785398185 : f32
    %214 = vector.broadcast %cst_49 : f32 to vector<2x18x18xf32>
    %215 = arith.addf %213, %214 : vector<2x18x18xf32>
    %216 = arith.select %192, %215, %213 : vector<2x18x18xi1>, vector<2x18x18xf32>
    %217 = arith.cmpf ogt, %180, %179 : vector<2x18x18xf32>
    %cst_50 = arith.constant 1.57079637 : f32
    %218 = vector.broadcast %cst_50 : f32 to vector<2x18x18xf32>
    %219 = arith.subf %218, %216 : vector<2x18x18xf32>
    %220 = arith.select %217, %219, %216 : vector<2x18x18xi1>, vector<2x18x18xf32>
    %cst_51 = arith.constant 0.000000e+00 : f32
    %221 = vector.broadcast %cst_51 : f32 to vector<2x18x18xf32>
    %222 = arith.cmpf olt, %176, %221 : vector<2x18x18xf32>
    %cst_52 = arith.constant 3.14159274 : f32
    %223 = vector.broadcast %cst_52 : f32 to vector<2x18x18xf32>
    %224 = arith.subf %223, %220 : vector<2x18x18xf32>
    %225 = arith.select %222, %224, %220 : vector<2x18x18xi1>, vector<2x18x18xf32>
    %cst_53 = arith.constant 0.000000e+00 : f32
    %226 = vector.broadcast %cst_53 : f32 to vector<2x18x18xf32>
    %227 = arith.cmpf olt, %178, %226 : vector<2x18x18xf32>
    %cst_54 = arith.constant 0.000000e+00 : f32
    %228 = vector.broadcast %cst_54 : f32 to vector<2x18x18xf32>
    %229 = arith.subf %228, %225 : vector<2x18x18xf32>
    %230 = arith.select %227, %229, %225 : vector<2x18x18xi1>, vector<2x18x18xf32>
    %231 = arith.addf %174, %230 : vector<2x18x18xf32>
    %232 = vector.extract_strided_slice %87 {offsets = [0, 2, 1, 1], sizes = [2, 1, 18, 18], strides = [1, 1, 1, 1]} : vector<2x3x20x20xf32> to vector<2x1x18x18xf32>
    %233 = vector.shape_cast %232 : vector<2x1x18x18xf32> to vector<2x18x18xf32>
    %234 = vector.extract_strided_slice %88 {offsets = [0, 2, 1, 1], sizes = [2, 1, 18, 18], strides = [1, 1, 1, 1]} : vector<2x3x20x20xf32> to vector<2x1x18x18xf32>
    %235 = vector.shape_cast %234 : vector<2x1x18x18xf32> to vector<2x18x18xf32>
    %236 = math.absf %233 : vector<2x18x18xf32>
    %237 = math.absf %235 : vector<2x18x18xf32>
    %238 = arith.maximumf %236, %237 : vector<2x18x18xf32>
    %239 = arith.minimumf %236, %237 : vector<2x18x18xf32>
    %cst_55 = arith.constant 1.000000e-30 : f32
    %240 = vector.broadcast %cst_55 : f32 to vector<2x18x18xf32>
    %241 = arith.maximumf %238, %240 : vector<2x18x18xf32>
    %242 = tpu.reciprocal %241 {approx = true} : vector<2x18x18xf32> -> vector<2x18x18xf32>
    %cst_56 = arith.constant 0.000000e+00 : f32
    %243 = vector.broadcast %cst_56 : f32 to vector<2x18x18xf32>
    %244 = arith.cmpf ogt, %238, %243 : vector<2x18x18xf32>
    %245 = arith.mulf %239, %242 : vector<2x18x18xf32>
    %cst_57 = arith.constant 0.000000e+00 : f32
    %246 = vector.broadcast %cst_57 : f32 to vector<2x18x18xf32>
    %247 = arith.select %244, %245, %246 : vector<2x18x18xi1>, vector<2x18x18xf32>
    %cst_58 = arith.constant 0.414213568 : f32
    %248 = vector.broadcast %cst_58 : f32 to vector<2x18x18xf32>
    %249 = arith.cmpf ogt, %247, %248 : vector<2x18x18xf32>
    %cst_59 = arith.constant 1.000000e+00 : f32
    %250 = vector.broadcast %cst_59 : f32 to vector<2x18x18xf32>
    %251 = arith.subf %247, %250 : vector<2x18x18xf32>
    %cst_60 = arith.constant 1.000000e+00 : f32
    %252 = vector.broadcast %cst_60 : f32 to vector<2x18x18xf32>
    %253 = arith.addf %247, %252 : vector<2x18x18xf32>
    %254 = tpu.reciprocal %253 {approx = true} : vector<2x18x18xf32> -> vector<2x18x18xf32>
    %255 = arith.mulf %251, %254 : vector<2x18x18xf32>
    %256 = arith.select %249, %255, %247 : vector<2x18x18xi1>, vector<2x18x18xf32>
    %257 = arith.mulf %256, %256 : vector<2x18x18xf32>
    %cst_61 = arith.constant 0.0805374458 : f32
    %258 = vector.broadcast %cst_61 : f32 to vector<2x18x18xf32>
    %259 = arith.mulf %258, %257 : vector<2x18x18xf32>
    %cst_62 = arith.constant 0.138776854 : f32
    %260 = vector.broadcast %cst_62 : f32 to vector<2x18x18xf32>
    %261 = arith.subf %259, %260 : vector<2x18x18xf32>
    %262 = arith.mulf %261, %257 : vector<2x18x18xf32>
    %cst_63 = arith.constant 0.199777111 : f32
    %263 = vector.broadcast %cst_63 : f32 to vector<2x18x18xf32>
    %264 = arith.addf %262, %263 : vector<2x18x18xf32>
    %265 = arith.mulf %264, %257 : vector<2x18x18xf32>
    %cst_64 = arith.constant 0.333329499 : f32
    %266 = vector.broadcast %cst_64 : f32 to vector<2x18x18xf32>
    %267 = arith.subf %265, %266 : vector<2x18x18xf32>
    %268 = arith.mulf %267, %257 : vector<2x18x18xf32>
    %269 = arith.mulf %268, %256 : vector<2x18x18xf32>
    %270 = arith.addf %269, %256 : vector<2x18x18xf32>
    %cst_65 = arith.constant 0.785398185 : f32
    %271 = vector.broadcast %cst_65 : f32 to vector<2x18x18xf32>
    %272 = arith.addf %270, %271 : vector<2x18x18xf32>
    %273 = arith.select %249, %272, %270 : vector<2x18x18xi1>, vector<2x18x18xf32>
    %274 = arith.cmpf ogt, %237, %236 : vector<2x18x18xf32>
    %cst_66 = arith.constant 1.57079637 : f32
    %275 = vector.broadcast %cst_66 : f32 to vector<2x18x18xf32>
    %276 = arith.subf %275, %273 : vector<2x18x18xf32>
    %277 = arith.select %274, %276, %273 : vector<2x18x18xi1>, vector<2x18x18xf32>
    %cst_67 = arith.constant 0.000000e+00 : f32
    %278 = vector.broadcast %cst_67 : f32 to vector<2x18x18xf32>
    %279 = arith.cmpf olt, %233, %278 : vector<2x18x18xf32>
    %cst_68 = arith.constant 3.14159274 : f32
    %280 = vector.broadcast %cst_68 : f32 to vector<2x18x18xf32>
    %281 = arith.subf %280, %277 : vector<2x18x18xf32>
    %282 = arith.select %279, %281, %277 : vector<2x18x18xi1>, vector<2x18x18xf32>
    %cst_69 = arith.constant 0.000000e+00 : f32
    %283 = vector.broadcast %cst_69 : f32 to vector<2x18x18xf32>
    %284 = arith.cmpf olt, %235, %283 : vector<2x18x18xf32>
    %cst_70 = arith.constant 0.000000e+00 : f32
    %285 = vector.broadcast %cst_70 : f32 to vector<2x18x18xf32>
    %286 = arith.subf %285, %282 : vector<2x18x18xf32>
    %287 = arith.select %284, %286, %282 : vector<2x18x18xi1>, vector<2x18x18xf32>
    %288 = arith.addf %231, %287 : vector<2x18x18xf32>
    %cst_71 = arith.constant 57.2957802 : f32
    %289 = vector.broadcast %cst_71 : f32 to vector<2x18x18xf32>
    %290 = arith.mulf %288, %289 : vector<2x18x18xf32>
    %cst_72 = arith.constant 1.800000e+02 : f32
    %291 = vector.broadcast %cst_72 : f32 to vector<2x18x18xf32>
    %292 = arith.addf %290, %291 : vector<2x18x18xf32>
    %cst_73 = arith.constant 0.0222222228 : f32
    %293 = vector.broadcast %cst_73 : f32 to vector<2x18x18xf32>
    %294 = arith.mulf %292, %293 : vector<2x18x18xf32>
    %cst_74 = arith.constant 1.650000e+01 : f32
    %295 = vector.broadcast %cst_74 : f32 to vector<2x18x18xf32>
    %296 = arith.addf %294, %295 : vector<2x18x18xf32>
    %297 = arith.fptosi %296 : vector<2x18x18xf32> to vector<2x18x18xi32>
    %c7_i32 = arith.constant 7 : i32
    %298 = vector.broadcast %c7_i32 : i32 to vector<2x18x18xi32>
    %299 = arith.andi %297, %298 : vector<2x18x18xi32>
    %c4_i32 = arith.constant 4 : i32
    %300 = vector.broadcast %c4_i32 : i32 to vector<2x18x18xi32>
    %301 = arith.addi %297, %300 : vector<2x18x18xi32>
    %c7_i32_75 = arith.constant 7 : i32
    %302 = vector.broadcast %c7_i32_75 : i32 to vector<2x18x18xi32>
    %303 = arith.andi %301, %302 : vector<2x18x18xi32>
    %c2_i32 = arith.constant 2 : i32
    %304 = arith.subi %0, %c2_i32 : i32
    %305 = tpu.iota {dimensions = array<i32: 1>} : vector<1x20x20xi32>
    %306 = vector.broadcast %304 : i32 to vector<1x20x20xi32>
    %307 = arith.addi %306, %305 : vector<1x20x20xi32>
    %308 = tpu.iota {dimensions = array<i32: 2>} : vector<1x20x20xi32>
    %c2_i32_76 = arith.constant 2 : i32
    %309 = vector.broadcast %c2_i32_76 : i32 to vector<1x20x20xi32>
    %310 = arith.subi %308, %309 : vector<1x20x20xi32>
    %c0_i32_77 = arith.constant 0 : i32
    %311 = vector.broadcast %c0_i32_77 : i32 to vector<1x20x20xi32>
    %312 = arith.cmpi sge, %307, %311 : vector<1x20x20xi32>
    %c16_i32_78 = arith.constant 16 : i32
    %313 = vector.broadcast %c16_i32_78 : i32 to vector<1x20x20xi32>
    %314 = arith.cmpi slt, %307, %313 : vector<1x20x20xi32>
    %315 = arith.andi %312, %314 : vector<1x20x20xi1>
    %c0_i32_79 = arith.constant 0 : i32
    %316 = vector.broadcast %c0_i32_79 : i32 to vector<1x20x20xi32>
    %317 = arith.cmpi sge, %310, %316 : vector<1x20x20xi32>
    %318 = arith.andi %315, %317 : vector<1x20x20xi1>
    %c16_i32_80 = arith.constant 16 : i32
    %319 = vector.broadcast %c16_i32_80 : i32 to vector<1x20x20xi32>
    %320 = arith.cmpi slt, %310, %319 : vector<1x20x20xi32>
    %321 = arith.andi %318, %320 : vector<1x20x20xi1>
    %cst_81 = arith.constant 0.000000e+00 : f32
    %322 = vector.shape_cast %321 : vector<1x20x20xi1> to vector<1x20x20xi1>
    %323 = vector.broadcast %322 : vector<1x20x20xi1> to vector<2x20x20xi1>
    %324 = vector.broadcast %cst_81 : f32 to vector<2x20x20xf32>
    %325 = arith.select %323, %116, %324 : vector<2x20x20xi1>, vector<2x20x20xf32>
    %326 = vector.extract_strided_slice %325 {offsets = [0, 1, 2], sizes = [2, 18, 18], strides = [1, 1, 1]} : vector<2x20x20xf32> to vector<2x18x18xf32>
    %327 = vector.extract_strided_slice %325 {offsets = [0, 2, 2], sizes = [2, 18, 18], strides = [1, 1, 1]} : vector<2x20x20xf32> to vector<2x18x18xf32>
    %328 = vector.extract_strided_slice %325 {offsets = [0, 2, 1], sizes = [2, 18, 18], strides = [1, 1, 1]} : vector<2x20x20xf32> to vector<2x18x18xf32>
    %329 = vector.extract_strided_slice %325 {offsets = [0, 2, 0], sizes = [2, 18, 18], strides = [1, 1, 1]} : vector<2x20x20xf32> to vector<2x18x18xf32>
    %330 = vector.extract_strided_slice %325 {offsets = [0, 1, 0], sizes = [2, 18, 18], strides = [1, 1, 1]} : vector<2x20x20xf32> to vector<2x18x18xf32>
    %331 = vector.extract_strided_slice %325 {offsets = [0, 0, 0], sizes = [2, 18, 18], strides = [1, 1, 1]} : vector<2x20x20xf32> to vector<2x18x18xf32>
    %332 = vector.extract_strided_slice %325 {offsets = [0, 0, 1], sizes = [2, 18, 18], strides = [1, 1, 1]} : vector<2x20x20xf32> to vector<2x18x18xf32>
    %333 = vector.extract_strided_slice %325 {offsets = [0, 0, 2], sizes = [2, 18, 18], strides = [1, 1, 1]} : vector<2x20x20xf32> to vector<2x18x18xf32>
    %334 = vector.extract_strided_slice %325 {offsets = [0, 1, 1], sizes = [2, 18, 18], strides = [1, 1, 1]} : vector<2x20x20xf32> to vector<2x18x18xf32>
    %335 = vector.extract_strided_slice %299 {offsets = [0, 0, 0], sizes = [1, 18, 18], strides = [1, 1, 1]} : vector<2x18x18xi32> to vector<1x18x18xi32>
    %336 = vector.shape_cast %335 : vector<1x18x18xi32> to vector<18x18xi32>
    %337 = vector.extract_strided_slice %303 {offsets = [0, 0, 0], sizes = [1, 18, 18], strides = [1, 1, 1]} : vector<2x18x18xi32> to vector<1x18x18xi32>
    %338 = vector.shape_cast %337 : vector<1x18x18xi32> to vector<18x18xi32>
    %cst_82 = arith.constant 0.000000e+00 : f32
    %339 = vector.broadcast %cst_82 : f32 to vector<18x18xf32>
    %cst_83 = arith.constant 0.000000e+00 : f32
    %340 = vector.broadcast %cst_83 : f32 to vector<18x18xf32>
    %341 = vector.extract_strided_slice %334 {offsets = [0, 0, 0], sizes = [1, 18, 18], strides = [1, 1, 1]} : vector<2x18x18xf32> to vector<1x18x18xf32>
    %342 = vector.shape_cast %341 : vector<1x18x18xf32> to vector<18x18xf32>
    %343 = vector.extract_strided_slice %326 {offsets = [0, 0, 0], sizes = [1, 18, 18], strides = [1, 1, 1]} : vector<2x18x18xf32> to vector<1x18x18xf32>
    %344 = vector.shape_cast %343 : vector<1x18x18xf32> to vector<18x18xf32>
    %345 = arith.subf %342, %344 : vector<18x18xf32>
    %c0_i32_84 = arith.constant 0 : i32
    %346 = vector.broadcast %c0_i32_84 : i32 to vector<18x18xi32>
    %347 = arith.cmpi eq, %336, %346 : vector<18x18xi32>
    %cst_85 = arith.constant 0.000000e+00 : f32
    %348 = vector.broadcast %cst_85 : f32 to vector<18x18xf32>
    %349 = arith.select %347, %345, %348 : vector<18x18xi1>, vector<18x18xf32>
    %350 = arith.addf %339, %349 : vector<18x18xf32>
    %c0_i32_86 = arith.constant 0 : i32
    %351 = vector.broadcast %c0_i32_86 : i32 to vector<18x18xi32>
    %352 = arith.cmpi eq, %338, %351 : vector<18x18xi32>
    %cst_87 = arith.constant 0.000000e+00 : f32
    %353 = vector.broadcast %cst_87 : f32 to vector<18x18xf32>
    %354 = arith.select %352, %345, %353 : vector<18x18xi1>, vector<18x18xf32>
    %355 = arith.addf %340, %354 : vector<18x18xf32>
    %356 = vector.extract_strided_slice %334 {offsets = [0, 0, 0], sizes = [1, 18, 18], strides = [1, 1, 1]} : vector<2x18x18xf32> to vector<1x18x18xf32>
    %357 = vector.shape_cast %356 : vector<1x18x18xf32> to vector<18x18xf32>
    %358 = vector.extract_strided_slice %328 {offsets = [0, 0, 0], sizes = [1, 18, 18], strides = [1, 1, 1]} : vector<2x18x18xf32> to vector<1x18x18xf32>
    %359 = vector.shape_cast %358 : vector<1x18x18xf32> to vector<18x18xf32>
    %360 = arith.subf %357, %359 : vector<18x18xf32>
    %c1_i32 = arith.constant 1 : i32
    %361 = vector.broadcast %c1_i32 : i32 to vector<18x18xi32>
    %362 = arith.cmpi eq, %336, %361 : vector<18x18xi32>
    %cst_88 = arith.constant 0.000000e+00 : f32
    %363 = vector.broadcast %cst_88 : f32 to vector<18x18xf32>
    %364 = arith.select %362, %360, %363 : vector<18x18xi1>, vector<18x18xf32>
    %365 = arith.addf %350, %364 : vector<18x18xf32>
    %c1_i32_89 = arith.constant 1 : i32
    %366 = vector.broadcast %c1_i32_89 : i32 to vector<18x18xi32>
    %367 = arith.cmpi eq, %338, %366 : vector<18x18xi32>
    %cst_90 = arith.constant 0.000000e+00 : f32
    %368 = vector.broadcast %cst_90 : f32 to vector<18x18xf32>
    %369 = arith.select %367, %360, %368 : vector<18x18xi1>, vector<18x18xf32>
    %370 = arith.addf %355, %369 : vector<18x18xf32>
    %371 = vector.extract_strided_slice %334 {offsets = [0, 0, 0], sizes = [1, 18, 18], strides = [1, 1, 1]} : vector<2x18x18xf32> to vector<1x18x18xf32>
    %372 = vector.shape_cast %371 : vector<1x18x18xf32> to vector<18x18xf32>
    %373 = vector.extract_strided_slice %330 {offsets = [0, 0, 0], sizes = [1, 18, 18], strides = [1, 1, 1]} : vector<2x18x18xf32> to vector<1x18x18xf32>
    %374 = vector.shape_cast %373 : vector<1x18x18xf32> to vector<18x18xf32>
    %375 = arith.subf %372, %374 : vector<18x18xf32>
    %c2_i32_91 = arith.constant 2 : i32
    %376 = vector.broadcast %c2_i32_91 : i32 to vector<18x18xi32>
    %377 = arith.cmpi eq, %336, %376 : vector<18x18xi32>
    %cst_92 = arith.constant 0.000000e+00 : f32
    %378 = vector.broadcast %cst_92 : f32 to vector<18x18xf32>
    %379 = arith.select %377, %375, %378 : vector<18x18xi1>, vector<18x18xf32>
    %380 = arith.addf %365, %379 : vector<18x18xf32>
    %c2_i32_93 = arith.constant 2 : i32
    %381 = vector.broadcast %c2_i32_93 : i32 to vector<18x18xi32>
    %382 = arith.cmpi eq, %338, %381 : vector<18x18xi32>
    %cst_94 = arith.constant 0.000000e+00 : f32
    %383 = vector.broadcast %cst_94 : f32 to vector<18x18xf32>
    %384 = arith.select %382, %375, %383 : vector<18x18xi1>, vector<18x18xf32>
    %385 = arith.addf %370, %384 : vector<18x18xf32>
    %386 = vector.extract_strided_slice %334 {offsets = [0, 0, 0], sizes = [1, 18, 18], strides = [1, 1, 1]} : vector<2x18x18xf32> to vector<1x18x18xf32>
    %387 = vector.shape_cast %386 : vector<1x18x18xf32> to vector<18x18xf32>
    %388 = vector.extract_strided_slice %332 {offsets = [0, 0, 0], sizes = [1, 18, 18], strides = [1, 1, 1]} : vector<2x18x18xf32> to vector<1x18x18xf32>
    %389 = vector.shape_cast %388 : vector<1x18x18xf32> to vector<18x18xf32>
    %390 = arith.subf %387, %389 : vector<18x18xf32>
    %c3_i32_95 = arith.constant 3 : i32
    %391 = vector.broadcast %c3_i32_95 : i32 to vector<18x18xi32>
    %392 = arith.cmpi eq, %336, %391 : vector<18x18xi32>
    %cst_96 = arith.constant 0.000000e+00 : f32
    %393 = vector.broadcast %cst_96 : f32 to vector<18x18xf32>
    %394 = arith.select %392, %390, %393 : vector<18x18xi1>, vector<18x18xf32>
    %395 = arith.addf %380, %394 : vector<18x18xf32>
    %c3_i32_97 = arith.constant 3 : i32
    %396 = vector.broadcast %c3_i32_97 : i32 to vector<18x18xi32>
    %397 = arith.cmpi eq, %338, %396 : vector<18x18xi32>
    %cst_98 = arith.constant 0.000000e+00 : f32
    %398 = vector.broadcast %cst_98 : f32 to vector<18x18xf32>
    %399 = arith.select %397, %390, %398 : vector<18x18xi1>, vector<18x18xf32>
    %400 = arith.addf %385, %399 : vector<18x18xf32>
    %401 = vector.extract_strided_slice %334 {offsets = [1, 0, 0], sizes = [1, 18, 18], strides = [1, 1, 1]} : vector<2x18x18xf32> to vector<1x18x18xf32>
    %402 = vector.shape_cast %401 : vector<1x18x18xf32> to vector<18x18xf32>
    %403 = vector.extract_strided_slice %326 {offsets = [1, 0, 0], sizes = [1, 18, 18], strides = [1, 1, 1]} : vector<2x18x18xf32> to vector<1x18x18xf32>
    %404 = vector.shape_cast %403 : vector<1x18x18xf32> to vector<18x18xf32>
    %405 = arith.subf %402, %404 : vector<18x18xf32>
    %c4_i32_99 = arith.constant 4 : i32
    %406 = vector.broadcast %c4_i32_99 : i32 to vector<18x18xi32>
    %407 = arith.cmpi eq, %336, %406 : vector<18x18xi32>
    %cst_100 = arith.constant 0.000000e+00 : f32
    %408 = vector.broadcast %cst_100 : f32 to vector<18x18xf32>
    %409 = arith.select %407, %405, %408 : vector<18x18xi1>, vector<18x18xf32>
    %410 = arith.addf %395, %409 : vector<18x18xf32>
    %c4_i32_101 = arith.constant 4 : i32
    %411 = vector.broadcast %c4_i32_101 : i32 to vector<18x18xi32>
    %412 = arith.cmpi eq, %338, %411 : vector<18x18xi32>
    %cst_102 = arith.constant 0.000000e+00 : f32
    %413 = vector.broadcast %cst_102 : f32 to vector<18x18xf32>
    %414 = arith.select %412, %405, %413 : vector<18x18xi1>, vector<18x18xf32>
    %415 = arith.addf %400, %414 : vector<18x18xf32>
    %416 = vector.extract_strided_slice %334 {offsets = [1, 0, 0], sizes = [1, 18, 18], strides = [1, 1, 1]} : vector<2x18x18xf32> to vector<1x18x18xf32>
    %417 = vector.shape_cast %416 : vector<1x18x18xf32> to vector<18x18xf32>
    %418 = vector.extract_strided_slice %328 {offsets = [1, 0, 0], sizes = [1, 18, 18], strides = [1, 1, 1]} : vector<2x18x18xf32> to vector<1x18x18xf32>
    %419 = vector.shape_cast %418 : vector<1x18x18xf32> to vector<18x18xf32>
    %420 = arith.subf %417, %419 : vector<18x18xf32>
    %c5_i32 = arith.constant 5 : i32
    %421 = vector.broadcast %c5_i32 : i32 to vector<18x18xi32>
    %422 = arith.cmpi eq, %336, %421 : vector<18x18xi32>
    %cst_103 = arith.constant 0.000000e+00 : f32
    %423 = vector.broadcast %cst_103 : f32 to vector<18x18xf32>
    %424 = arith.select %422, %420, %423 : vector<18x18xi1>, vector<18x18xf32>
    %425 = arith.addf %410, %424 : vector<18x18xf32>
    %c5_i32_104 = arith.constant 5 : i32
    %426 = vector.broadcast %c5_i32_104 : i32 to vector<18x18xi32>
    %427 = arith.cmpi eq, %338, %426 : vector<18x18xi32>
    %cst_105 = arith.constant 0.000000e+00 : f32
    %428 = vector.broadcast %cst_105 : f32 to vector<18x18xf32>
    %429 = arith.select %427, %420, %428 : vector<18x18xi1>, vector<18x18xf32>
    %430 = arith.addf %415, %429 : vector<18x18xf32>
    %431 = vector.extract_strided_slice %334 {offsets = [1, 0, 0], sizes = [1, 18, 18], strides = [1, 1, 1]} : vector<2x18x18xf32> to vector<1x18x18xf32>
    %432 = vector.shape_cast %431 : vector<1x18x18xf32> to vector<18x18xf32>
    %433 = vector.extract_strided_slice %330 {offsets = [1, 0, 0], sizes = [1, 18, 18], strides = [1, 1, 1]} : vector<2x18x18xf32> to vector<1x18x18xf32>
    %434 = vector.shape_cast %433 : vector<1x18x18xf32> to vector<18x18xf32>
    %435 = arith.subf %432, %434 : vector<18x18xf32>
    %c6_i32 = arith.constant 6 : i32
    %436 = vector.broadcast %c6_i32 : i32 to vector<18x18xi32>
    %437 = arith.cmpi eq, %336, %436 : vector<18x18xi32>
    %cst_106 = arith.constant 0.000000e+00 : f32
    %438 = vector.broadcast %cst_106 : f32 to vector<18x18xf32>
    %439 = arith.select %437, %435, %438 : vector<18x18xi1>, vector<18x18xf32>
    %440 = arith.addf %425, %439 : vector<18x18xf32>
    %c6_i32_107 = arith.constant 6 : i32
    %441 = vector.broadcast %c6_i32_107 : i32 to vector<18x18xi32>
    %442 = arith.cmpi eq, %338, %441 : vector<18x18xi32>
    %cst_108 = arith.constant 0.000000e+00 : f32
    %443 = vector.broadcast %cst_108 : f32 to vector<18x18xf32>
    %444 = arith.select %442, %435, %443 : vector<18x18xi1>, vector<18x18xf32>
    %445 = arith.addf %430, %444 : vector<18x18xf32>
    %446 = vector.extract_strided_slice %334 {offsets = [1, 0, 0], sizes = [1, 18, 18], strides = [1, 1, 1]} : vector<2x18x18xf32> to vector<1x18x18xf32>
    %447 = vector.shape_cast %446 : vector<1x18x18xf32> to vector<18x18xf32>
    %448 = vector.extract_strided_slice %332 {offsets = [1, 0, 0], sizes = [1, 18, 18], strides = [1, 1, 1]} : vector<2x18x18xf32> to vector<1x18x18xf32>
    %449 = vector.shape_cast %448 : vector<1x18x18xf32> to vector<18x18xf32>
    %450 = arith.subf %447, %449 : vector<18x18xf32>
    %c7_i32_109 = arith.constant 7 : i32
    %451 = vector.broadcast %c7_i32_109 : i32 to vector<18x18xi32>
    %452 = arith.cmpi eq, %336, %451 : vector<18x18xi32>
    %cst_110 = arith.constant 0.000000e+00 : f32
    %453 = vector.broadcast %cst_110 : f32 to vector<18x18xf32>
    %454 = arith.select %452, %450, %453 : vector<18x18xi1>, vector<18x18xf32>
    %455 = arith.addf %440, %454 : vector<18x18xf32>
    %c7_i32_111 = arith.constant 7 : i32
    %456 = vector.broadcast %c7_i32_111 : i32 to vector<18x18xi32>
    %457 = arith.cmpi eq, %338, %456 : vector<18x18xi32>
    %cst_112 = arith.constant 0.000000e+00 : f32
    %458 = vector.broadcast %cst_112 : f32 to vector<18x18xf32>
    %459 = arith.select %457, %450, %458 : vector<18x18xi1>, vector<18x18xf32>
    %460 = arith.addf %445, %459 : vector<18x18xf32>
    %461 = vector.shape_cast %455 : vector<18x18xf32> to vector<1x18x18xf32>
    %462 = vector.shape_cast %460 : vector<18x18xf32> to vector<1x18x18xf32>
    %463 = vector.extract_strided_slice %299 {offsets = [1, 0, 0], sizes = [1, 18, 18], strides = [1, 1, 1]} : vector<2x18x18xi32> to vector<1x18x18xi32>
    %464 = vector.shape_cast %463 : vector<1x18x18xi32> to vector<18x18xi32>
    %465 = vector.extract_strided_slice %303 {offsets = [1, 0, 0], sizes = [1, 18, 18], strides = [1, 1, 1]} : vector<2x18x18xi32> to vector<1x18x18xi32>
    %466 = vector.shape_cast %465 : vector<1x18x18xi32> to vector<18x18xi32>
    %cst_113 = arith.constant 0.000000e+00 : f32
    %467 = vector.broadcast %cst_113 : f32 to vector<18x18xf32>
    %cst_114 = arith.constant 0.000000e+00 : f32
    %468 = vector.broadcast %cst_114 : f32 to vector<18x18xf32>
    %469 = vector.extract_strided_slice %334 {offsets = [0, 0, 0], sizes = [1, 18, 18], strides = [1, 1, 1]} : vector<2x18x18xf32> to vector<1x18x18xf32>
    %470 = vector.shape_cast %469 : vector<1x18x18xf32> to vector<18x18xf32>
    %471 = vector.extract_strided_slice %327 {offsets = [0, 0, 0], sizes = [1, 18, 18], strides = [1, 1, 1]} : vector<2x18x18xf32> to vector<1x18x18xf32>
    %472 = vector.shape_cast %471 : vector<1x18x18xf32> to vector<18x18xf32>
    %473 = arith.subf %470, %472 : vector<18x18xf32>
    %c0_i32_115 = arith.constant 0 : i32
    %474 = vector.broadcast %c0_i32_115 : i32 to vector<18x18xi32>
    %475 = arith.cmpi eq, %464, %474 : vector<18x18xi32>
    %cst_116 = arith.constant 0.000000e+00 : f32
    %476 = vector.broadcast %cst_116 : f32 to vector<18x18xf32>
    %477 = arith.select %475, %473, %476 : vector<18x18xi1>, vector<18x18xf32>
    %478 = arith.addf %467, %477 : vector<18x18xf32>
    %c0_i32_117 = arith.constant 0 : i32
    %479 = vector.broadcast %c0_i32_117 : i32 to vector<18x18xi32>
    %480 = arith.cmpi eq, %466, %479 : vector<18x18xi32>
    %cst_118 = arith.constant 0.000000e+00 : f32
    %481 = vector.broadcast %cst_118 : f32 to vector<18x18xf32>
    %482 = arith.select %480, %473, %481 : vector<18x18xi1>, vector<18x18xf32>
    %483 = arith.addf %468, %482 : vector<18x18xf32>
    %484 = vector.extract_strided_slice %334 {offsets = [0, 0, 0], sizes = [1, 18, 18], strides = [1, 1, 1]} : vector<2x18x18xf32> to vector<1x18x18xf32>
    %485 = vector.shape_cast %484 : vector<1x18x18xf32> to vector<18x18xf32>
    %486 = vector.extract_strided_slice %329 {offsets = [0, 0, 0], sizes = [1, 18, 18], strides = [1, 1, 1]} : vector<2x18x18xf32> to vector<1x18x18xf32>
    %487 = vector.shape_cast %486 : vector<1x18x18xf32> to vector<18x18xf32>
    %488 = arith.subf %485, %487 : vector<18x18xf32>
    %c1_i32_119 = arith.constant 1 : i32
    %489 = vector.broadcast %c1_i32_119 : i32 to vector<18x18xi32>
    %490 = arith.cmpi eq, %464, %489 : vector<18x18xi32>
    %cst_120 = arith.constant 0.000000e+00 : f32
    %491 = vector.broadcast %cst_120 : f32 to vector<18x18xf32>
    %492 = arith.select %490, %488, %491 : vector<18x18xi1>, vector<18x18xf32>
    %493 = arith.addf %478, %492 : vector<18x18xf32>
    %c1_i32_121 = arith.constant 1 : i32
    %494 = vector.broadcast %c1_i32_121 : i32 to vector<18x18xi32>
    %495 = arith.cmpi eq, %466, %494 : vector<18x18xi32>
    %cst_122 = arith.constant 0.000000e+00 : f32
    %496 = vector.broadcast %cst_122 : f32 to vector<18x18xf32>
    %497 = arith.select %495, %488, %496 : vector<18x18xi1>, vector<18x18xf32>
    %498 = arith.addf %483, %497 : vector<18x18xf32>
    %499 = vector.extract_strided_slice %334 {offsets = [0, 0, 0], sizes = [1, 18, 18], strides = [1, 1, 1]} : vector<2x18x18xf32> to vector<1x18x18xf32>
    %500 = vector.shape_cast %499 : vector<1x18x18xf32> to vector<18x18xf32>
    %501 = vector.extract_strided_slice %331 {offsets = [0, 0, 0], sizes = [1, 18, 18], strides = [1, 1, 1]} : vector<2x18x18xf32> to vector<1x18x18xf32>
    %502 = vector.shape_cast %501 : vector<1x18x18xf32> to vector<18x18xf32>
    %503 = arith.subf %500, %502 : vector<18x18xf32>
    %c2_i32_123 = arith.constant 2 : i32
    %504 = vector.broadcast %c2_i32_123 : i32 to vector<18x18xi32>
    %505 = arith.cmpi eq, %464, %504 : vector<18x18xi32>
    %cst_124 = arith.constant 0.000000e+00 : f32
    %506 = vector.broadcast %cst_124 : f32 to vector<18x18xf32>
    %507 = arith.select %505, %503, %506 : vector<18x18xi1>, vector<18x18xf32>
    %508 = arith.addf %493, %507 : vector<18x18xf32>
    %c2_i32_125 = arith.constant 2 : i32
    %509 = vector.broadcast %c2_i32_125 : i32 to vector<18x18xi32>
    %510 = arith.cmpi eq, %466, %509 : vector<18x18xi32>
    %cst_126 = arith.constant 0.000000e+00 : f32
    %511 = vector.broadcast %cst_126 : f32 to vector<18x18xf32>
    %512 = arith.select %510, %503, %511 : vector<18x18xi1>, vector<18x18xf32>
    %513 = arith.addf %498, %512 : vector<18x18xf32>
    %514 = vector.extract_strided_slice %334 {offsets = [0, 0, 0], sizes = [1, 18, 18], strides = [1, 1, 1]} : vector<2x18x18xf32> to vector<1x18x18xf32>
    %515 = vector.shape_cast %514 : vector<1x18x18xf32> to vector<18x18xf32>
    %516 = vector.extract_strided_slice %333 {offsets = [0, 0, 0], sizes = [1, 18, 18], strides = [1, 1, 1]} : vector<2x18x18xf32> to vector<1x18x18xf32>
    %517 = vector.shape_cast %516 : vector<1x18x18xf32> to vector<18x18xf32>
    %518 = arith.subf %515, %517 : vector<18x18xf32>
    %c3_i32_127 = arith.constant 3 : i32
    %519 = vector.broadcast %c3_i32_127 : i32 to vector<18x18xi32>
    %520 = arith.cmpi eq, %464, %519 : vector<18x18xi32>
    %cst_128 = arith.constant 0.000000e+00 : f32
    %521 = vector.broadcast %cst_128 : f32 to vector<18x18xf32>
    %522 = arith.select %520, %518, %521 : vector<18x18xi1>, vector<18x18xf32>
    %523 = arith.addf %508, %522 : vector<18x18xf32>
    %c3_i32_129 = arith.constant 3 : i32
    %524 = vector.broadcast %c3_i32_129 : i32 to vector<18x18xi32>
    %525 = arith.cmpi eq, %466, %524 : vector<18x18xi32>
    %cst_130 = arith.constant 0.000000e+00 : f32
    %526 = vector.broadcast %cst_130 : f32 to vector<18x18xf32>
    %527 = arith.select %525, %518, %526 : vector<18x18xi1>, vector<18x18xf32>
    %528 = arith.addf %513, %527 : vector<18x18xf32>
    %529 = vector.extract_strided_slice %334 {offsets = [1, 0, 0], sizes = [1, 18, 18], strides = [1, 1, 1]} : vector<2x18x18xf32> to vector<1x18x18xf32>
    %530 = vector.shape_cast %529 : vector<1x18x18xf32> to vector<18x18xf32>
    %531 = vector.extract_strided_slice %327 {offsets = [1, 0, 0], sizes = [1, 18, 18], strides = [1, 1, 1]} : vector<2x18x18xf32> to vector<1x18x18xf32>
    %532 = vector.shape_cast %531 : vector<1x18x18xf32> to vector<18x18xf32>
    %533 = arith.subf %530, %532 : vector<18x18xf32>
    %c4_i32_131 = arith.constant 4 : i32
    %534 = vector.broadcast %c4_i32_131 : i32 to vector<18x18xi32>
    %535 = arith.cmpi eq, %464, %534 : vector<18x18xi32>
    %cst_132 = arith.constant 0.000000e+00 : f32
    %536 = vector.broadcast %cst_132 : f32 to vector<18x18xf32>
    %537 = arith.select %535, %533, %536 : vector<18x18xi1>, vector<18x18xf32>
    %538 = arith.addf %523, %537 : vector<18x18xf32>
    %c4_i32_133 = arith.constant 4 : i32
    %539 = vector.broadcast %c4_i32_133 : i32 to vector<18x18xi32>
    %540 = arith.cmpi eq, %466, %539 : vector<18x18xi32>
    %cst_134 = arith.constant 0.000000e+00 : f32
    %541 = vector.broadcast %cst_134 : f32 to vector<18x18xf32>
    %542 = arith.select %540, %533, %541 : vector<18x18xi1>, vector<18x18xf32>
    %543 = arith.addf %528, %542 : vector<18x18xf32>
    %544 = vector.extract_strided_slice %334 {offsets = [1, 0, 0], sizes = [1, 18, 18], strides = [1, 1, 1]} : vector<2x18x18xf32> to vector<1x18x18xf32>
    %545 = vector.shape_cast %544 : vector<1x18x18xf32> to vector<18x18xf32>
    %546 = vector.extract_strided_slice %329 {offsets = [1, 0, 0], sizes = [1, 18, 18], strides = [1, 1, 1]} : vector<2x18x18xf32> to vector<1x18x18xf32>
    %547 = vector.shape_cast %546 : vector<1x18x18xf32> to vector<18x18xf32>
    %548 = arith.subf %545, %547 : vector<18x18xf32>
    %c5_i32_135 = arith.constant 5 : i32
    %549 = vector.broadcast %c5_i32_135 : i32 to vector<18x18xi32>
    %550 = arith.cmpi eq, %464, %549 : vector<18x18xi32>
    %cst_136 = arith.constant 0.000000e+00 : f32
    %551 = vector.broadcast %cst_136 : f32 to vector<18x18xf32>
    %552 = arith.select %550, %548, %551 : vector<18x18xi1>, vector<18x18xf32>
    %553 = arith.addf %538, %552 : vector<18x18xf32>
    %c5_i32_137 = arith.constant 5 : i32
    %554 = vector.broadcast %c5_i32_137 : i32 to vector<18x18xi32>
    %555 = arith.cmpi eq, %466, %554 : vector<18x18xi32>
    %cst_138 = arith.constant 0.000000e+00 : f32
    %556 = vector.broadcast %cst_138 : f32 to vector<18x18xf32>
    %557 = arith.select %555, %548, %556 : vector<18x18xi1>, vector<18x18xf32>
    %558 = arith.addf %543, %557 : vector<18x18xf32>
    %559 = vector.extract_strided_slice %334 {offsets = [1, 0, 0], sizes = [1, 18, 18], strides = [1, 1, 1]} : vector<2x18x18xf32> to vector<1x18x18xf32>
    %560 = vector.shape_cast %559 : vector<1x18x18xf32> to vector<18x18xf32>
    %561 = vector.extract_strided_slice %331 {offsets = [1, 0, 0], sizes = [1, 18, 18], strides = [1, 1, 1]} : vector<2x18x18xf32> to vector<1x18x18xf32>
    %562 = vector.shape_cast %561 : vector<1x18x18xf32> to vector<18x18xf32>
    %563 = arith.subf %560, %562 : vector<18x18xf32>
    %c6_i32_139 = arith.constant 6 : i32
    %564 = vector.broadcast %c6_i32_139 : i32 to vector<18x18xi32>
    %565 = arith.cmpi eq, %464, %564 : vector<18x18xi32>
    %cst_140 = arith.constant 0.000000e+00 : f32
    %566 = vector.broadcast %cst_140 : f32 to vector<18x18xf32>
    %567 = arith.select %565, %563, %566 : vector<18x18xi1>, vector<18x18xf32>
    %568 = arith.addf %553, %567 : vector<18x18xf32>
    %c6_i32_141 = arith.constant 6 : i32
    %569 = vector.broadcast %c6_i32_141 : i32 to vector<18x18xi32>
    %570 = arith.cmpi eq, %466, %569 : vector<18x18xi32>
    %cst_142 = arith.constant 0.000000e+00 : f32
    %571 = vector.broadcast %cst_142 : f32 to vector<18x18xf32>
    %572 = arith.select %570, %563, %571 : vector<18x18xi1>, vector<18x18xf32>
    %573 = arith.addf %558, %572 : vector<18x18xf32>
    %574 = vector.extract_strided_slice %334 {offsets = [1, 0, 0], sizes = [1, 18, 18], strides = [1, 1, 1]} : vector<2x18x18xf32> to vector<1x18x18xf32>
    %575 = vector.shape_cast %574 : vector<1x18x18xf32> to vector<18x18xf32>
    %576 = vector.extract_strided_slice %333 {offsets = [1, 0, 0], sizes = [1, 18, 18], strides = [1, 1, 1]} : vector<2x18x18xf32> to vector<1x18x18xf32>
    %577 = vector.shape_cast %576 : vector<1x18x18xf32> to vector<18x18xf32>
    %578 = arith.subf %575, %577 : vector<18x18xf32>
    %c7_i32_143 = arith.constant 7 : i32
    %579 = vector.broadcast %c7_i32_143 : i32 to vector<18x18xi32>
    %580 = arith.cmpi eq, %464, %579 : vector<18x18xi32>
    %cst_144 = arith.constant 0.000000e+00 : f32
    %581 = vector.broadcast %cst_144 : f32 to vector<18x18xf32>
    %582 = arith.select %580, %578, %581 : vector<18x18xi1>, vector<18x18xf32>
    %583 = arith.addf %568, %582 : vector<18x18xf32>
    %c7_i32_145 = arith.constant 7 : i32
    %584 = vector.broadcast %c7_i32_145 : i32 to vector<18x18xi32>
    %585 = arith.cmpi eq, %466, %584 : vector<18x18xi32>
    %cst_146 = arith.constant 0.000000e+00 : f32
    %586 = vector.broadcast %cst_146 : f32 to vector<18x18xf32>
    %587 = arith.select %585, %578, %586 : vector<18x18xi1>, vector<18x18xf32>
    %588 = arith.addf %573, %587 : vector<18x18xf32>
    %589 = vector.shape_cast %583 : vector<18x18xf32> to vector<1x18x18xf32>
    %590 = vector.shape_cast %588 : vector<18x18xf32> to vector<1x18x18xf32>
    %591 = tpu.concatenate %461, %589 in 0 : vector<1x18x18xf32>, vector<1x18x18xf32> -> vector<2x18x18xf32>
    %592 = tpu.concatenate %462, %590 in 0 : vector<1x18x18xf32>, vector<1x18x18xf32> -> vector<2x18x18xf32>
    %593 = arith.minimumf %591, %592 : vector<2x18x18xf32>
    %cst_147 = arith.constant 0.000000e+00 : f32
    %594 = vector.broadcast %cst_147 : f32 to vector<2x18x18xf32>
    %595 = arith.cmpf ogt, %593, %594 : vector<2x18x18xf32>
    %cst_148 = arith.constant 0.000000e+00 : f32
    %596 = vector.broadcast %cst_148 : f32 to vector<2x18x18xf32>
    %597 = arith.select %595, %334, %596 : vector<2x18x18xi1>, vector<2x18x18xf32>
    %cst_149 = arith.constant 1.000000e+02 : f32
    %598 = vector.broadcast %cst_149 : f32 to vector<2x18x18xf32>
    %599 = arith.cmpf ogt, %597, %598 : vector<2x18x18xf32>
    %600 = arith.extui %599 : vector<2x18x18xi1> to vector<2x18x18xi32>
    %601 = arith.sitofp %600 : vector<2x18x18xi32> to vector<2x18x18xf32>
    %cst_150 = arith.constant 0.000000e+00 : f32
    %602 = vector.broadcast %cst_150 : f32 to vector<2x16x16xf32>
    %603 = vector.extract_strided_slice %601 {offsets = [0, 0, 0], sizes = [2, 16, 16], strides = [1, 1, 1]} : vector<2x18x18xf32> to vector<2x16x16xf32>
    %604 = arith.addf %602, %603 : vector<2x16x16xf32>
    %605 = vector.extract_strided_slice %601 {offsets = [0, 0, 1], sizes = [2, 16, 16], strides = [1, 1, 1]} : vector<2x18x18xf32> to vector<2x16x16xf32>
    %606 = arith.addf %604, %605 : vector<2x16x16xf32>
    %607 = vector.extract_strided_slice %601 {offsets = [0, 0, 2], sizes = [2, 16, 16], strides = [1, 1, 1]} : vector<2x18x18xf32> to vector<2x16x16xf32>
    %608 = arith.addf %606, %607 : vector<2x16x16xf32>
    %609 = vector.extract_strided_slice %601 {offsets = [0, 1, 0], sizes = [2, 16, 16], strides = [1, 1, 1]} : vector<2x18x18xf32> to vector<2x16x16xf32>
    %610 = arith.addf %608, %609 : vector<2x16x16xf32>
    %611 = vector.extract_strided_slice %601 {offsets = [0, 1, 2], sizes = [2, 16, 16], strides = [1, 1, 1]} : vector<2x18x18xf32> to vector<2x16x16xf32>
    %612 = arith.addf %610, %611 : vector<2x16x16xf32>
    %613 = vector.extract_strided_slice %601 {offsets = [0, 2, 0], sizes = [2, 16, 16], strides = [1, 1, 1]} : vector<2x18x18xf32> to vector<2x16x16xf32>
    %614 = arith.addf %612, %613 : vector<2x16x16xf32>
    %615 = vector.extract_strided_slice %601 {offsets = [0, 2, 1], sizes = [2, 16, 16], strides = [1, 1, 1]} : vector<2x18x18xf32> to vector<2x16x16xf32>
    %616 = arith.addf %614, %615 : vector<2x16x16xf32>
    %617 = vector.extract_strided_slice %601 {offsets = [0, 2, 2], sizes = [2, 16, 16], strides = [1, 1, 1]} : vector<2x18x18xf32> to vector<2x16x16xf32>
    %618 = arith.addf %616, %617 : vector<2x16x16xf32>
    %619 = vector.extract_strided_slice %597 {offsets = [0, 1, 1], sizes = [2, 16, 16], strides = [1, 1, 1]} : vector<2x18x18xf32> to vector<2x16x16xf32>
    %cst_151 = arith.constant 1.000000e+01 : f32
    %620 = vector.broadcast %cst_151 : f32 to vector<2x16x16xf32>
    %621 = arith.cmpf olt, %619, %620 : vector<2x16x16xf32>
    %cst_152 = arith.constant 0.000000e+00 : f32
    %622 = vector.broadcast %cst_152 : f32 to vector<2x16x16xf32>
    %623 = arith.select %621, %622, %619 : vector<2x16x16xi1>, vector<2x16x16xf32>
    %cst_153 = arith.constant 1.000000e+02 : f32
    %624 = vector.broadcast %cst_153 : f32 to vector<2x16x16xf32>
    %625 = arith.cmpf ogt, %619, %624 : vector<2x16x16xf32>
    %cst_154 = arith.constant 1.000000e+00 : f32
    %626 = vector.broadcast %cst_154 : f32 to vector<2x16x16xf32>
    %627 = arith.select %625, %626, %623 : vector<2x16x16xi1>, vector<2x16x16xf32>
    %cst_155 = arith.constant 1.000000e+01 : f32
    %628 = vector.broadcast %cst_155 : f32 to vector<2x16x16xf32>
    %629 = arith.cmpf oge, %619, %628 : vector<2x16x16xf32>
    %cst_156 = arith.constant 1.000000e+02 : f32
    %630 = vector.broadcast %cst_156 : f32 to vector<2x16x16xf32>
    %631 = arith.cmpf ole, %619, %630 : vector<2x16x16xf32>
    %632 = arith.andi %629, %631 : vector<2x16x16xi1>
    %cst_157 = arith.constant 0.000000e+00 : f32
    %633 = vector.broadcast %cst_157 : f32 to vector<2x16x16xf32>
    %634 = arith.select %632, %633, %627 : vector<2x16x16xi1>, vector<2x16x16xf32>
    %cst_158 = arith.constant 0.000000e+00 : f32
    %635 = vector.broadcast %cst_158 : f32 to vector<2x16x16xf32>
    %636 = arith.select %632, %618, %635 : vector<2x16x16xi1>, vector<2x16x16xf32>
    %cst_159 = arith.constant 0.000000e+00 : f32
    %637 = vector.broadcast %cst_159 : f32 to vector<2x16x16xf32>
    %638 = arith.cmpf ogt, %636, %637 : vector<2x16x16xf32>
    %cst_160 = arith.constant 1.000000e+00 : f32
    %639 = vector.broadcast %cst_160 : f32 to vector<2x16x16xf32>
    %640 = arith.select %638, %639, %634 : vector<2x16x16xi1>, vector<2x16x16xf32>
    %641 = tpu.iota {dimensions = array<i32: 1>} : vector<1x16x16xi32>
    %642 = vector.broadcast %0 : i32 to vector<1x16x16xi32>
    %643 = arith.addi %642, %641 : vector<1x16x16xi32>
    %644 = tpu.iota {dimensions = array<i32: 2>} : vector<1x16x16xi32>
    %c0_i32_161 = arith.constant 0 : i32
    %645 = vector.broadcast %c0_i32_161 : i32 to vector<1x16x16xi32>
    %646 = arith.cmpi sgt, %643, %645 : vector<1x16x16xi32>
    %c15_i32 = arith.constant 15 : i32
    %647 = vector.broadcast %c15_i32 : i32 to vector<1x16x16xi32>
    %648 = arith.cmpi slt, %643, %647 : vector<1x16x16xi32>
    %649 = arith.andi %646, %648 : vector<1x16x16xi1>
    %c0_i32_162 = arith.constant 0 : i32
    %650 = vector.broadcast %c0_i32_162 : i32 to vector<1x16x16xi32>
    %651 = arith.cmpi sgt, %644, %650 : vector<1x16x16xi32>
    %652 = arith.andi %649, %651 : vector<1x16x16xi1>
    %c15_i32_163 = arith.constant 15 : i32
    %653 = vector.broadcast %c15_i32_163 : i32 to vector<1x16x16xi32>
    %654 = arith.cmpi slt, %644, %653 : vector<1x16x16xi32>
    %655 = arith.andi %652, %654 : vector<1x16x16xi1>
    %cst_164 = arith.constant 0.000000e+00 : f32
    %656 = vector.shape_cast %655 : vector<1x16x16xi1> to vector<1x16x16xi1>
    %657 = vector.broadcast %656 : vector<1x16x16xi1> to vector<2x16x16xi1>
    %658 = vector.broadcast %cst_164 : f32 to vector<2x16x16xf32>
    %659 = arith.select %657, %640, %658 : vector<2x16x16xi1>, vector<2x16x16xf32>
    %cst_165 = arith.constant 0.000000e+00 : f32
    %660 = vector.broadcast %cst_165 : f32 to vector<2x16x16xf32>
    %661 = arith.cmpf ogt, %659, %660 : vector<2x16x16xf32>
    %662 = arith.extui %661 : vector<2x16x16xi1> to vector<2x16x16xi32>
    %663 = arith.sitofp %662 : vector<2x16x16xi32> to vector<2x16x16xf32>
    %664 = vector.shape_cast %663 : vector<2x16x16xf32> to vector<2x1x16x16xf32>
    %c0_166 = arith.constant 0 : index
    %c0_167 = arith.constant 0 : index
    %c0_168 = arith.constant 0 : index
    %c0_169 = arith.constant 0 : index
    %665 = vector.load %arg2[%c0_166, %c0_167, %c0_168, %c0_169] : memref<2x1x16x16xf32, #tpu.memory_space<vmem>>, vector<2x1x16x16xf32>
    tpu.vector_store %arg2[%c0_166, %c0_167, %c0_168, %c0_169], %664 {strides = array<i32>} : memref<2x1x16x16xf32, #tpu.memory_space<vmem>>, vector<2x1x16x16xf32>,
    return
  }
  func.func @transform_0(%arg0: i32) -> (i32, i32, i32, i32) {
    %c0_i32 = arith.constant 0 : i32
    %c0_i32_0 = arith.constant 0 : i32
    %c0_i32_1 = arith.constant 0 : i32
    %c0_i32_2 = arith.constant 0 : i32
    return %arg0, %c0_i32, %c0_i32_0, %c0_i32_1 : i32, i32, i32, i32
  }
  func.func @transform_1(%arg0: i32) -> (i32, i32, i32, i32) {
    %c0_i32 = arith.constant 0 : i32
    %c0_i32_0 = arith.constant 0 : i32
    %c0_i32_1 = arith.constant 0 : i32
    %c0_i32_2 = arith.constant 0 : i32
    return %c0_i32, %c0_i32_0, %arg0, %c0_i32_1 : i32, i32, i32, i32
  }
}

</mosaic_0001>

<bundles_post_ra>
// kernel: tpu_custom_call.1
= control target key start
LH: loop header
LB: loop body
LE: loop exit
PB: predicated region body
PF: predicated region fallthrough
CT: control target
= control target key end

     0   :  { %6 = vsyncpa [#allocation3], 0  ;;  %s7707_s0 = inlined_call_operand.hbm [shape: f32[1,6,26,26], index: 0, kind: input, shape index: {}]   ;;  %s7708_s1 = inlined_call_operand.hbm [shape: f32[2,1,16,16], index: 1, kind: output, shape index: {}]  }
   0x1   :  { %7 = vsyncpa [#allocation4], 0  ;;  %s3709_s6 = smov [#allocation2]   ;;  %s3661_s10 = scalar_lea.hbm %s7707_s0, 3072 }
   0x2   :  { %s13_s7 = sshll.u32 %s3709_s6, 4  ;;  %p3662_p0 = scmp.ne.s32.totalorder %s7707_s0, %s3661_s10  ;;  %s14_s7 = int_to_ptr.vmem [resolvable:$true] %s13_s7 }
   0x3   :  { %p3665_p1 = scmp.lt.u32.totalorder %s3661_s10, %s7707_s0 }
   0x5   :  { %p3667_p2 = pnand %p3665_p1, %p3662_p0 }
   0x7   :  { %3670 = shalt.err (!%p3667_p2)
}
   0x8   :  { %s3671_s15 = scalar_lea.vmem %s14_s7, 3072  ;;  %p3676_p4 = scmp.lt.s32.totalorder %s14_s7, %s14_s7 }
   0x9   :  { %p3672_p3 = scmp.ne.s32.totalorder %s14_s7, %s3671_s15  ;;  %p3677_p5 = scmp.lt.s32.totalorder %s3671_s15, %s3671_s15 }
   0xb   :  { %p3678_p6 = por %p3677_p5, %p3676_p4 }
   0xd   :  { %p3679_p7 = pnand %p3678_p6, %p3672_p3 }
   0xf   :  { %3682 = shalt.err (!%p3679_p7)
}
  0x10   :  { %s3710_s16 = smov 128   ;;  %s3711_s17 = smov 8  }
  0x11   :  { %19 = dma.hbm_to_vmem [thread:$0]  %s7707_s0, 3072, %s14_s7, [#allocation3], %s3710_s16, %s3710_s16, %s3711_s17  }
  0x12   :  { %3705 = dma.done.wait [#allocation3], 3072  }
  0x13   :  { %3706 = vsyncadd [#allocation3], 4294964224  ;;  %v3744_v0 = vld [vmem:[#allocation2 + $0x10] sm:$0xff]  ;;  %v3746_v1 = vld [vmem:[#allocation2] sm:$0xff]  ;;  %s3712_s20 = smov 127   ;;  %s3713_s0 = smov 126  }
  0x14   :  { %v3748_v2 = vld [vmem:[#allocation2 + $0x20] sm:$0xff]  ;;  %v3751_v3 = vmul.f32 0.60653067, %v3744_v0  ;;  %v3754_v4 = vmul.f32 0.60653067, %v3746_v1  ;;  %v3756_v5 = vld [vmem:[#allocation2 + $0x8] sm:$0xff] }
  0x15   :  { %v3763_v6 = vmul.f32 0.60653067, %v3748_v2  ;;  %v3766_v7 = vmul.f32 0.60653067, %v3756_v5  ;;  %v3768_v8 = vld [vmem:[#allocation2 + $0x30] sm:$0xff]  ;;  %v3770_v9 = vld [vmem:[#allocation2 + $0x28] sm:$0xff] }
  0x16   :  { %148 = vrot.lane.b32.xlu1 %v3751_v3, %s3712_s20  ;;  %144 = vrot.lane.b32.xlu0 %v3754_v4, %s3712_s20  ;;  %v3777_v10 = vmul.f32 0.60653067, %v3768_v8  ;;  %v3780_v11 = vmul.f32 0.60653067, %v3770_v9  ;;  %v3782_v12 = vld [vmem:[#allocation2 + $0x68] sm:$0xff]  ;;  %v3784_v13 = vld [vmem:[#allocation2 + $0x60] sm:$0xff] }
  0x17   :  { %v3791_v14 = vmul.f32 0.60653067, %v3782_v12  ;;  %v3794_v15 = vmul.f32 0.60653067, %v3784_v13  ;;  %v3796_v16 = vld [vmem:[#allocation2 + $0x80] sm:$0xff]  ;;  %v3798_v17 = vld [vmem:[#allocation2 + $0x70] sm:$0xff] }
  0x18   :  { %v3805_v18 = vmul.f32 0.60653067, %v3796_v16  ;;  %v3808_v19 = vmul.f32 0.60653067, %v3798_v17  ;;  %v3810_v20 = vld [vmem:[#allocation2 + $0x90] sm:$0xff]  ;;  %v3812_v21 = vld [vmem:[#allocation2 + $0x88] sm:$0xff] }
  0x19   :  { %v3819_v22 = vmul.f32 0.60653067, %v3810_v20  ;;  %v3822_v23 = vmul.f32 0.60653067, %v3812_v21  ;;  %v3824_v24 = vld [vmem:[#allocation2 + $0x48] sm:$0xff]  ;;  %v3826_v25 = vld [vmem:[#allocation2 + $0x40] sm:$0xff] }
  0x1a   :  { %152 = vrot.lane.b32.xlu1 %v3763_v6, %s3712_s20  ;;  %146 = vrot.lane.b32.xlu0 %v3766_v7, %s3712_s20  ;;  %v3833_v26 = vmul.f32 0.60653067, %v3824_v24  ;;  %v3836_v27 = vmul.f32 0.60653067, %v3826_v25  ;;  %v3838_v28 = vld [vmem:[#allocation2 + $0xa0] sm:$0xff]  ;;  %v3840_v29 = vld [vmem:[#allocation2 + $0x50] sm:$0xff] }
  0x1b   :  { %v3847_v30 = vmul.f32 0.60653067, %v3838_v28  ;;  %v3850_v31 = vmul.f32 0.60653067, %v3840_v29  ;;  %v3852_v32 = vld [vmem:[#allocation2 + $0xb0] sm:$0xff]  ;;  %v3854_v33 = vld [vmem:[#allocation2 + $0xa8] sm:$0xff] }
  0x1c   :  { %v3861_v34 = vmul.f32 0.60653067, %v3852_v32  ;;  %v3864_v35 = vmul.f32 0.60653067, %v3854_v33  ;;  %v3890_v36 = vld [vmem:[#allocation2 + $0x38] sm:$0x3] }
  0x1d   :  { %v3892_v37 = vld [vmem:[#allocation2 + $0x18] sm:$0x3]  ;;  %v3899_v38 = vmul.f32 0.60653067, %v3890_v36  ;;  %s3714_s21 = smov 125   ;;  %s3715_s22 = smov 124  }
  0x1e   :  { %156 = vrot.lane.b32.xlu1 %v3777_v10, %s3712_s20  ;;  %154 = vrot.lane.b32.xlu0 %v3780_v11, %s3712_s20  ;;  %v3902_v39 = vmul.f32 0.60653067, %v3892_v37  ;;  %v3904_v40 = vld [vmem:[#allocation2 + $0x98] sm:$0x3]  ;;  %v4005_v54 = vmul.f32 0.13533528, %v3746_v1 }
  0x1f   :  { %v3906_v41 = vld [vmem:[#allocation2 + $0x78] sm:$0x3]  ;;  %v3913_v42 = vmul.f32 0.60653067, %v3904_v40  ;;  %v4008_v55 = vmul.f32 0.13533528, %v3756_v5 }
  0x20   :  { %v3916_v43 = vmul.f32 0.60653067, %v3906_v41  ;;  %v3954_v44 = vld [vmem:[#allocation2 + $0xb8] sm:$0x3]  ;;  %v4019_v58 = vmul.f32 0.13533528, %v3744_v0 }
  0x21   :  { %v3956_v45 = vld [vmem:[#allocation2 + $0x58] sm:$0x3]  ;;  %v3963_v46 = vmul.f32 0.60653067, %v3954_v44  ;;  %v4022_v59 = vmul.f32 0.13533528, %v3748_v2 }
  0x22   :  { %170 = vrot.lane.b32.xlu1 %v3791_v14, %s3712_s20  ;;  %168 = vrot.lane.b32.xlu0 %v3794_v15, %s3712_s20  ;;  %v3966_v47 = vmul.f32 0.60653067, %v3956_v45  ;;  %v4033_v62 = vmul.f32 0.13533528, %v3768_v8  ;;  %v4036_v63 = vmul.f32 0.13533528, %v3770_v9 }
  0x23   :  { %vm7830_vm0 = vcmask 1045504   ;;  %vm7813_vm1 = vcmask 1046528   ;;  %vm812_vm2 = vcmask 1044480   ;;  %vm921_vm3 = vcmask 1043456   ;;  %s3716_s23 = smov 1   ;;  %s3718_s24 = smov [#allocation5]  }
  0x24   :  { %s3348_s25 = sshll.u32 %s3718_s24, 4  ;;  %s3349_s25 = int_to_ptr.vmem [resolvable:$true] %s3348_s25 }
  0x25   :  { %s3683_s26 = scalar_lea.vmem %s3349_s25, 512  ;;  %p3688_p9 = scmp.lt.s32.totalorder %s3349_s25, %s3349_s25 }
  0x26   :  { %176 = vrot.lane.b32.xlu1 %v3805_v18, %s3712_s20  ;;  %172 = vrot.lane.b32.xlu0 %v3808_v19, %s3712_s20  ;;  %p3684_p8 = scmp.ne.s32.totalorder %s3349_s25, %s3683_s26  ;;  %p3689_p10 = scmp.lt.s32.totalorder %s3683_s26, %s3683_s26 }
  0x28   :  { %p3690_p11 = por %p3689_p10, %p3688_p9 }
  0x2a   :  { %180 = vrot.lane.b32.xlu1 %v3819_v22, %s3712_s20  ;;  %178 = vrot.lane.b32.xlu0 %v3822_v23, %s3712_s20  ;;  %p3691_p12 = pnand %p3690_p11, %p3684_p8 }
  0x2e   :  { %162 = vrot.lane.b32.xlu1 %v3833_v26, %s3712_s20  ;;  %160 = vrot.lane.b32.xlu0 %v3836_v27, %s3712_s20 }
  0x32   :  { %184 = vrot.lane.b32.xlu1 %v3847_v30, %s3712_s20  ;;  %164 = vrot.lane.b32.xlu0 %v3850_v31, %s3712_s20 }
  0x36   :  { %188 = vrot.lane.b32.xlu1 %v3861_v34, %s3712_s20  ;;  %186 = vrot.lane.b32.xlu0 %v3864_v35, %s3712_s20 }
  0x3a   :  { %266 = vrot.lane.b32.xlu1 %v3756_v5, %s3713_s0  ;;  %264 = vrot.lane.b32.xlu0 %v3746_v1, %s3713_s0 }
  0x3e   :  { %272 = vrot.lane.b32.xlu1 %v3748_v2, %s3713_s0  ;;  %268 = vrot.lane.b32.xlu0 %v3744_v0, %s3713_s0  ;;  %v4047_v2 = vmul.f32 0.13533528, %v3782_v12 }
  0x42   :  { %276 = vrot.lane.b32.xlu1 %v3768_v8, %s3713_s0  ;;  %274 = vrot.lane.b32.xlu0 %v3770_v9, %s3713_s0 }
  0x46   :  { %290 = vrot.lane.b32.xlu1 %v3782_v12, %s3713_s0  ;;  %288 = vrot.lane.b32.xlu0 %v3784_v13, %s3713_s0 }
  0x4a   :  { %296 = vrot.lane.b32.xlu1 %v3796_v16, %s3713_s0  ;;  %292 = vrot.lane.b32.xlu0 %v3798_v17, %s3713_s0 }
  0x4e   :  { %300 = vrot.lane.b32.xlu1 %v3810_v20, %s3713_s0  ;;  %298 = vrot.lane.b32.xlu0 %v3812_v21, %s3713_s0 }
  0x52   :  { %158 = vrot.lane.b32.xlu1 %v3899_v38, %s3712_s20  ;;  %150 = vrot.lane.b32.xlu0 %v3902_v39, %s3712_s20 }
  0x56   :  { %182 = vrot.lane.b32.xlu1 %v3913_v42, %s3712_s20  ;;  %174 = vrot.lane.b32.xlu0 %v3916_v43, %s3712_s20 }
  0x5a   :  { %282 = vrot.lane.b32.xlu1 %v3824_v24, %s3713_s0  ;;  %280 = vrot.lane.b32.xlu0 %v3826_v25, %s3713_s0 }
  0x5e   :  { %304 = vrot.lane.b32.xlu1 %v3838_v28, %s3713_s0  ;;  %284 = vrot.lane.b32.xlu0 %v3840_v29, %s3713_s0 }
  0x62   :  { %308 = vrot.lane.b32.xlu1 %v3852_v32, %s3713_s0  ;;  %306 = vrot.lane.b32.xlu0 %v3854_v33, %s3713_s0 }
  0x66   :  { %362 = vrot.lane.b32.xlu1 %v3766_v7, %s3714_s21  ;;  %360 = vrot.lane.b32.xlu0 %v3754_v4, %s3714_s21  ;;  %v4064_v7 = vmul.f32 0.13533528, %v3798_v17 }
  0x6a   :  { %368 = vrot.lane.b32.xlu1 %v3763_v6, %s3714_s21  ;;  %364 = vrot.lane.b32.xlu0 %v3751_v3, %s3714_s21  ;;  %v4050_v3 = vmul.f32 0.13533528, %v3784_v13  ;;  %v4061_v6 = vmul.f32 0.13533528, %v3796_v16 }
  0x6e   :  { %372 = vrot.lane.b32.xlu1 %v3777_v10, %s3714_s21  ;;  %370 = vrot.lane.b32.xlu0 %v3780_v11, %s3714_s21  ;;  %v4075_v10 = vmul.f32 0.13533528, %v3810_v20  ;;  %v4078_v11 = vmul.f32 0.13533528, %v3812_v21  ;;  %v4113_v20 = vmul.f32 0.13533528, %v3824_v24 }
  0x6f   :  { %v4116_v21 = vmul.f32 0.13533528, %v3826_v25 }
  0x72   :  { %386 = vrot.lane.b32.xlu1 %v3791_v14, %s3714_s21  ;;  %384 = vrot.lane.b32.xlu0 %v3794_v15, %s3714_s21 }
  0x76   :  { %392 = vrot.lane.b32.xlu1 %v3805_v18, %s3714_s21  ;;  %388 = vrot.lane.b32.xlu0 %v3808_v19, %s3714_s21 }
  0x7a   :  { %396 = vrot.lane.b32.xlu1 %v3819_v22, %s3714_s21  ;;  %394 = vrot.lane.b32.xlu0 %v3822_v23, %s3714_s21 }
  0x7e   :  { %190 = vrot.lane.b32.xlu1 %v3963_v46, %s3712_s20  ;;  %166 = vrot.lane.b32.xlu0 %v3966_v47, %s3712_s20 }
  0x82   :  { %278 = vrot.lane.b32.xlu1 %v3890_v36, %s3713_s0  ;;  %270 = vrot.lane.b32.xlu0 %v3892_v37, %s3713_s0 }
  0x86   :  { %302 = vrot.lane.b32.xlu1 %v3904_v40, %s3713_s0  ;;  %294 = vrot.lane.b32.xlu0 %v3906_v41, %s3713_s0 }
  0x88   :  { %v3980_v48 = vpop.permute.xlu1 %148  ;;  %v3982_v49 = vpop.permute.xlu0 %144 }
  0x8a   :  { %378 = vrot.lane.b32.xlu1 %v3833_v26, %s3714_s21  ;;  %376 = vrot.lane.b32.xlu0 %v3836_v27, %s3714_s21  ;;  %v4127_v26 = vmul.f32 0.13533528, %v3838_v28  ;;  %v4130_v27 = vmul.f32 0.13533528, %v3840_v29 }
  0x8c   :  { %v3988_v50 = vpop.permute.xlu1 %152  ;;  %v3990_v51 = vpop.permute.xlu0 %146 }
  0x8e   :  { %400 = vrot.lane.b32.xlu1 %v3847_v30, %s3714_s21  ;;  %380 = vrot.lane.b32.xlu0 %v3850_v31, %s3714_s21  ;;  %v4141_v30 = vmul.f32 0.13533528, %v3852_v32  ;;  %v4144_v31 = vmul.f32 0.13533528, %v3854_v33  ;;  %v4159_v32 = vmul.f32 0.13533528, %v3890_v36 }
  0x8f   :  { %v4166_v33 = vmul.f32 0.13533528, %v3892_v37  ;;  %v4180_v36 = vmul.f32 0.13533528, %v3906_v41 }
  0x90   :  { %v3996_v52 = vpop.permute.xlu1 %156  ;;  %v3998_v53 = vpop.permute.xlu0 %154 }
  0x91   :  { %7834 = vst [vmem:[#allocation10_spill] sm:$0xff] %v4180_v36 }
  0x92   :  { %404 = vrot.lane.b32.xlu1 %v3861_v34, %s3714_s21  ;;  %402 = vrot.lane.b32.xlu0 %v3864_v35, %s3714_s21 }
  0x94   :  { %v4010_v56 = vpop.permute.xlu1 %170  ;;  %v4012_v57 = vpop.permute.xlu0 %168 }
  0x96   :  { %482 = vrot.lane.b32.xlu1 %v4008_v55, %s3715_s22  ;;  %480 = vrot.lane.b32.xlu0 %v4005_v54, %s3715_s22 }
  0x98   :  { %v4024_v60 = vpop.permute.xlu1 %176  ;;  %v4026_v61 = vpop.permute.xlu0 %172 }
  0x9a   :  { %488 = vrot.lane.b32.xlu1 %v4022_v59, %s3715_s22  ;;  %484 = vrot.lane.b32.xlu0 %v4019_v58, %s3715_s22 }
  0x9c   :  { %v4038_v0 = vpop.permute.xlu1 %180  ;;  %v4040_v1 = vpop.permute.xlu0 %178 }
  0x9e   :  { %492 = vrot.lane.b32.xlu1 %v4033_v62, %s3715_s22  ;;  %490 = vrot.lane.b32.xlu0 %v4036_v63, %s3715_s22 }
  0xa0   :  { %v4052_v4 = vpop.permute.xlu1 %162  ;;  %v4054_v5 = vpop.permute.xlu0 %160 }
  0xa2   :  { %506 = vrot.lane.b32.xlu1 %v4047_v2, %s3715_s22  ;;  %504 = vrot.lane.b32.xlu0 %v4050_v3, %s3715_s22 }
  0xa4   :  { %v4066_v8 = vpop.permute.xlu1 %184  ;;  %v4068_v9 = vpop.permute.xlu0 %164 }
  0xa6   :  { %512 = vrot.lane.b32.xlu1 %v4061_v6, %s3715_s22  ;;  %508 = vrot.lane.b32.xlu0 %v4064_v7, %s3715_s22 }
  0xa8   :  { %v4080_v12 = vpop.permute.xlu1 %188  ;;  %v4082_v13 = vpop.permute.xlu0 %186 }
  0xaa   :  { %516 = vrot.lane.b32.xlu1 %v4075_v10, %s3715_s22  ;;  %514 = vrot.lane.b32.xlu0 %v4078_v11, %s3715_s22 }
  0xac   :  { %v4088_v14 = vpop.permute.xlu1 %266  ;;  %v4090_v15 = vpop.permute.xlu0 %264 }
  0xae   :  { %310 = vrot.lane.b32.xlu1 %v3954_v44, %s3713_s0  ;;  %286 = vrot.lane.b32.xlu0 %v3956_v45, %s3713_s0 }
  0xb0   :  { %v4096_v16 = vpop.permute.xlu1 %272  ;;  %v4098_v17 = vpop.permute.xlu0 %268 }
  0xb2   :  { %374 = vrot.lane.b32.xlu1 %v3899_v38, %s3714_s21  ;;  %366 = vrot.lane.b32.xlu0 %v3902_v39, %s3714_s21 }
  0xb4   :  { %v4104_v18 = vpop.permute.xlu1 %276  ;;  %v4106_v19 = vpop.permute.xlu0 %274 }
  0xb6   :  { %398 = vrot.lane.b32.xlu1 %v3913_v42, %s3714_s21  ;;  %390 = vrot.lane.b32.xlu0 %v3916_v43, %s3714_s21  ;;  %v4173_v42 = vmul.f32 0.13533528, %v3904_v40  ;;  %v4191_v40 = vmul.f32 0.13533528, %v3954_v44 }
  0xb8   :  { %v4118_v22 = vpop.permute.xlu1 %290  ;;  %v4120_v23 = vpop.permute.xlu0 %288  ;;  %7837 = vst [vmem:[#allocation13_spill] sm:$0xff] %v4191_v40 }
  0xba   :  { %498 = vrot.lane.b32.xlu1 %v4113_v20, %s3715_s22  ;;  %496 = vrot.lane.b32.xlu0 %v4116_v21, %s3715_s22 }
  0xbc   :  { %v4132_v24 = vpop.permute.xlu1 %296  ;;  %v4134_v25 = vpop.permute.xlu0 %292 }
  0xbe   :  { %520 = vrot.lane.b32.xlu1 %v4127_v26, %s3715_s22  ;;  %500 = vrot.lane.b32.xlu0 %v4130_v27, %s3715_s22 }
  0xc0   :  { %v4146_v28 = vpop.permute.xlu1 %300  ;;  %v4148_v29 = vpop.permute.xlu0 %298 }
  0xc2   :  { %524 = vrot.lane.b32.xlu1 %v4141_v30, %s3715_s22  ;;  %522 = vrot.lane.b32.xlu0 %v4144_v31, %s3715_s22 }
  0xc4   :  { %v4154_v34 = vpop.permute.xlu1 %158  ;;  %v4156_v35 = vpop.permute.xlu0 %150 }
  0xc6   :  { %406 = vrot.lane.b32.xlu1 %v3963_v46, %s3714_s21  ;;  %382 = vrot.lane.b32.xlu0 %v3966_v47, %s3714_s21  ;;  %v4194_v46 = vmul.f32 0.13533528, %v3956_v45 }
  0xc8   :  { %v4168_v38 = vpop.permute.xlu1 %182  ;;  %v4170_v39 = vpop.permute.xlu0 %174  ;;  %7838 = vst [vmem:[#allocation14_spill] sm:$0xff] %v4194_v46 }
  0xc9   :  { %7832 = vst [vmem:[#allocation8_spill] sm:$0xff] %v4168_v38  ;;  %7833 = vst [vmem:[#allocation9_spill] sm:$0xff] %v4170_v39 }
  0xca   :  { %494 = vrot.lane.b32.xlu1 %v4159_v32, %s3715_s22  ;;  %486 = vrot.lane.b32.xlu0 %v4166_v33, %s3715_s22 }
  0xcc   :  { %v4182_v43 = vpop.permute.xlu1 %282  ;;  %v4184_v37 = vpop.permute.xlu0 %280 }
  0xcd   :  { %7835 = vst [vmem:[#allocation11_spill] sm:$0xff] %v4182_v43  ;;  %7836 = vst [vmem:[#allocation12_spill] sm:$0xff] %v4184_v37 }
  0xce   :  { %518 = vrot.lane.b32.xlu1 %v4173_v42, %s3715_s22  ;;  %510 = vrot.lane.b32.xlu0 %v4180_v36, %s3715_s22 }
  0xd0   :  { %v4196_v47 = vpop.permute.xlu1 %304  ;;  %v4198_v41 = vpop.permute.xlu0 %284 }
  0xd1   :  { %7839 = vst [vmem:[#allocation15_spill] sm:$0xff] %v4196_v47  ;;  %7840 = vst [vmem:[#allocation16_spill] sm:$0xff] %v4198_v41 }
  0xd2   :  { %526 = vrot.lane.b32.xlu1 %v4191_v40, %s3715_s22  ;;  %502 = vrot.lane.b32.xlu0 %v4194_v46, %s3715_s22 }
  0xd4   :  { %v4204_v37 = vpop.permute.xlu1 %308  ;;  %v4206_v43 = vpop.permute.xlu0 %306 }
  0xd5   :  { %7841 = vst [vmem:[#allocation17_spill] sm:$0xff] %v4204_v37  ;;  %7842 = vst [vmem:[#allocation18_spill] sm:$0xff] %v4206_v43 }
  0xd8   :  { %v4208_v39 = vpop.permute.xlu1 %362  ;;  %v4210_v44 = vpop.permute.xlu0 %360 }
  0xd9   :  { %7843 = vst [vmem:[#allocation19_spill] sm:$0xff] %v4208_v39  ;;  %7844 = vst [vmem:[#allocation20_spill] sm:$0xff] %v4210_v44 }
  0xdc   :  { %v4212_v45 = vpop.permute.xlu1 %368  ;;  %v4214_v36 = vpop.permute.xlu0 %364 }
  0xdd   :  { %7845 = vst [vmem:[#allocation21_spill] sm:$0xff] %v4212_v45  ;;  %7846 = vst [vmem:[#allocation22_spill] sm:$0xff] %v4214_v36 }
  0xe0   :  { %v4216_v47 = vpop.permute.xlu1 %372  ;;  %v4218_v41 = vpop.permute.xlu0 %370 }
  0xe1   :  { %7847 = vst [vmem:[#allocation23_spill] sm:$0xff] %v4216_v47  ;;  %7848 = vst [vmem:[#allocation24_spill] sm:$0xff] %v4218_v41  ;;  %v1001_v41 = vlaneseq }
  0xe4   :  { %v4220_v40 = vpop.permute.xlu1 %386  ;;  %v4222_v38 = vpop.permute.xlu0 %384 }
  0xe5   :  { %7849 = vst [vmem:[#allocation25_spill] sm:$0xff] %v4220_v40  ;;  %7850 = vst [vmem:[#allocation26_spill] sm:$0xff] %v4222_v38 }
  0xe8   :  { %v4224_v46 = vpop.permute.xlu1 %392  ;;  %v4226_v37 = vpop.permute.xlu0 %388 }
  0xe9   :  { %7851 = vst [vmem:[#allocation27_spill] sm:$0xff] %v4224_v46  ;;  %7852 = vst [vmem:[#allocation28_spill] sm:$0xff] %v4226_v37  ;;  %v4244_v46 = vshrl.u32 %v1001_v41, 7  ;;  %v4246_v37 = vand.u32 127, %v1001_v41  ;;  %v229_v41 = vadd.f32 %v4010_v56, %v4047_v2 }
  0xeb   :  { %7859 = vst [vmem:[#allocation35_spill] sm:$0xff] %v4244_v46  ;;  %7860 = vst [vmem:[#allocation36_spill] sm:$0xff] %v4246_v37  ;;  %v4279_v56 = vadd.s32 4294967293, %v4244_v46 }
  0xec   :  { %v4228_v43 = vpop.permute.xlu1 %396  ;;  %v4230_v39 = vpop.permute.xlu0 %394 }
  0xed   :  { %7853 = vst [vmem:[#allocation29_spill] sm:$0xff] %v4230_v39  ;;  %v218_v39 = vadd.f32 %v3980_v48, %v4019_v58  ;;  %v228_v48 = vadd.f32 %v4012_v57, %v4050_v3  ;;  %v4282_v57 = vadd.s32 4294967293, %v4246_v37  ;;  %v224_v58 = vadd.f32 %v4054_v5, %v4116_v21  ;;  %v7865_v21 = vld [vmem:[#allocation11_spill] sm:$0xff] }
  0xee   :  { %vm1012_vm4 = vcmp.ge.s32.totalorder %v4279_v56, 0 }
  0xef   :  { %v338_v2 = vadd.f32 %v4098_v17, %v218_v39  ;;  %vm1021_vm5 = vcmp.ge.s32.totalorder %v4282_v57, 0  ;;  %vm1025_vm6 = vcmp.lt.s32.totalorder %v4282_v57, 16 }
  0xf0   :  { %v4232_v44 = vpop.permute.xlu1 %190  ;;  %v4234_v45 = vpop.permute.xlu0 %166  ;;  %vm4517_vm7 = vmand %vm1012_vm4, %vm1021_vm5 }
  0xf1   :  { %7854 = vst [vmem:[#allocation30_spill] sm:$0xff] %v4232_v44  ;;  %v216_v44 = vadd.f32 %v3982_v49, %v4005_v54  ;;  %v232_v49 = vadd.f32 %v4024_v60, %v4061_v6  ;;  %v226_v60 = vadd.f32 %v4068_v9, %v4130_v27  ;;  %v348_v9 = vadd.f32 %v4120_v23, %v228_v48  ;;  %v7866_v23 = vld [vmem:[#allocation12_spill] sm:$0xff]  ;;  %v7867_v27 = vld [vmem:[#allocation15_spill] sm:$0xff]  ;;  %vm4543_vm8 = vmand %vm4517_vm7, %vm1025_vm6 }
  0xf2   :  { %v7875_v48 = vld [vmem:[#allocation23_spill] sm:$0xff]  ;;  %vm4642_vm9 = vmand %vm1021_vm5, %vm1025_vm6 }
  0xf4   :  { %v4236_v36 = vpop.permute.xlu1 %278  ;;  %v4238_v47 = vpop.permute.xlu0 %270 }
  0xf5   :  { %7855 = vst [vmem:[#allocation31_spill] sm:$0xff] %v4236_v36  ;;  %7856 = vst [vmem:[#allocation32_spill] sm:$0xff] %v4238_v47  ;;  %v220_v36 = vadd.f32 %v3988_v50, %v4022_v59  ;;  %v217_v47 = vadd.f32 %v3990_v51, %v4008_v55  ;;  %v230_v50 = vadd.f32 %v4026_v61, %v4064_v7  ;;  %v4301_v7 = vadd.s32 16, %v4244_v46 }
  0xf6   :  { %v234_v51 = vadd.f32 %v4038_v0, %v4075_v10  ;;  %v225_v55 = vadd.f32 %v4052_v4, %v4113_v20  ;;  %v236_v59 = vadd.f32 %v4066_v8, %v4127_v26  ;;  %v238_v61 = vadd.f32 %v4080_v12, %v4141_v30 }
  0xf7   :  { %v336_v0 = vadd.f32 %v4090_v15, %v216_v44  ;;  %7861 = vst [vmem:[#allocation37_spill] sm:$0xff] %v4301_v7  ;;  %v349_v8 = vadd.f32 %v4118_v22, %v229_v41  ;;  %v352_v10 = vadd.f32 %v4132_v24, %v232_v49  ;;  %v219_v15 = vadd.f32 %v4156_v35, %v4166_v33  ;;  %v7874_v44 = vld [vmem:[#allocation22_spill] sm:$0xff] }
  0xf8   :  { %v4240_v40 = vpop.permute.xlu1 %302  ;;  %v4242_v38 = vpop.permute.xlu0 %294  ;;  %v354_v12 = vadd.f32 %v4146_v28, %v234_v51  ;;  %v345_v22 = vadd.f32 %v7865_v21, %v225_v55  ;;  %v344_v26 = vadd.f32 %v7866_v23, %v224_v58  ;;  %v356_v24 = vadd.f32 %v7867_v27, %v236_v59  ;;  %v7878_v58 = vld [vmem:[#allocation26_spill] sm:$0xff] }
  0xf9   :  { %7857 = vst [vmem:[#allocation33_spill] sm:$0xff] %v4240_v40  ;;  %7858 = vst [vmem:[#allocation34_spill] sm:$0xff] %v4242_v38  ;;  %v222_v40 = vadd.f32 %v3996_v52, %v4033_v62  ;;  %v221_v38 = vadd.f32 %v3998_v53, %v4036_v63  ;;  %v233_v53 = vadd.f32 %v4040_v1, %v4078_v11  ;;  %v4323_v35 = vadd.s32 4294967293, %v4301_v7 }
  0xfa   :  { %v237_v62 = vadd.f32 %v4082_v13, %v4144_v31  ;;  %v337_v63 = vadd.f32 %v4088_v14, %v217_v47  ;;  %v340_v1 = vadd.f32 %v4096_v16, %v220_v36  ;;  %v350_v11 = vadd.f32 %v4134_v25, %v230_v50  ;;  %v7862_v16 = vld [vmem:[#allocation8_spill] sm:$0xff]  ;;  %v7869_v31 = vld [vmem:[#allocation17_spill] sm:$0xff] }
  0xfb   :  { %v342_v3 = vadd.f32 %v4104_v18, %v222_v40  ;;  %v341_v4 = vadd.f32 %v4106_v19, %v221_v38  ;;  %v353_v13 = vadd.f32 %v4148_v29, %v233_v53  ;;  %v223_v14 = vadd.f32 %v4154_v34, %v4159_v32  ;;  %v7863_v18 = vld [vmem:[#allocation10_spill] sm:$0xff]  ;;  %v7864_v19 = vld [vmem:[#allocation9_spill] sm:$0xff]  ;;  %v7868_v25 = vld [vmem:[#allocation16_spill] sm:$0xff] }
  0xfc   :  { %v4270_v54 = vpop.permute.xlu1 %378  ;;  %v4272_v52 = vpop.permute.xlu0 %376  ;;  %v235_v17 = vadd.f32 %v7862_v16, %v4173_v42  ;;  %v231_v20 = vadd.f32 %v7864_v19, %v7863_v18  ;;  %v346_v30 = vadd.f32 %v7868_v25, %v226_v60  ;;  %v358_v28 = vadd.f32 %v7869_v31, %v238_v61  ;;  %v7870_v32 = vld [vmem:[#allocation18_spill] sm:$0xff]  ;;  %v7871_v38 = vld [vmem:[#allocation19_spill] sm:$0xff]  ;;  %v7872_v42 = vld [vmem:[#allocation20_spill] sm:$0xff] }
  0xfd   :  { %v357_v33 = vadd.f32 %v7870_v32, %v237_v62  ;;  %v433_v39 = vadd.f32 %v7871_v38, %v337_v63  ;;  %v432_v36 = vadd.f32 %v7872_v42, %v336_v0  ;;  %v7873_v40 = vld [vmem:[#allocation21_spill] sm:$0xff]  ;;  %v434_v41 = vadd.f32 %v7874_v44, %v338_v2  ;;  %v7876_v50 = vld [vmem:[#allocation24_spill] sm:$0xff]  ;;  %v7879_v60 = vld [vmem:[#allocation27_spill] sm:$0xff] }
  0xfe   :  { %v436_v47 = vadd.f32 %v7873_v40, %v340_v1  ;;  %v438_v49 = vadd.f32 %v7875_v48, %v342_v3  ;;  %v437_v51 = vadd.f32 %v7876_v50, %v341_v4  ;;  %v7877_v53 = vld [vmem:[#allocation25_spill] sm:$0xff]  ;;  %v4336_v59 = vadd.f32 %v7878_v58, %v348_v9  ;;  %v7880_v62 = vld [vmem:[#allocation28_spill] sm:$0xff]  ;;  %v7883_v4 = vld [vmem:[#allocation30_spill] sm:$0xff] }
  0xff   :  { %v4333_v55 = vadd.f32 %v7877_v53, %v349_v8  ;;  %v4339_v61 = vadd.f32 %v7879_v60, %v352_v10  ;;  %v4342_v63 = vadd.f32 %v7880_v62, %v350_v11  ;;  %v4345_v0 = vadd.f32 %v4228_v43, %v354_v12  ;;  %v7881_v1 = vld [vmem:[#allocation29_spill] sm:$0xff]  ;;  %v7884_v8 = vld [vmem:[#allocation14_spill] sm:$0xff]  ;;  %v7885_v18 = vld [vmem:[#allocation31_spill] sm:$0xff] }
 0x100   :  { %v401_v5 = vpop.permute.xlu1 %400  ;;  %v381_v6 = vpop.permute.xlu0 %380  ;;  %v4348_v2 = vadd.f32 %v7881_v1, %v353_v13  ;;  %v7882_v3 = vld [vmem:[#allocation13_spill] sm:$0xff]  ;;  %v4356_v9 = vadd.f32 %v4234_v45, %v7884_v8  ;;  %v4359_v10 = vadd.f32 %v7885_v18, %v223_v14  ;;  %v7886_v43 = vld [vmem:[#allocation32_spill] sm:$0xff]  ;;  %v7888_v25 = vld [vmem:[#allocation34_spill] sm:$0xff]  ;;  %v4373_v45 = vadd.f32 %v4270_v54, %v345_v22 }
 0x101   :  { %v4352_v16 = vadd.f32 %v7883_v4, %v7882_v3  ;;  %v4362_v12 = vadd.f32 %v7886_v43, %v219_v15  ;;  %v7887_v13 = vld [vmem:[#allocation33_spill] sm:$0xff]  ;;  %v4370_v31 = vadd.f32 %v7888_v25, %v231_v20  ;;  %v4376_v14 = vadd.f32 %v4272_v52, %v344_v26 }
 0x102   :  { %v4365_v21 = vadd.f32 %v7887_v13, %v235_v17  ;;  %v4378_v32 = vadd.f32 %v401_v5, %v356_v24  ;;  %v4387_v42 = vadd.f32 %v381_v6, %v346_v30  ;;  %vm1017_vm10 = vcmp.lt.s32.totalorder %v4323_v35, 16 }
 0x103   :  { %vm4861_vm11 = vmand %vm1017_vm10, %vm1021_vm5 }
 0x104   :  { %v405_v29 = vpop.permute.xlu1 %404  ;;  %v403_v34 = vpop.permute.xlu0 %402  ;;  %vm4883_vm12 = vmand %vm4861_vm11, %vm1025_vm6 }
 0x105   :  { %v4389_v20 = vadd.f32 %v405_v29, %v358_v28  ;;  %v4391_v26 = vadd.f32 %v403_v34, %v357_v33 }
 0x108   :  { %v483_v19 = vpop.permute.xlu1 %482  ;;  %v481_v11 = vpop.permute.xlu0 %480 }
 0x109   :  { %v4367_v23 = vadd.f32 %v483_v19, %v433_v39  ;;  %v552_v27 = vadd.f32 %v481_v11, %v432_v36 }
 0x10b   :  { %v4381_v15 = vmul.f32 0.13533528, %v4367_v23  ;;  %v4384_v17 = vmul.f32 0.60653067, %v4367_v23  ;;  %v7716_v38 = vrot.slane %v4367_v23, 2  ;;  %v734_v39 = vrot.slane %v552_v27, 2 }
 0x10c   :  { %v576_v54 = vmul.f32 0.13533528, %v552_v27  ;;  %v612_v22 = vmul.f32 0.60653067, %v552_v27  ;;  %v489_v36 = vpop.permute.xlu1 %488  ;;  %v485_v52 = vpop.permute.xlu0 %484 }
 0x10d   :  { %v7718_v5 = vrot.slane %v4384_v17, 1  ;;  %v7713_v24 = vrot.slane %v4384_v17, 3  ;;  %v4395_v40 = vadd.f32 %v489_v36, %v436_v47  ;;  %v7712_v44 = vrot.slane %v4381_v15, 4 }
 0x10e   :  { %v649_v48 = vrot.slane %v612_v22, 1  ;;  %v813_v50 = vrot.slane %v612_v22, 3  ;;  %v4398_v6 = vadd.f32 %v485_v52, %v434_v41  ;;  %v922_v30 = vrot.slane %v576_v54, 4 }
 0x10f   :  { %v4401_v28 = vmul.f32 0.13533528, %v4395_v40  ;;  %v4404_v29 = vmul.f32 0.60653067, %v4395_v40  ;;  %v736_v34 = vsel %vm7830_vm0, %v734_v39, %v7716_v38  ;;  %v7899_v37 = vrot.slane %v4384_v17, 1 }
 0x110   :  { %v651_v33 = vsel %vm7813_vm1, %v649_v48, %v7718_v5  ;;  %v4414_v41 = vmul.f32 0.13533528, %v4398_v6  ;;  %v4417_v53 = vmul.f32 0.60653067, %v4398_v6  ;;  %v493_v58 = vpop.permute.xlu1 %492  ;;  %v491_v60 = vpop.permute.xlu0 %490  ;;  %v7717_v4 = vrot.slane %v4398_v6, 2 }
 0x111   :  { %v697_v62 = vadd.f32 %v651_v33, %v576_v54  ;;  %v4427_v11 = vadd.f32 %v493_v58, %v438_v49  ;;  %v4429_v43 = vadd.f32 %v491_v60, %v437_v51  ;;  %v815_v27 = vsel %vm812_vm2, %v813_v50, %v7713_v24 }
 0x112   :  { %7889 = vst [vmem:[#allocation8_spill] sm:$0xff] %v4414_v41  ;;  %7890 = vst [vmem:[#allocation10_spill] sm:$0xff] %v4417_v53  ;;  %v7719_v18 = vrot.slane %v4417_v53, 1  ;;  %v924_v25 = vsel %vm921_vm3, %v922_v30, %v7712_v44 }
 0x113   :  { %v782_v13 = vadd.f32 %v736_v34, %v697_v62  ;;  %v4442_v49 = vmul.f32 0.13533528, %v4427_v11  ;;  %v4445_v51 = vmul.f32 0.60653067, %v4427_v11  ;;  %v7714_v52 = vrot.slane %v4427_v11, 2 }
 0x114   :  { %v699_v39 = vadd.f32 %v7719_v18, %v4414_v41  ;;  %v507_v22 = vpop.permute.xlu1 %506  ;;  %v505_v36 = vpop.permute.xlu0 %504  ;;  %v4450_v48 = vmul.f32 0.13533528, %v4429_v43  ;;  %v4453_v50 = vmul.f32 0.60653067, %v4429_v43 }
 0x115   :  { %v4456_v30 = vadd.f32 %v507_v22, %v4333_v55  ;;  %v657_v33 = vrot.slane %v4445_v51, 1  ;;  %v4477_v58 = vadd.f32 %v505_v36, %v4336_v59 }
 0x116   :  { %v4460_v34 = vadd.f32 %v7717_v4, %v699_v39  ;;  %v7715_v8 = vrot.slane %v4453_v50, 1 }
 0x117   :  { %v4469_v47 = vmul.f32 0.13533528, %v4456_v30  ;;  %v702_v55 = vadd.f32 %v657_v33, %v4442_v49  ;;  %v4474_v22 = vmul.f32 0.60653067, %v4456_v30  ;;  %v4500_v3 = vmul.f32 0.13533528, %v4477_v58 }
 0x118   :  { %7891 = vst [vmem:[#allocation9_spill] sm:$0xff] %v4460_v34  ;;  %v513_v60 = vpop.permute.xlu1 %512  ;;  %v509_v1 = vpop.permute.xlu0 %508  ;;  %v658_v62 = vsel %vm7813_vm1, %v7715_v8, %v657_v33  ;;  %v7909_v34 = vrot.slane %v4381_v15, 4 }
 0x119   :  { %v4484_v44 = vadd.f32 %v513_v60, %v4339_v61  ;;  %v4487_v54 = vadd.f32 %v509_v1, %v4342_v63  ;;  %v4491_v39 = vadd.f32 %v7714_v52, %v702_v55  ;;  %v4494_v59 = vadd.f32 %v658_v62, %v4450_v48  ;;  %7893 = vst [vmem:[#allocation12_spill] sm:$0xff] %v4500_v3 }
 0x11a   :  { %v7720_v36 = vrot.slane %v4474_v22, 1  ;;  %v4503_v61 = vmul.f32 0.60653067, %v4477_v58  ;;  %v873_v55 = vadd.f32 %v815_v27, %v782_v13  ;;  %v7898_v52 = vrot.slane %v4417_v53, 1 }
 0x11b   :  { %7892 = vst [vmem:[#allocation11_spill] sm:$0xff] %v4491_v39  ;;  %v4507_v1 = vmul.f32 0.13533528, %v4484_v44  ;;  %v4510_v60 = vmul.f32 0.60653067, %v4484_v44  ;;  %v752_v5 = vrot.slane %v4487_v54, 2 }
 0x11c   :  { %v517_v24 = vpop.permute.xlu1 %516  ;;  %v515_v33 = vpop.permute.xlu0 %514  ;;  %v664_v63 = vrot.slane %v4503_v61, 1  ;;  %v4524_v19 = vmul.f32 0.13533528, %v4487_v54  ;;  %v4527_v62 = vmul.f32 0.60653067, %v4487_v54  ;;  %v982_v27 = vadd.f32 %v924_v25, %v873_v55 }
 0x11d   :  { %v4554_v56 = vadd.f32 %v515_v33, %v4348_v2  ;;  %v653_v7 = vsel %vm7813_vm1, %v7899_v37, %v7898_v52  ;;  %v7901_v25 = vrot.slane %v4367_v23, 2  ;;  %v7903_v2 = vrot.slane %v4384_v17, 3 }
 0x11e   :  { %v666_v4 = vsel %vm7813_vm1, %v664_v63, %v7720_v36  ;;  %v667_v8 = vrot.slane %v4527_v62, 1  ;;  %v4551_v63 = vadd.f32 %v517_v24, %v4345_v0  ;;  %v7902_v24 = vrot.slane %v4417_v53, 3 }
 0x11f   :  { %v4548_v38 = vadd.f32 %v666_v4, %v4500_v3  ;;  %v7900_v4 = vrot.slane %v4398_v6, 2  ;;  %v4575_v46 = vsel %vm4543_vm8, %v982_v27, 0.0  ;;  %v4589_v52 = vmul.f32 0.13533528, %v4554_v56 }
 0x120   :  { %v311_v54 = vpop.permute.xlu1 %310  ;;  %v287_v18 = vpop.permute.xlu0 %286  ;;  %v708_v36 = vadd.f32 %v667_v8, %v4524_v19  ;;  %v817_v33 = vsel %vm812_vm2, %v7903_v2, %v7902_v24  ;;  %7904 = vst [vmem:[#allocation15_spill] sm:$0xff] %v4575_v46  ;;  %v4578_v37 = vmul.f32 0.13533528, %v4551_v63  ;;  %v4581_v6 = vmul.f32 0.60653067, %v4551_v63  ;;  %1071 = vrot.lane.b32.xlu0 %v4575_v46, %s3713_s0 }
 0x121   :  { %v738_v0 = vsel %vm7830_vm0, %v7901_v25, %v7900_v4  ;;  %v4592_v4 = vmul.f32 0.60653067, %v4554_v56  ;;  %v7908_v3 = vrot.slane %v4414_v41, 4  ;;  %v7910_v39 = vrot.slane %v4453_v50, 1 }
 0x122   :  { %7905 = vst [vmem:[#allocation16_spill] sm:$0xff] %v4578_v37  ;;  %7906 = vst [vmem:[#allocation17_spill] sm:$0xff] %v4581_v6  ;;  %v4583_v23 = vadd.f32 %v752_v5, %v708_v36  ;;  %v672_v27 = vrot.slane %v4581_v6, 1  ;;  %v698_v36 = vadd.f32 %v653_v7, %v4381_v15  ;;  %v4609_v7 = vadd.f32 %v311_v54, %v4352_v16 }
 0x123   :  { %v670_v17 = vrot.slane %v4592_v4, 1  ;;  %v926_v53 = vsel %vm921_vm3, %v7909_v34, %v7908_v3  ;;  %v7912_v15 = vrot.slane %v4429_v43, 2  ;;  %v7913_v3 = vrot.slane %v4395_v40, 2 }
 0x124   :  { %7907 = vst [vmem:[#allocation18_spill] sm:$0xff] %v4583_v23  ;;  %v375_v2 = vpop.permute.xlu1 %374  ;;  %v367_v55 = vpop.permute.xlu0 %366  ;;  %v711_v25 = vadd.f32 %v672_v27, %v4578_v37  ;;  %v783_v6 = vadd.f32 %v738_v0, %v698_v36  ;;  %v7911_v23 = vrot.slane %v4404_v29, 1  ;;  %v7914_v24 = vrot.slane %v4453_v50, 3 }
 0x125   :  { %v673_v46 = vsel %vm7813_vm1, %v670_v17, %v672_v27  ;;  %v741_v34 = vsel %vm7830_vm0, %v7913_v3, %v7912_v15  ;;  %v7915_v0 = vrot.slane %v4404_v29, 3  ;;  %v4631_v36 = vadd.f32 %v287_v18, %v4356_v9 }
 0x126   :  { %v656_v41 = vsel %vm7813_vm1, %v7911_v23, %v7910_v39  ;;  %v4628_v54 = vadd.f32 %v673_v46, %v4589_v52  ;;  %v874_v27 = vadd.f32 %v817_v33, %v783_v6  ;;  %v7916_v40 = vrot.slane %v4551_v63, 2 }
 0x127   :  { %v822_v16 = vsel %vm812_vm2, %v7915_v0, %v7914_v24  ;;  %v700_v39 = vadd.f32 %v656_v41, %v4401_v28  ;;  %v7919_v46 = vrot.slane %v4450_v48, 4  ;;  %v7920_v9 = vrot.slane %v4401_v28, 4 }
 0x128   :  { %v399_v23 = vpop.permute.xlu1 %398  ;;  %v391_v37 = vpop.permute.xlu0 %390  ;;  %v4636_v15 = vadd.f32 %v7916_v40, %v711_v25  ;;  %v4652_v18 = vadd.f32 %v375_v2, %v4359_v10  ;;  %v4655_v33 = vadd.f32 %v367_v55, %v4362_v12  ;;  %v983_v6 = vadd.f32 %v926_v53, %v874_v27 }
 0x129   :  { %v931_v41 = vsel %vm921_vm3, %v7920_v9, %v7919_v46  ;;  %v785_v25 = vadd.f32 %v741_v34, %v700_v39  ;;  %v4658_v24 = vadd.f32 %v399_v23, %v4365_v21  ;;  %v7921_v3 = vrot.slane %v4474_v22, 1 }
 0x12a   :  { %v7922_v28 = vrot.slane %v4456_v30, 2  ;;  %v7923_v10 = vrot.slane %v4527_v62, 3  ;;  %v7924_v12 = vrot.slane %v4474_v22, 3  ;;  %v7925_v55 = vrot.slane %v4524_v19, 4 }
 0x12b   :  { %v668_v0 = vsel %vm7813_vm1, %v7921_v3, %v667_v8  ;;  %v7926_v21 = vrot.slane %v4469_v47, 4  ;;  %v4679_v8 = vsel %vm4642_vm9, %v983_v6, 0.0  ;;  %v876_v34 = vadd.f32 %v822_v16, %v785_v25 }
 0x12c   :  { %v707_v40 = vadd.f32 %v668_v0, %v4469_v47  ;;  %v753_v46 = vsel %vm7830_vm0, %v7922_v28, %v752_v5  ;;  %v838_v53 = vsel %vm812_vm2, %v7924_v12, %v7923_v10  ;;  %7927 = vst [vmem:[#allocation19_spill] sm:$0xff] %v4679_v8  ;;  %v499_v27 = vpop.permute.xlu1 %498  ;;  %v497_v39 = vpop.permute.xlu0 %496  ;;  %v7928_v5 = vrot.slane %v4427_v11, 2  ;;  %1073 = vrot.lane.b32.xlu1 %v4679_v8, %s3713_s0 }
 0x12d   :  { %v947_v2 = vsel %vm921_vm3, %v7926_v21, %v7925_v55  ;;  %v7929_v23 = vrot.slane %v4429_v43, 2  ;;  %v7930_v3 = vrot.slane %v4445_v51, 3  ;;  %v7931_v0 = vrot.slane %v4453_v50, 3 }
 0x12e   :  { %v4694_v6 = vadd.f32 %v499_v27, %v4373_v45  ;;  %v4697_v16 = vadd.f32 %v497_v39, %v4376_v14  ;;  %v792_v11 = vadd.f32 %v753_v46, %v707_v40  ;;  %v985_v25 = vadd.f32 %v931_v41, %v876_v34 }
 0x12f   :  { %v743_v9 = vsel %vm7830_vm0, %v7929_v23, %v7928_v5  ;;  %v824_v28 = vsel %vm812_vm2, %v7931_v0, %v7930_v3  ;;  %v7932_v10 = vrot.slane %v4442_v49, 4  ;;  %v7933_v12 = vrot.slane %v4450_v48, 4 }
 0x130   :  { %v786_v43 = vadd.f32 %v743_v9, %v4494_v59  ;;  %v7934_v55 = vrot.slane %v4510_v60, 1  ;;  %v7935_v45 = vrot.slane %v4554_v56, 2  ;;  %v7936_v14 = vrot.slane %v4484_v44, 2 }
 0x131   :  { %v4705_v50 = vsel %vm921_vm3, %v7933_v12, %v7932_v10  ;;  %v4718_v59 = vadd.f32 %v391_v37, %v4370_v31  ;;  %v4721_v41 = vmul.f32 0.13533528, %v4694_v6  ;;  %v4724_v48 = vmul.f32 0.60653067, %v4694_v6  ;;  %v521_v31 = vpop.permute.xlu1 %520  ;;  %v501_v37 = vpop.permute.xlu0 %500 }
 0x132   :  { %v671_v21 = vsel %vm7813_vm1, %v7934_v55, %v670_v17  ;;  %v4715_v40 = vsel %vm7830_vm0, %v7936_v14, %v7935_v45  ;;  %v4729_v17 = vsel %vm4543_vm8, %v985_v25, 0.0  ;;  %v4732_v44 = vmul.f32 0.13533528, %v4697_v16 }
 0x133   :  { %7937 = vst [vmem:[#allocation20_spill] sm:$0xff] %v4729_v17  ;;  %v4735_v34 = vmul.f32 0.60653067, %v4697_v16  ;;  %v883_v27 = vadd.f32 %v838_v53, %v792_v11  ;;  %1077 = vrot.lane.b32.xlu1 %v4729_v17, %s3713_s0  ;;  %v7735_v39 = vrot.slane %v4724_v48, 1  ;;  %v4743_v9 = vadd.f32 %v521_v31, %v4378_v32  ;;  %v8024_v13 = vld [vmem:[#allocation19_spill] sm:$0xff] }
 0x134   :  { %7938 = vst [vmem:[#allocation21_spill] sm:$0xff] %v4732_v44  ;;  %v4749_v53 = vadd.f32 %v501_v37, %v4387_v42  ;;  %v877_v25 = vadd.f32 %v824_v28, %v786_v43 }
 0x135   :  { %7939 = vst [vmem:[#allocation22_spill] sm:$0xff] %v4735_v34  ;;  %v659_v0 = vrot.slane %v4735_v34, 1  ;;  %v4753_v10 = vmul.f32 0.13533528, %v4743_v9  ;;  %v4756_v12 = vmul.f32 0.60653067, %v4743_v9  ;;  %v992_v55 = vadd.f32 %v947_v2, %v883_v27  ;;  %v525_v31 = vpop.permute.xlu1 %524  ;;  %v523_v37 = vpop.permute.xlu0 %522 }
 0x136   :  { %v4763_v14 = vmul.f32 0.13533528, %v4749_v53  ;;  %v4766_v42 = vmul.f32 0.60653067, %v4749_v53  ;;  %v7743_v27 = vrot.slane %v4749_v53, 2  ;;  %v4778_v3 = vadd.f32 %v525_v31, %v4389_v20 }
 0x137   :  { %v661_v32 = vsel %vm7813_vm1, %v659_v0, %v7735_v39  ;;  %v709_v2 = vadd.f32 %v671_v21, %v4507_v1 }
 0x138   :  { %v4769_v11 = vadd.f32 %v661_v32, %v4732_v44  ;;  %v7736_v23 = vrot.slane %v4766_v42, 1  ;;  %v4782_v32 = vadd.f32 %v523_v37, %v4391_v26  ;;  %v4790_v46 = vmul.f32 0.13533528, %v4778_v3 }
 0x139   :  { %v4793_v20 = vmul.f32 0.60653067, %v4778_v3  ;;  %v407_v31 = vpop.permute.xlu1 %406  ;;  %v383_v5 = vpop.permute.xlu0 %382  ;;  %v4797_v26 = vsel %vm4642_vm9, %v992_v55, 0.0 }
 0x13a   :  { %7940 = vst [vmem:[#allocation23_spill] sm:$0xff] %v4769_v11  ;;  %v705_v0 = vadd.f32 %v7736_v23, %v4763_v14  ;;  %v4801_v43 = vmul.f32 0.13533528, %v4782_v32  ;;  %v4804_v21 = vmul.f32 0.60653067, %v4782_v32  ;;  %v455_v55 = vadd.f32 %v407_v31, %v4609_v7 }
 0x13b   :  { %v677_v39 = vrot.slane %v4793_v20, 1  ;;  %v7942_v23 = vrot.slane %v4592_v4, 3  ;;  %v7943_v7 = vrot.slane %v4510_v60, 3  ;;  %v1153_v29 = vmul.f32 2.0, %v4797_v26 }
 0x13c   :  { %v4809_v45 = vadd.f32 %v7743_v27, %v705_v0  ;;  %v7744_v17 = vrot.slane %v4804_v21, 1  ;;  %v986_v0 = vadd.f32 %v4705_v50, %v877_v25  ;;  %v794_v27 = vadd.f32 %v4715_v40, %v709_v2 }
 0x13d   :  { %v714_v37 = vadd.f32 %v677_v39, %v4790_v46  ;;  %v495_v34 = vpop.permute.xlu1 %494  ;;  %v487_v11 = vpop.permute.xlu0 %486  ;;  %v843_v31 = vsel %vm812_vm2, %v7943_v7, %v7942_v23  ;;  %v7945_v50 = vrot.slane %v4507_v1, 4  ;;  %v7946_v25 = vrot.slane %v4778_v3, 2 }
 0x13e   :  { %7941 = vst [vmem:[#allocation24_spill] sm:$0xff] %v4809_v45  ;;  %v678_v28 = vsel %vm7813_vm1, %v7744_v17, %v677_v39  ;;  %v559_v44 = vadd.f32 %v495_v34, %v4652_v18  ;;  %v555_v8 = vadd.f32 %v487_v11, %v4655_v33  ;;  %v7944_v45 = vrot.slane %v4589_v52, 4 }
 0x13f   :  { %v4838_v2 = vadd.f32 %v7946_v25, %v714_v37  ;;  %v4841_v60 = vadd.f32 %v678_v28, %v4801_v43  ;;  %v443_v23 = vadd.f32 %v383_v5, %v4631_v36  ;;  %v885_v39 = vadd.f32 %v843_v31, %v794_v27 }
 0x140   :  { %v952_v40 = vsel %vm921_vm3, %v7945_v50, %v7944_v45  ;;  %v801_v7 = vmul.f32 0.60653067, %v559_v44  ;;  %v892_v18 = vmul.f32 0.13533528, %v559_v44  ;;  %v800_v34 = vmul.f32 0.60653067, %v555_v8 }
 0x141   :  { %v7947_v33 = vrot.slane %v4456_v30, 2  ;;  %v7948_v11 = vrot.slane %v4477_v58, 2  ;;  %v891_v45 = vmul.f32 0.13533528, %v555_v8  ;;  %v519_v50 = vpop.permute.xlu1 %518  ;;  %v511_v17 = vpop.permute.xlu0 %510  ;;  %v994_v37 = vadd.f32 %v952_v40, %v885_v39 }
 0x142   :  { %v7949_v28 = vrot.slane %v4474_v22, 3  ;;  %v7950_v36 = vrot.slane %v4503_v61, 3  ;;  %v825_v44 = vrot.slane %v801_v7, 3  ;;  %v934_v27 = vrot.slane %v892_v18, 4 }
 0x143   :  { %v751_v1 = vsel %vm7830_vm0, %v7948_v11, %v7947_v33  ;;  %v818_v31 = vrot.slane %v800_v34, 3  ;;  %v571_v30 = vadd.f32 %v519_v50, %v4658_v24  ;;  %v927_v58 = vrot.slane %v891_v45, 4  ;;  %v7955_v11 = vld [vmem:[#allocation11_spill] sm:$0xff]  ;;  %v7956_v45 = vld [vmem:[#allocation10_spill] sm:$0xff] }
 0x144   :  { %v791_v25 = vadd.f32 %v751_v1, %v4548_v38  ;;  %v836_v5 = vsel %vm812_vm2, %v7950_v36, %v7949_v28  ;;  %v567_v33 = vadd.f32 %v511_v17, %v4718_v59  ;;  %v4867_v22 = vsel %vm4642_vm9, %v986_v0, 0.0 }
 0x145   :  { %v804_v8 = vmul.f32 0.60653067, %v571_v30  ;;  %v895_v40 = vmul.f32 0.13533528, %v571_v30  ;;  %v7953_v24 = vrot.slane %v4445_v51, 3  ;;  %v7954_v59 = vrot.slane %v4442_v49, 4  ;;  %v527_v18 = vpop.permute.xlu1 %526  ;;  %v503_v34 = vpop.permute.xlu0 %502 }
 0x146   :  { %v882_v61 = vadd.f32 %v836_v5, %v791_v25  ;;  %v803_v35 = vmul.f32 0.60653067, %v567_v33  ;;  %v894_v7 = vmul.f32 0.13533528, %v567_v33  ;;  %v7957_v0 = vrot.slane %v7956_v45, 3  ;;  %v7960_v30 = vld [vmem:[#allocation9_spill] sm:$0xff] }
 0x147   :  { %v826_v39 = vsel %vm812_vm2, %v7953_v24, %v825_v44  ;;  %v935_v17 = vsel %vm921_vm3, %v7954_v59, %v934_v27  ;;  %v846_v25 = vrot.slane %v804_v8, 3  ;;  %v955_v28 = vrot.slane %v895_v40, 4  ;;  %v7961_v8 = vld [vmem:[#allocation8_spill] sm:$0xff]  ;;  %v8027_v49 = vld [vmem:[#allocation15_spill] sm:$0xff] }
 0x148   :  { %v878_v1 = vadd.f32 %v826_v39, %v7955_v11  ;;  %v819_v50 = vsel %vm812_vm2, %v7957_v0, %v818_v31  ;;  %v575_v36 = vadd.f32 %v527_v18, %v455_v55  ;;  %v563_v51 = vadd.f32 %v503_v34, %v443_v23 }
 0x149   :  { %v839_v5 = vrot.slane %v803_v35, 3  ;;  %v948_v44 = vrot.slane %v894_v7, 4  ;;  %v875_v33 = vadd.f32 %v819_v50, %v7960_v30  ;;  %v7962_v40 = vrot.slane %v7961_v8, 4  ;;  %v7964_v35 = vld [vmem:[#allocation12_spill] sm:$0xff] }
 0x14a   :  { %v987_v27 = vadd.f32 %v935_v17, %v878_v1  ;;  %v805_v24 = vmul.f32 0.60653067, %v575_v36  ;;  %v896_v39 = vmul.f32 0.13533528, %v575_v36  ;;  %v802_v31 = vmul.f32 0.60653067, %v563_v51 }
 0x14b   :  { %v928_v55 = vsel %vm921_vm3, %v7962_v40, %v927_v58  ;;  %v893_v23 = vmul.f32 0.13533528, %v563_v51  ;;  %v7963_v59 = vrot.slane %v4469_v47, 4  ;;  %v7965_v7 = vrot.slane %v7964_v35, 4  ;;  %v7967_v47 = vld [vmem:[#allocation17_spill] sm:$0xff]  ;;  %v7969_v36 = vld [vmem:[#allocation16_spill] sm:$0xff] }
 0x14c   :  { %v4893_v57 = vsel %vm4883_vm12, %v987_v27, 0.0  ;;  %v984_v38 = vadd.f32 %v928_v55, %v875_v33  ;;  %v853_v18 = vrot.slane %v805_v24, 3  ;;  %v962_v34 = vrot.slane %v896_v39, 4 }
 0x14d   :  { %v945_v17 = vsel %vm921_vm3, %v7965_v7, %v7963_v59  ;;  %1081 = vrot.lane.b32.xlu1 %v4893_v57, %s3713_s0  ;;  %v4904_v58 = vsel %vm4543_vm8, %v994_v37, 0.0  ;;  %v832_v1 = vrot.slane %v802_v31, 3  ;;  %v7968_v0 = vrot.slane %v7967_v47, 3  ;;  %v7973_v31 = vld [vmem:[#allocation18_spill] sm:$0xff] }
 0x14e   :  { %7966 = vst [vmem:[#allocation25_spill] sm:$0xff] %v4904_v58  ;;  %v991_v11 = vadd.f32 %v945_v17, %v882_v61  ;;  %v4908_v45 = vsel %vm4883_vm12, %v984_v38, 0.0  ;;  %v7970_v51 = vrot.slane %v7969_v36, 4  ;;  %v7971_v30 = vrot.slane %v4793_v20, 3 }
 0x14f   :  { %v847_v50 = vsel %vm812_vm2, %v7968_v0, %v846_v25  ;;  %v941_v37 = vrot.slane %v893_v23, 4  ;;  %1075 = vrot.lane.b32.xlu0 %v4908_v45, %s3713_s0  ;;  %v7972_v24 = vrot.slane %v4527_v62, 3  ;;  %v7974_v8 = vrot.slane %v4524_v19, 4 }
 0x150   :  { %v956_v27 = vsel %vm921_vm3, %v7970_v51, %v955_v28  ;;  %v854_v33 = vsel %vm812_vm2, %v7971_v30, %v853_v18  ;;  %v887_v61 = vadd.f32 %v847_v50, %v4636_v15  ;;  %v7975_v40 = vrot.slane %v4766_v42, 1 }
 0x151   :  { %v840_v39 = vsel %vm812_vm2, %v7972_v24, %v839_v5  ;;  %v949_v28 = vsel %vm921_vm3, %v7974_v8, %v948_v44  ;;  %v7976_v55 = vrot.slane %v4724_v48, 1  ;;  %v7977_v38 = vrot.slane %v4749_v53, 2  ;;  %1091 = vrot.lane.b32.xlu1 %v4797_v26, %s3713_s0 }
 0x152   :  { %v884_v25 = vadd.f32 %v840_v39, %v7973_v31  ;;  %v7978_v15 = vrot.slane %v4694_v6, 2  ;;  %v996_v5 = vadd.f32 %v956_v27, %v887_v61  ;;  %v7979_v44 = vrot.slane %v4766_v42, 3 }
 0x153   :  { %v663_v23 = vsel %vm7813_vm1, %v7976_v55, %v7975_v40  ;;  %v7980_v59 = vrot.slane %v4724_v48, 3  ;;  %v7981_v7 = vrot.slane %v4763_v14, 4  ;;  %v7982_v53 = vrot.slane %v4721_v41, 4  ;;  %1079 = vrot.lane.b32.xlu0 %v4867_v22, %s3713_s0 }
 0x154   :  { %v748_v62 = vsel %vm7830_vm0, %v7978_v15, %v7977_v38  ;;  %v704_v19 = vadd.f32 %v663_v23, %v4721_v41  ;;  %v993_v18 = vadd.f32 %v949_v28, %v884_v25  ;;  %v7983_v0 = vrot.slane %v4551_v63, 2 }
 0x155   :  { %v831_v35 = vsel %vm812_vm2, %v7980_v59, %v7979_v44  ;;  %v940_v17 = vsel %vm921_vm3, %v7982_v53, %v7981_v7  ;;  %v7984_v50 = vrot.slane %v4554_v56, 2  ;;  %v7985_v27 = vrot.slane %v7967_v47, 3  ;;  %1095 = vrot.lane.b32.xlu1 %v4904_v58, %s3713_s0  ;;  %v8000_v7 = vld [vmem:[#allocation23_spill] sm:$0xff] }
 0x156   :  { %v7986_v30 = vrot.slane %v4592_v4, 3  ;;  %v7987_v24 = vrot.slane %v7969_v36, 4  ;;  %v7988_v39 = vrot.slane %v4589_v52, 4  ;;  %v4971_v56 = vsel %vm4543_vm8, %v991_v11, 0.0 }
 0x157   :  { %v758_v51 = vsel %vm7830_vm0, %v7984_v50, %v7983_v0  ;;  %v789_v63 = vadd.f32 %v748_v62, %v704_v19  ;;  %v7989_v4 = vrot.slane %v4804_v21, 1  ;;  %v7990_v25 = vrot.slane %v4756_v12, 1  ;;  %v8002_v50 = vld [vmem:[#allocation22_spill] sm:$0xff]  ;;  %1089 = vrot.lane.b32.xlu0 %v4971_v56, %s3713_s0 }
 0x158   :  { %v845_v61 = vsel %vm812_vm2, %v7986_v30, %v7985_v27  ;;  %v954_v31 = vsel %vm921_vm3, %v7988_v39, %v7987_v24  ;;  %v795_v47 = vadd.f32 %v758_v51, %v4628_v54  ;;  %v4981_v52 = vsel %vm4883_vm12, %v996_v5, 0.0 }
 0x159   :  { %v676_v36 = vsel %vm7813_vm1, %v7990_v25, %v7989_v4  ;;  %7991 = vst [vmem:[#allocation26_spill] sm:$0xff] %v4981_v52  ;;  %v7992_v28 = vrot.slane %v4782_v32, 2  ;;  %v7993_v11 = vrot.slane %v4743_v9, 2  ;;  %v7994_v54 = vrot.slane %v4804_v21, 3  ;;  %1099 = vrot.lane.b32.xlu1 %v4981_v52, %s3713_s0 }
 0x15a   :  { %v712_v8 = vadd.f32 %v676_v36, %v4753_v10  ;;  %v7995_v55 = vrot.slane %v4756_v12, 3  ;;  %v880_v38 = vadd.f32 %v831_v35, %v789_v63  ;;  %v886_v15 = vadd.f32 %v845_v61, %v795_v47 }
 0x15b   :  { %v761_v40 = vsel %vm7830_vm0, %v7993_v11, %v7992_v28  ;;  %v7996_v62 = vrot.slane %v4801_v43, 4  ;;  %v7997_v5 = vrot.slane %v4753_v10, 4  ;;  %v7998_v9 = vrot.slane %v4694_v6, 2  ;;  %v8005_v10 = vld [vmem:[#allocation21_spill] sm:$0xff] }
 0x15c   :  { %v850_v23 = vsel %vm812_vm2, %v7995_v55, %v7994_v54  ;;  %v7999_v44 = vrot.slane %v4697_v16, 2  ;;  %v797_v12 = vadd.f32 %v761_v40, %v712_v8  ;;  %v8001_v0 = vrot.slane %v4724_v48, 3 }
 0x15d   :  { %v959_v19 = vsel %vm921_vm3, %v7997_v5, %v7996_v62  ;;  %v8003_v35 = vrot.slane %v8002_v50, 3  ;;  %v8004_v27 = vrot.slane %v4721_v41, 4  ;;  %v8006_v30 = vrot.slane %v8005_v10, 4  ;;  %v8026_v5 = vld [vmem:[#allocation20_spill] sm:$0xff] }
 0x15e   :  { %v746_v59 = vsel %vm7830_vm0, %v7999_v44, %v7998_v9  ;;  %v989_v6 = vadd.f32 %v940_v17, %v880_v38  ;;  %v995_v16 = vadd.f32 %v954_v31, %v886_v15  ;;  %v890_v24 = vadd.f32 %v854_v33, %v4838_v2  ;;  %v8010_v31 = vld [vmem:[#allocation24_spill] sm:$0xff] }
 0x15f   :  { %v788_v53 = vadd.f32 %v746_v59, %v8000_v7  ;;  %v829_v51 = vsel %vm812_vm2, %v8003_v35, %v8001_v0  ;;  %v938_v61 = vsel %vm921_vm3, %v8006_v30, %v8004_v27  ;;  %v8007_v39 = vrot.slane %v4790_v46, 4 }
 0x160   :  { %v888_v63 = vadd.f32 %v850_v23, %v797_v12  ;;  %v8008_v4 = vrot.slane %v4766_v42, 3  ;;  %v8009_v25 = vrot.slane %v4763_v14, 4  ;;  %v5034_v33 = vsel %vm4883_vm12, %v993_v18, 0.0 }
 0x161   :  { %v963_v48 = vsel %vm921_vm3, %v8007_v39, %v962_v34  ;;  %v879_v47 = vadd.f32 %v829_v51, %v788_v53  ;;  %8011 = vst [vmem:[#allocation27_spill] sm:$0xff] %v5034_v33  ;;  %v8012_v42 = vrot.slane %v4778_v3, 2  ;;  %1093 = vrot.lane.b32.xlu0 %v5034_v33, %s3713_s0  ;;  %v8014_v11 = vrot.slane %v4793_v20, 3 }
 0x162   :  { %v833_v41 = vsel %vm812_vm2, %v8008_v4, %v832_v1  ;;  %v942_v36 = vsel %vm921_vm3, %v8009_v25, %v941_v37  ;;  %v999_v17 = vadd.f32 %v963_v48, %v890_v24  ;;  %v997_v34 = vadd.f32 %v959_v19, %v888_v63 }
 0x163   :  { %v881_v2 = vadd.f32 %v833_v41, %v8010_v31  ;;  %v988_v8 = vadd.f32 %v938_v61, %v879_v47  ;;  %v8013_v1 = vmov %v7992_v28  ;;  %v8015_v40 = vmov %v7994_v54 }
 0x164   :  { %v763_v14 = vsel %vm7830_vm0, %v8013_v1, %v8012_v42  ;;  %v852_v18 = vsel %vm812_vm2, %v8015_v40, %v8014_v11  ;;  %v5051_v54 = vsel %vm4642_vm9, %v989_v6, 0.0  ;;  %v8017_v3 = vmov %v8007_v39 }
 0x165   :  { %v990_v37 = vadd.f32 %v942_v36, %v881_v2  ;;  %v798_v28 = vadd.f32 %v763_v14, %v4841_v60  ;;  %8016 = vst [vmem:[#allocation28_spill] sm:$0xff] %v5051_v54  ;;  %v8018_v32 = vmov %v7996_v62  ;;  %1085 = vrot.lane.b32.xlu1 %v5051_v54, %s3713_s0  ;;  %v5062_v20 = vsel %vm4642_vm9, %v995_v16, 0.0 }
 0x166   :  { %v961_v55 = vsel %vm921_vm3, %v8018_v32, %v8017_v3  ;;  %8019 = vst [vmem:[#allocation29_spill] sm:$0xff] %v5062_v20  ;;  %1097 = vrot.lane.b32.xlu0 %v5062_v20, %s3713_s0  ;;  %v5068_v23 = vsel %vm4543_vm8, %v997_v34, 0.0  ;;  %v5074_v46 = vsel %vm4543_vm8, %v988_v8, 0.0  ;;  %v5080_v43 = vsel %vm4883_vm12, %v999_v17, 0.0 }
 0x167   :  { %v889_v60 = vadd.f32 %v852_v18, %v798_v28  ;;  %8020 = vst [vmem:[#allocation13_spill] sm:$0xff] %v5068_v23  ;;  %8021 = vst [vmem:[#allocation30_spill] sm:$0xff] %v5074_v46  ;;  %v5086_v38 = vsel %vm4883_vm12, %v990_v37, 0.0  ;;  %v1144_v15 = vmul.f32 2.0, %v8024_v13  ;;  %v1146_v19 = vmul.f32 2.0, %v8026_v5 }
 0x168   :  { %8022 = vst [vmem:[#allocation14_spill] sm:$0xff] %v5080_v43  ;;  %8023 = vst [vmem:[#allocation31_spill] sm:$0xff] %v5086_v38  ;;  %v1143_v9 = vmul.f32 2.0, %v8027_v49  ;;  %v1148_v44 = vmul.f32 2.0, %v4893_v57  ;;  %v1145_v59 = vmul.f32 2.0, %v4908_v45  ;;  %v1147_v12 = vmul.f32 2.0, %v4867_v22 }
 0x169   :  { %v998_v21 = vadd.f32 %v961_v55, %v889_v60  ;;  %1101 = vrot.lane.b32.xlu1 %v5068_v23, %s3713_s0  ;;  %v1155_v7 = vmul.f32 2.0, %v4904_v58  ;;  %v1152_v53 = vmul.f32 2.0, %v4971_v56  ;;  %v1157_v0 = vmul.f32 2.0, %v4981_v52 }
 0x16a   :  { %1083 = vrot.lane.b32.xlu0 %v5074_v46, %s3713_s0  ;;  %v1154_v50 = vmul.f32 2.0, %v5034_v33  ;;  %v1150_v35 = vmul.f32 2.0, %v5051_v54  ;;  %v1156_v51 = vmul.f32 2.0, %v5062_v20  ;;  %v1158_v27 = vmul.f32 2.0, %v5068_v23 }
 0x16b   :  { %v5094_v62 = vsel %vm4642_vm9, %v998_v21, 0.0  ;;  %v1149_v10 = vmul.f32 2.0, %v5074_v46  ;;  %v1160_v30 = vmul.f32 2.0, %v5080_v43  ;;  %v1151_v61 = vmul.f32 2.0, %v5086_v38 }
 0x16c   :  { %8025 = vst [vmem:[#allocation32_spill] sm:$0xff] %v5094_v62  ;;  %v1159_v6 = vmul.f32 2.0, %v5094_v62 }
 0x16d   :  { %1105 = vrot.lane.b32.xlu1 %v5080_v43, %s3713_s0 }
 0x16e   :  { %1087 = vrot.lane.b32.xlu0 %v5086_v38, %s3713_s0 }
 0x171   :  { %1181 = vrot.lane.b32.xlu1 %v1144_v15, %s3712_s20 }
 0x172   :  { %1103 = vrot.lane.b32.xlu0 %v5094_v62, %s3713_s0 }
 0x175   :  { %1185 = vrot.lane.b32.xlu1 %v1146_v19, %s3712_s20 }
 0x176   :  { %1179 = vrot.lane.b32.xlu0 %v1143_v9, %s3712_s20 }
 0x179   :  { %1189 = vrot.lane.b32.xlu1 %v1148_v44, %s3712_s20 }
 0x17a   :  { %1183 = vrot.lane.b32.xlu0 %v1145_v59, %s3712_s20 }
 0x17d   :  { %1199 = vrot.lane.b32.xlu1 %v1153_v29, %s3712_s20 }
 0x17e   :  { %1187 = vrot.lane.b32.xlu0 %v1147_v12, %s3712_s20 }
 0x181   :  { %1203 = vrot.lane.b32.xlu1 %v1155_v7, %s3712_s20 }
 0x182   :  { %1197 = vrot.lane.b32.xlu0 %v1152_v53, %s3712_s20 }
 0x185   :  { %1207 = vrot.lane.b32.xlu1 %v1157_v0, %s3712_s20 }
 0x186   :  { %1201 = vrot.lane.b32.xlu0 %v1154_v50, %s3712_s20 }
 0x189   :  { %1193 = vrot.lane.b32.xlu1 %v1150_v35, %s3712_s20 }
 0x18a   :  { %1205 = vrot.lane.b32.xlu0 %v1156_v51, %s3712_s20 }
 0x18d   :  { %1209 = vrot.lane.b32.xlu1 %v1158_v27, %s3712_s20 }
 0x18e   :  { %1191 = vrot.lane.b32.xlu0 %v1149_v10, %s3712_s20 }
 0x191   :  { %1213 = vrot.lane.b32.xlu1 %v1160_v30, %s3712_s20  ;;  %v8037_v30 = vld [vmem:[#allocation35_spill] sm:$0xff] }
 0x192   :  { %1195 = vrot.lane.b32.xlu0 %v1151_v61, %s3712_s20  ;;  %v5136_v39 = vpop.permute.xlu0 %1071  ;;  %v5199_v61 = vadd.s32 4294967294, %v8037_v30 }
 0x193   :  { %v1125_v25 = vsub.f32 %v8027_v49, %v5136_v39 }
 0x194   :  { %8038 = vst [vmem:[#allocation18_spill] sm:$0xff] %v5199_v61 }
 0x195   :  { %v1269_v2 = vmul.f32 2.0, %v1125_v25  ;;  %v1389_v19 = vrot.slane %v1125_v25, 2 }
 0x196   :  { %1211 = vrot.lane.b32.xlu0 %v1159_v6, %s3712_s20  ;;  %v8039_v6 = vld [vmem:[#allocation37_spill] sm:$0xff] }
 0x197   :  { %v1305_v37 = vrot.slane %v1269_v2, 1 }
 0x19e   :  { %v5132_v16 = vpop.permute.xlu1 %1073 }
 0x19f   :  { %v1126_v4 = vsub.f32 %v8024_v13, %v5132_v16 }
 0x1a1   :  { %v1270_v17 = vmul.f32 2.0, %v1126_v4  ;;  %v1390_v55 = vrot.slane %v1126_v4, 2 }
 0x1a3   :  { %v1306_v8 = vrot.slane %v1270_v17, 1  ;;  %v1391_v7 = vsel %vm7830_vm0, %v1389_v19, %v1390_v55  ;;  %v8041_v17 = vld [vmem:[#allocation36_spill] sm:$0xff] }
 0x1a4   :  { %v5205_v2 = vadd.s32 4294967294, %v8041_v17 }
 0x1a5   :  { %v5134_v24 = vpop.permute.xlu1 %1077  ;;  %v1307_v11 = vsel %vm7813_vm1, %v1305_v37, %v1306_v8 }
 0x1a6   :  { %v1128_v60 = vsub.f32 %v8026_v5, %v5134_v24  ;;  %v1353_v21 = vadd.f32 %v1307_v11, %v1125_v25  ;;  %v5202_v25 = vadd.s32 4294967294, %v8039_v6  ;;  %8042 = vst [vmem:[#allocation22_spill] sm:$0xff] %v5205_v2 }
 0x1a8   :  { %v1272_v53 = vmul.f32 2.0, %v1128_v60  ;;  %v5190_v50 = vadd.f32 %v1391_v7, %v1353_v21  ;;  %8040 = vst [vmem:[#allocation23_spill] sm:$0xff] %v5202_v25 }
 0x1aa   :  { %8036 = vst [vmem:[#allocation16_spill] sm:$0xff] %v5190_v50  ;;  %v5219_v30 = vand.u32 2147483647, %v5190_v50 }
 0x1bf   :  { %v5138_v48 = vpop.permute.xlu1 %1081 }
 0x1c0   :  { %v5162_v14 = vsub.f32 %v4893_v57, %v5138_v48 }
 0x1c1   :  { %v5140_v63 = vpop.permute.xlu0 %1075 }
 0x1c2   :  { %v1127_v42 = vsub.f32 %v4908_v45, %v5140_v63  ;;  %v1274_v32 = vmul.f32 2.0, %v5162_v14  ;;  %v1397_v7 = vrot.slane %v5162_v14, 2 }
 0x1c3   :  { %v5142_v47 = vpop.permute.xlu1 %1091 }
 0x1c4   :  { %8028 = vst [vmem:[#allocation33_spill] sm:$0xff] %v5142_v47  ;;  %v1271_v40 = vmul.f32 2.0, %v1127_v42  ;;  %v1313_v12 = vrot.slane %v1274_v32, 1  ;;  %v5188_v0 = vsub.f32 %v4797_v26, %v5142_v47  ;;  %v1392_v32 = vrot.slane %v1127_v42, 2 }
 0x1c5   :  { %v5146_v41 = vpop.permute.xlu0 %1079 }
 0x1c6   :  { %v5169_v18 = vsub.f32 %v4867_v22, %v5146_v41  ;;  %v1308_v9 = vrot.slane %v1271_v40, 1  ;;  %v1358_v37 = vadd.f32 %v1313_v12, %v5162_v14  ;;  %v1310_v40 = vrot.slane %v1272_v53, 1 }
 0x1c7   :  { %v5150_v36 = vpop.permute.xlu1 %1095  ;;  %v1279_v21 = vmul.f32 2.0, %v5188_v0 }
 0x1c8   :  { %8029 = vst [vmem:[#allocation34_spill] sm:$0xff] %v5150_v36  ;;  %v1273_v44 = vmul.f32 2.0, %v5169_v18  ;;  %v1309_v35 = vsel %vm7813_vm1, %v1306_v8, %v1308_v9  ;;  %v1355_v17 = vadd.f32 %v1308_v9, %v1127_v42  ;;  %v5225_v25 = vadd.f32 %v1397_v7, %v1358_v37 }
 0x1c9   :  { %v5152_v31 = vpop.permute.xlu0 %1089  ;;  %v1354_v6 = vadd.f32 %v1309_v35, %v1126_v4  ;;  %v5231_v14 = vsub.f32 %v4904_v58, %v5150_v36  ;;  %v1393_v4 = vsel %vm7830_vm0, %v1390_v55, %v1392_v32  ;;  %v1321_v42 = vrot.slane %v1279_v21, 1 }
 0x1ca   :  { %v5181_v59 = vsub.f32 %v4971_v56, %v5152_v31  ;;  %v1311_v51 = vrot.slane %v1273_v44, 1  ;;  %v1394_v44 = vrot.slane %v1128_v60, 2  ;;  %8045 = vst [vmem:[#allocation19_spill] sm:$0xff] %v5225_v25  ;;  %v5237_v35 = vmul.f32 %v5190_v50, %v5190_v50 }
 0x1cb   :  { %v5154_v34 = vpop.permute.xlu1 %1099  ;;  %v5241_v37 = vadd.f32 %v1392_v32, %v1355_v17  ;;  %v5255_v17 = vmul.f32 %v5225_v25, %v5225_v25  ;;  %v5258_v32 = vand.u32 2147483647, %v5225_v25 }
 0x1cc   :  { %8030 = vst [vmem:[#allocation11_spill] sm:$0xff] %v5154_v34  ;;  %v1278_v27 = vmul.f32 2.0, %v5181_v59  ;;  %v5196_v10 = vsub.f32 %v4981_v52, %v5154_v34  ;;  %v1312_v2 = vsel %vm7813_vm1, %v1310_v40, %v1311_v51  ;;  %v1314_v34 = vsel %vm7813_vm1, %v1311_v51, %v1313_v12 }
 0x1cd   :  { %8047 = vst [vmem:[#allocation15_spill] sm:$0xff] %v5241_v37  ;;  %v1405_v12 = vrot.slane %v5188_v0, 2  ;;  %v1356_v51 = vadd.f32 %v1312_v2, %v1128_v60  ;;  %v1357_v36 = vadd.f32 %v1314_v34, %v5169_v18  ;;  %v1281_v2 = vmul.f32 2.0, %v5231_v14 }
 0x1ce   :  { %v1320_v61 = vrot.slane %v1278_v27, 1  ;;  %v5223_v53 = vmul.f32 2.0, %v5196_v10  ;;  %v5239_v27 = vadd.f32 %v1393_v4, %v1354_v6  ;;  %v5273_v4 = vand.u32 2147483647, %v5241_v37 }
 0x1d0   :  { %8046 = vst [vmem:[#allocation20_spill] sm:$0xff] %v5239_v27  ;;  %v1322_v55 = vsel %vm7813_vm1, %v1320_v61, %v1321_v42  ;;  %v1328_v21 = vrot.slane %v5223_v53, 1  ;;  %v5270_v53 = vmul.f32 %v5241_v37, %v5241_v37  ;;  %v1409_v37 = vrot.slane %v5231_v14, 2 }
 0x1d2   :  { %8049 = vst [vmem:[#allocation38_spill] sm:$0xff] %v5270_v53 }
 0x1d3   :  { %v5158_v1 = vpop.permute.xlu0 %1093 }
 0x1d4   :  { %8031 = vst [vmem:[#allocation10_spill] sm:$0xff] %v5158_v1  ;;  %v5215_v19 = vsub.f32 %v5034_v33, %v5158_v1  ;;  %v1395_v1 = vrot.slane %v5169_v18, 2  ;;  %v1404_v18 = vrot.slane %v5181_v59, 2 }
 0x1d6   :  { %v1280_v9 = vmul.f32 2.0, %v5215_v19  ;;  %v1396_v60 = vsel %vm7830_vm0, %v1394_v44, %v1395_v1  ;;  %v1398_v34 = vsel %vm7830_vm0, %v1395_v1, %v1397_v7  ;;  %v1362_v44 = vadd.f32 %v1322_v55, %v5181_v59 }
 0x1d7   :  { %v5164_v28 = vpop.permute.xlu1 %1085  ;;  %v5280_v1 = vmul.f32 %v5239_v27, %v5239_v27  ;;  %v5282_v7 = vadd.f32 %v1398_v34, %v1357_v36  ;;  %v1406_v55 = vsel %vm7830_vm0, %v1404_v18, %v1405_v12  ;;  %v1412_v36 = vrot.slane %v5196_v10, 2 }
 0x1d8   :  { %8032 = vst [vmem:[#allocation9_spill] sm:$0xff] %v5164_v28  ;;  %v5171_v3 = vpop.permute.xlu0 %1097  ;;  %v1323_v61 = vrot.slane %v1280_v9, 1  ;;  %v5266_v6 = vsub.f32 %v5051_v54, %v5164_v28  ;;  %v1367_v9 = vadd.f32 %v1328_v21, %v5196_v10  ;;  %v5287_v54 = vand.u32 2147483647, %v5239_v27 }
 0x1d9   :  { %8033 = vst [vmem:[#allocation8_spill] sm:$0xff] %v5171_v3  ;;  %v5251_v50 = vsub.f32 %v5062_v20, %v5171_v3  ;;  %v5275_v3 = vadd.f32 %v1396_v60, %v1356_v51  ;;  %8051 = vst [vmem:[#allocation40_spill] sm:$0xff] %v5280_v1  ;;  %v1325_v20 = vrot.slane %v1281_v2, 1  ;;  %v1407_v51 = vrot.slane %v5215_v19, 2 }
 0x1da   :  { %v1324_v34 = vsel %vm7813_vm1, %v1321_v42, %v1323_v61  ;;  %v5297_v25 = vmul.f32 2.0, %v5266_v6  ;;  %v5306_v53 = vadd.f32 %v1406_v55, %v1362_v44  ;;  %v5311_v18 = vmul.f32 %v5282_v7, %v5282_v7 }
 0x1db   :  { %v5176_v15 = vpop.permute.xlu1 %1101  ;;  %8050 = vst [vmem:[#allocation39_spill] sm:$0xff] %v5275_v3  ;;  %v1282_v28 = vmul.f32 2.0, %v5251_v50  ;;  %v5301_v27 = vmul.f32 %v5275_v3, %v5275_v3  ;;  %v5304_v2 = vand.u32 2147483647, %v5275_v3  ;;  %v1410_v1 = vrot.slane %v5251_v50, 2 }
 0x1dc   :  { %8034 = vst [vmem:[#allocation12_spill] sm:$0xff] %v5176_v15  ;;  %v5183_v29 = vpop.permute.xlu0 %1083  ;;  %8054 = vst [vmem:[#allocation43_spill] sm:$0xff] %v5306_v53  ;;  %v5313_v10 = vadd.f32 %v1412_v36, %v1367_v9  ;;  %v5317_v58 = vand.u32 2147483647, %v5282_v7  ;;  %v1408_v3 = vsel %vm7830_vm0, %v1405_v12, %v1407_v51  ;;  %v1364_v55 = vadd.f32 %v1323_v61, %v5215_v19 }
 0x1dd   :  { %8035 = vst [vmem:[#allocation17_spill] sm:$0xff] %v5183_v29  ;;  %8052 = vst [vmem:[#allocation41_spill] sm:$0xff] %v5301_v27  ;;  %v1326_v42 = vrot.slane %v1282_v28, 1  ;;  %v1363_v27 = vadd.f32 %v1324_v34, %v5188_v0  ;;  %v5326_v9 = vsub.f32 %v5068_v23, %v5176_v15  ;;  %v5334_v28 = vmul.f32 %v5306_v53, %v5306_v53 }
 0x1de   :  { %8053 = vst [vmem:[#allocation42_spill] sm:$0xff] %v5304_v2  ;;  %8055 = vst [vmem:[#allocation44_spill] sm:$0xff] %v5313_v10  ;;  %v1411_v0 = vsel %vm7830_vm0, %v1409_v37, %v1410_v1  ;;  %v1413_v12 = vsel %vm7830_vm0, %v1410_v1, %v1412_v36  ;;  %v5340_v34 = vand.u32 2147483647, %v5306_v53  ;;  %v5344_v44 = vmul.f32 %v5313_v10, %v5313_v10 }
 0x1df   :  { %v5208_v11 = vpop.permute.xlu1 %1105  ;;  %8056 = vst [vmem:[#allocation45_spill] sm:$0xff] %v5317_v58  ;;  %v1327_v47 = vsel %vm7813_vm1, %v1325_v20, %v1326_v42  ;;  %v5349_v23 = vand.u32 2147483647, %v5313_v10  ;;  %v5351_v37 = vadd.f32 %v1408_v3, %v1363_v27  ;;  %v5366_v3 = vmul.f32 2.0, %v5326_v9 }
 0x1e0   :  { %8043 = vst [vmem:[#allocation21_spill] sm:$0xff] %v5208_v11  ;;  %v5210_v8 = vpop.permute.xlu0 %1087  ;;  %8057 = vst [vmem:[#allocation46_spill] sm:$0xff] %v5344_v44  ;;  %v5356_v1 = vsub.f32 %v5080_v43, %v5208_v11 }
 0x1e1   :  { %8044 = vst [vmem:[#allocation24_spill] sm:$0xff] %v5210_v8  ;;  %8058 = vst [vmem:[#allocation47_spill] sm:$0xff] %v5351_v37 }
 0x1e3   :  { %v1182_v40 = vpop.permute.xlu1 %1181 }
 0x1e4   :  { %v5244_v33 = vpop.permute.xlu0 %1103  ;;  %v1234_v52 = vadd.f32 %v1182_v40, %v8024_v13  ;;  %v5330_v13 = vsub.f32 %v5074_v46, %v5183_v29 }
 0x1e5   :  { %8048 = vst [vmem:[#allocation37_spill] sm:$0xff] %v5244_v33 }
 0x1e6   :  { %v1252_v15 = vadd.f32 %v1234_v52, %v5132_v16  ;;  %v5362_v52 = vadd.f32 %v1407_v51, %v1364_v55  ;;  %v1365_v16 = vadd.f32 %v1327_v47, %v5231_v14 }
 0x1e7   :  { %v5291_v60 = vpop.permute.xlu1 %1185 }
 0x1e8   :  { %v1180_v59 = vpop.permute.xlu0 %1179  ;;  %8059 = vst [vmem:[#allocation48_spill] sm:$0xff] %v5362_v52  ;;  %v5393_v55 = vmul.f32 %v5362_v52, %v5362_v52 }
 0x1e9   :  { %v1233_v19 = vadd.f32 %v1180_v59, %v8027_v49  ;;  %v1329_v49 = vsel %vm7813_vm1, %v1326_v42, %v1328_v21  ;;  %v1275_v59 = vmul.f32 2.0, %v5330_v13  ;;  %v1474_v42 = vrot.slane %v1252_v15, 2 }
 0x1ea   :  { %v1366_v21 = vadd.f32 %v1329_v49, %v5251_v50  ;;  %v5387_v50 = vsub.f32 %v5094_v62, %v5244_v33  ;;  %8060 = vst [vmem:[#allocation49_spill] sm:$0xff] %v5393_v55  ;;  %v5403_v49 = vadd.f32 %v1411_v0, %v1365_v16  ;;  %v8063_v33 = vrot.slane %v5297_v25, 1 }
 0x1eb   :  { %v1190_v40 = vpop.permute.xlu1 %1189  ;;  %v1251_v36 = vadd.f32 %v1233_v19, %v5136_v39  ;;  %v5382_v39 = vsub.f32 %v5086_v38, %v5210_v8  ;;  %v1315_v14 = vrot.slane %v1275_v59, 1  ;;  %v5396_v19 = vand.u32 2147483647, %v5351_v37 }
 0x1ec   :  { %v1184_v61 = vpop.permute.xlu0 %1183  ;;  %v1238_v29 = vadd.f32 %v1190_v40, %v4893_v57  ;;  %v5375_v57 = vmul.f32 %v5351_v37, %v5351_v37  ;;  %8061 = vst [vmem:[#allocation50_spill] sm:$0xff] %v5403_v49  ;;  %v5405_v59 = vadd.f32 %v1413_v12, %v1366_v21  ;;  %v1285_v16 = vmul.f32 2.0, %v5387_v50 }
 0x1ed   :  { %v1235_v20 = vadd.f32 %v1184_v61, %v4908_v45  ;;  %v1473_v11 = vrot.slane %v1251_v36, 2  ;;  %v5378_v45 = vmul.f32 2.0, %v5356_v1  ;;  %v5401_v61 = vand.u32 2147483647, %v5362_v52 }
 0x1ee   :  { %v5371_v43 = vadd.f32 %v1238_v29, %v5138_v48  ;;  %8062 = vst [vmem:[#allocation51_spill] sm:$0xff] %v5405_v59  ;;  %v1317_v0 = vsel %vm7813_vm1, %v1315_v14, %v8063_v33  ;;  %v1277_v12 = vmul.f32 2.0, %v5382_v39  ;;  %v1399_v14 = vrot.slane %v5330_v13, 2 }
 0x1ef   :  { %v1253_v47 = vadd.f32 %v1235_v20, %v5140_v63  ;;  %v1475_v48 = vsel %vm7830_vm0, %v1473_v11, %v1474_v42  ;;  %v1333_v20 = vrot.slane %v5378_v45, 1  ;;  %v1236_v45 = vadd.f32 %v5291_v60, %v8026_v5 }
 0x1f0   :  { %v7775_v29 = vrot.slane %v5371_v43, 2  ;;  %v1188_v51 = vpop.permute.xlu0 %1187  ;;  %v5398_v40 = vsub.f32 %v1251_v36, %v1475_v48  ;;  %v1330_v60 = vrot.slane %v5366_v3, 1  ;;  %v5452_v52 = vmul.f32 %v5403_v49, %v5403_v49 }
 0x1f1   :  { %v1476_v63 = vrot.slane %v1253_v47, 2  ;;  %v1237_v48 = vadd.f32 %v1188_v51, %v4867_v22  ;;  %v1417_v51 = vrot.slane %v5356_v1, 2  ;;  %v1359_v37 = vadd.f32 %v1317_v0, %v5330_v13 }
 0x1f2   :  { %v5410_v11 = vsub.f32 %v5371_v43, %v7775_v29  ;;  %v5414_v27 = vand.u32 2147483647, %v5398_v40  ;;  %8064 = vst [vmem:[#allocation52_spill] sm:$0xff] %v5452_v52  ;;  %v1370_v3 = vadd.f32 %v1333_v20, %v5356_v1  ;;  %v1254_v62 = vadd.f32 %v1236_v45, %v5134_v24 }
 0x1f3   :  { %v1477_v36 = vsel %vm7830_vm0, %v1474_v42, %v1476_v63  ;;  %v1255_v22 = vadd.f32 %v1237_v48, %v5146_v41  ;;  %v5456_v42 = vmul.f32 %v5405_v59, %v5405_v59  ;;  %v1331_v41 = vrot.slane %v1285_v16, 1 }
 0x1f4   :  { %v5424_v21 = vand.u32 2147483647, %v5410_v11  ;;  %v5430_v29 = vmax.f32 %v5219_v30, %v5414_v27  ;;  %vm1899_vm13 = vcmp.gt.f32.partialorder %v5414_v27, %v5219_v30  ;;  %v5444_v5 = vsub.f32 %v1252_v15, %v1477_v36 }
 0x1f5   :  { %8065 = vst [vmem:[#allocation53_spill] sm:$0xff] %v5456_v42  ;;  %v1318_v36 = vrot.slane %v1277_v12, 1  ;;  %v5463_v48 = vsub.f32 %v1253_v47, %v1476_v63  ;;  %v5469_v38 = vand.u32 2147483647, %v5403_v49  ;;  %v8067_v13 = vrot.slane %v5266_v6, 2 }
 0x1f6   :  { %v5438_v33 = vmax.f32 %v5258_v32, %v5424_v21  ;;  %vm2123_vm14 = vcmp.gt.f32.partialorder %v5424_v21, %v5258_v32  ;;  %v1761_v15 = vmax.f32 %v5430_v29, 1e-30  ;;  %v5466_v8 = vand.u32 2147483647, %v5444_v5 }
 0x1f7   :  { %8066 = vst [vmem:[#allocation54_spill] sm:$0xff] %v5469_v38  ;;  %v1401_v0 = vsel %vm7830_vm0, %v1399_v14, %v8067_v13  ;;  %v1479_v1 = vrot.slane %v1255_v22, 2  ;;  %v1402_v24 = vrot.slane %v5382_v39, 2  ;;  %v1415_v12 = vrot.slane %v5387_v50, 2 }
 0x1f8   :  { %v1985_v55 = vmax.f32 %v5438_v33, 1e-30  ;;  %3523 = vrcp.f32 %v1761_v15  ;;  %v5477_v16 = vand.u32 2147483647, %v5463_v48  ;;  %v5481_v47 = vmax.f32 %v5287_v54, %v5466_v8 }
 0x1f9   :  { %v8068_v63 = vrot.slane %v5297_v25, 1  ;;  %v1478_v15 = vrot.slane %v1254_v62, 2  ;;  %vm1900_vm15 = vcmp.gt.f32.partialorder %v5466_v8, %v5287_v54  ;;  %v5491_v14 = vand.u32 2147483647, %v5405_v59 }
 0x1fa   :  { %3525 = vrcp.f32 %v1985_v55  ;;  %v5493_v13 = vadd.f32 %v1401_v0, %v1359_v37  ;;  %v5495_v49 = vadd.f32 %v1417_v51, %v1370_v3  ;;  %v1332_v46 = vsel %vm7813_vm1, %v1330_v60, %v1331_v41 }
 0x1fb   :  { %v1319_v45 = vsel %vm7813_vm1, %v8068_v63, %v1318_v36  ;;  %8069 = vst [vmem:[#allocation55_spill] sm:$0xff] %v5491_v14  ;;  %v5500_v25 = vmax.f32 %v5273_v4, %v5477_v16  ;;  %v1762_v55 = vmax.f32 %v5481_v47, 1e-30  ;;  %v1480_v10 = vsel %vm7830_vm0, %v1478_v15, %v1479_v1  ;;  %v1200_v15 = vpop.permute.xlu1 %1199 }
 0x1fc   :  { %8070 = vst [vmem:[#allocation56_spill] sm:$0xff] %v5493_v13  ;;  %8071 = vst [vmem:[#allocation57_spill] sm:$0xff] %v5495_v49  ;;  %v1360_v59 = vadd.f32 %v1319_v45, %v5266_v6  ;;  %v8072_v37 = vrot.slane %v5266_v6, 2  ;;  %v8073_v0 = vrot.slane %v5326_v9, 2  ;;  %v1418_v14 = vsel %vm7830_vm0, %v1415_v12, %v1417_v51 }
 0x1fd   :  { %v1361_v38 = vadd.f32 %v1318_v36, %v5382_v39  ;;  %v1334_v63 = vsel %vm7813_vm1, %v1331_v41, %v1333_v20  ;;  %v1763_v42 = vmax.f32 %v5500_v25, 1e-30  ;;  %3527 = vrcp.f32 %v1762_v55 }
 0x1fe   :  { %v1403_v3 = vsel %vm7830_vm0, %v8072_v37, %v1402_v24  ;;  %v1416_v60 = vsel %vm7830_vm0, %v8073_v0, %v1415_v12  ;;  %v1368_v45 = vadd.f32 %v1332_v46, %v5326_v9  ;;  %vm1901_vm2 = vcmp.gt.f32.partialorder %v5477_v16, %v5273_v4  ;;  %v1198_v46 = vpop.permute.xlu0 %1197 }
 0x1ff   :  { %v8074_v6 = vrot.slane %v5371_v43, 2  ;;  %v5523_v0 = vsub.f32 %v1254_v62, %v1480_v10  ;;  %v5527_v39 = vmul.f32 %v5493_v13, %v5493_v13  ;;  %v5530_v20 = vand.u32 2147483647, %v5493_v13 }
 0x200   :  { %v5534_v51 = vmul.f32 %v5495_v49, %v5495_v49  ;;  %3529 = vrcp.f32 %v1763_v42  ;;  %v5536_v36 = vadd.f32 %v1403_v3, %v1360_v59  ;;  %v1369_v43 = vadd.f32 %v1334_v63, %v5387_v50 }
 0x201   :  { %v1482_v37 = vsel %vm7830_vm0, %v1479_v1, %v8074_v6  ;;  %8075 = vst [vmem:[#allocation58_spill] sm:$0xff] %v5523_v0  ;;  %8076 = vst [vmem:[#allocation59_spill] sm:$0xff] %v5527_v39  ;;  %v1545_v62 = vmul.f32 %v5398_v40, %v5398_v40  ;;  %v5542_v10 = vand.u32 2147483647, %v5523_v0  ;;  %v5544_v1 = vadd.f32 %v1402_v24, %v1361_v38 }
 0x202   :  { %8077 = vst [vmem:[#allocation60_spill] sm:$0xff] %v5530_v20  ;;  %8078 = vst [vmem:[#allocation61_spill] sm:$0xff] %v5534_v51  ;;  %v3524_v9 = vpop.eup %3523  ;;  %v8082_v12 = vmin.f32 %v5219_v30, %v5414_v27  ;;  %v1613_v42 = vmul.f32 %v5410_v11, %v5410_v11  ;;  %v5551_v59 = vsub.f32 %v1255_v22, %v1482_v37  ;;  %vm1773_vm3 = vcmp.gt.f32.partialorder %v5430_v29, 0.0 }
 0x203   :  { %8079 = vst [vmem:[#allocation62_spill] sm:$0xff] %v5536_v36  ;;  %8080 = vst [vmem:[#allocation63_spill] sm:$0xff] %v5542_v10  ;;  %v5553_v3 = vadd.f32 %v1416_v60, %v1368_v45  ;;  %v8084_v50 = vmin.f32 %v5258_v32, %v5424_v21  ;;  %v1242_v38 = vadd.f32 %v1198_v46, %v4971_v56  ;;  %vm1997_vm4 = vcmp.gt.f32.partialorder %v5438_v33, 0.0  ;;  %v1204_v60 = vpop.permute.xlu1 %1203 }
 0x204   :  { %v3526_v41 = vpop.eup %3525  ;;  %8081 = vst [vmem:[#allocation64_spill] sm:$0xff] %v5544_v1  ;;  %v1779_v55 = vmul.f32 %v3524_v9, %v8082_v12  ;;  %v5565_v6 = vmax.f32 %v5304_v2, %v5542_v10  ;;  %v5569_v45 = vadd.f32 %v1418_v14, %v1369_v43  ;;  %v5572_v29 = vadd.f32 %v1545_v62, %v5237_v35 }
 0x205   :  { %8083 = vst [vmem:[#allocation65_spill] sm:$0xff] %v5553_v3  ;;  %v2003_v63 = vmul.f32 %v3526_v41, %v8084_v50  ;;  %v5578_v46 = vadd.f32 %v1613_v42, %v5255_v17  ;;  %v1243_v9 = vadd.f32 %v1200_v15, %v4797_v26  ;;  %v5583_v41 = vand.u32 2147483647, %v5551_v59 }
 0x206   :  { %v5560_v24 = vsel %vm1773_vm3, %v1779_v55, 0.0  ;;  %8085 = vst [vmem:[#allocation66_spill] sm:$0xff] %v5569_v45  ;;  %v5586_v14 = vand.u32 2147483647, %v5495_v49  ;;  %v5590_v35 = vmul.f32 %v5536_v36, %v5536_v36  ;;  %v5594_v43 = vmul.f32 %v5544_v1, %v5544_v1 }
 0x207   :  { %v1803_v37 = vadd.f32 1.0, %v5560_v24  ;;  %v5575_v56 = vsel %vm1997_vm4, %v2003_v63, 0.0  ;;  %8086 = vst [vmem:[#allocation67_spill] sm:$0xff] %v5583_v41  ;;  %v3528_v17 = vpop.eup %3527  ;;  %v5597_v62 = vand.u32 2147483647, %v5536_v36  ;;  %v1260_v15 = vadd.f32 %v1242_v38, %v5152_v31  ;;  %v8095_v31 = vld [vmem:[#allocation33_spill] sm:$0xff] }
 0x208   :  { %v2027_v33 = vadd.f32 1.0, %v5575_v56  ;;  %8087 = vst [vmem:[#allocation68_spill] sm:$0xff] %v5586_v14  ;;  %8088 = vst [vmem:[#allocation69_spill] sm:$0xff] %v5590_v35  ;;  %v5600_v26 = vand.u32 2147483647, %v5544_v1  ;;  %v5605_v12 = vmul.f32 %v5553_v3, %v5553_v3  ;;  %v5609_v55 = vmul.f32 %v5569_v45, %v5569_v45 }
 0x209   :  { %8089 = vst [vmem:[#allocation70_spill] sm:$0xff] %v5594_v43  ;;  %3531 = vrcp.f32 %v1803_v37  ;;  %8090 = vst [vmem:[#allocation71_spill] sm:$0xff] %v5597_v62  ;;  %v8094_v42 = vmin.f32 %v5287_v54, %v5466_v8  ;;  %vm1774_vm5 = vcmp.gt.f32.partialorder %v5481_v47, 0.0  ;;  %v5618_v38 = vadd.f32 %v1243_v9, %v8095_v31  ;;  %v8098_v31 = vld [vmem:[#allocation25_spill] sm:$0xff] }
 0x20a   :  { %8091 = vst [vmem:[#allocation72_spill] sm:$0xff] %v5600_v26  ;;  %3533 = vrcp.f32 %v2027_v33  ;;  %8092 = vst [vmem:[#allocation73_spill] sm:$0xff] %v5605_v12  ;;  %v3530_v63 = vpop.eup %3529  ;;  %v5622_v37 = vmax.f32 %v5317_v58, %v5583_v41  ;;  %v1208_v33 = vpop.permute.xlu1 %1207  ;;  %v5625_v22 = vand.u32 2147483647, %v5553_v3  ;;  %v8097_v1 = vmin.f32 %v5273_v4, %v5477_v16 }
 0x20b   :  { %8093 = vst [vmem:[#allocation74_spill] sm:$0xff] %v5609_v55  ;;  %3535 = vrsqrt.f32 %v5572_v29  ;;  %v1780_v50 = vmul.f32 %v3528_v17, %v8094_v42  ;;  %vm1775_vm6 = vcmp.gt.f32.partialorder %v5500_v25, 0.0  ;;  %v1245_v36 = vadd.f32 %v1204_v60, %v8098_v31  ;;  %v8099_v55 = vld [vmem:[#allocation26_spill] sm:$0xff] }
 0x20c   :  { %3537 = vrsqrt.f32 %v5578_v46  ;;  %8096 = vst [vmem:[#allocation33_spill] sm:$0xff] %v5625_v22  ;;  %v1781_v17 = vmul.f32 %v3530_v63, %v8097_v1  ;;  %v1488_v49 = vrot.slane %v1260_v15, 2  ;;  %v1983_v3 = vmax.f32 %v5565_v6, 1e-30 }
 0x20d   :  { %v5630_v42 = vsel %vm1774_vm5, %v1780_v50, 0.0  ;;  %v1984_v22 = vmax.f32 %v5622_v37, 1e-30  ;;  %v1247_v1 = vadd.f32 %v1208_v33, %v8099_v55  ;;  %v1546_v50 = vmul.f32 %v5444_v5, %v5444_v5  ;;  %v8101_v55 = vld [vmem:[#allocation34_spill] sm:$0xff] }
 0x20e   :  { %v1804_v9 = vadd.f32 1.0, %v5630_v42  ;;  %v5637_v13 = vsel %vm1775_vm6, %v1781_v17, 0.0  ;;  %v7808_v25 = vrot.slane %v5618_v38, 2  ;;  %v5647_v47 = vand.u32 2147483647, %v5569_v45  ;;  %v8104_v45 = vld [vmem:[#allocation11_spill] sm:$0xff] }
 0x20f   :  { %v1805_v63 = vadd.f32 1.0, %v5637_v13  ;;  %vm2122_vm8 = vcmp.gt.f32.partialorder %v5583_v41, %v5317_v58  ;;  %v3361_v60 = vadd.f32 -1.0, %v5560_v24  ;;  %v5655_v33 = vadd.f32 %v1245_v36, %v8101_v55  ;;  %v8106_v55 = vld [vmem:[#allocation40_spill] sm:$0xff] }
 0x210   :  { %3539 = vrcp.f32 %v1804_v9  ;;  %8100 = vst [vmem:[#allocation25_spill] sm:$0xff] %v5647_v47  ;;  %v1490_v17 = vsel %vm7830_vm0, %v1488_v49, %v7808_v25  ;;  %v3381_v31 = vadd.f32 -1.0, %v5575_v56  ;;  %v5664_v47 = vadd.f32 %v1247_v1, %v8104_v45 }
 0x211   :  { %3541 = vrcp.f32 %v1983_v3  ;;  %8102 = vst [vmem:[#allocation26_spill] sm:$0xff] %v5655_v33  ;;  %v5661_v3 = vsub.f32 %v1260_v15, %v1490_v17  ;;  %v5669_v62 = vadd.f32 %v1546_v50, %v8106_v55  ;;  %vm1791_vm9 = vcmp.gt.f32.partialorder %v5560_v24, 0.41421357 }
 0x212   :  { %3543 = vrcp.f32 %v1805_v63  ;;  %8105 = vst [vmem:[#allocation11_spill] sm:$0xff] %v5664_v47  ;;  %vm2015_vm10 = vcmp.gt.f32.partialorder %v5575_v56, 0.41421357  ;;  %v1547_v50 = vmul.f32 %v5463_v48, %v5463_v48  ;;  %vm1559_vm11 = vcmp.eq.f32.partialorder %v5572_v29, inf }
 0x213   :  { %v3532_v9 = vpop.eup %3531  ;;  %3545 = vrcp.f32 %v1984_v22  ;;  %8103 = vst [vmem:[#allocation34_spill] sm:$0xff] %v5661_v3  ;;  %v1548_v22 = vmul.f32 %v5661_v3, %v5661_v3  ;;  %v5675_v15 = vand.u32 2147483647, %v5661_v3  ;;  %v3362_v25 = vadd.f32 -1.0, %v5630_v42 }
 0x214   :  { %v3534_v12 = vpop.eup %3533  ;;  %v1815_v63 = vmul.f32 %v3532_v9, %v3361_v60  ;;  %3547 = vrsqrt.f32 %v5669_v62  ;;  %vm1639_vm12 = vcmp.eq.f32.partialorder %v5578_v46, inf  ;;  %vm1792_vm3 = vcmp.gt.f32.partialorder %v5630_v42, 0.41421357 }
 0x215   :  { %v3536_v43 = vpop.eup %3535  ;;  %v2039_v49 = vmul.f32 %v3534_v12, %v3381_v31  ;;  %v5696_v9 = vadd.f32 %v1548_v22, %v5334_v28  ;;  %v5707_v55 = vmax.f32 %v5340_v34, %v5675_v15  ;;  %v3363_v31 = vadd.f32 -1.0, %v5637_v13 }
 0x216   :  { %v3538_v45 = vpop.eup %3537  ;;  %v5680_v1 = vsel %vm1791_vm9, %v1815_v63, %v5560_v24  ;;  %v1558_v28 = vmul.f32 %v3536_v43, %v5572_v29  ;;  %vm1995_vm4 = vcmp.gt.f32.partialorder %v5565_v6, 0.0  ;;  %vm1793_vm5 = vcmp.gt.f32.partialorder %v5637_v13, 0.41421357 }
 0x217   :  { %v5688_v12 = vmul.f32 %v5680_v1, %v5680_v1  ;;  %v5693_v17 = vsel %vm2015_vm10, %v2039_v49, %v5575_v56  ;;  %v1638_v60 = vmul.f32 %v3538_v45, %v5578_v46  ;;  %v1764_v35 = vmax.f32 %v5707_v55, 1e-30 }
 0x218   :  { %v5702_v63 = vmul.f32 %v5693_v17, %v5693_v17  ;;  %v8107_v45 = vrot.slane %v5664_v47, 2  ;;  %v8108_v3 = vmin.f32 %v5304_v2, %v5542_v10  ;;  %vm1561_vm1 = vcmp.eq.f32.partialorder %v5572_v29, 0.0 }
 0x219   :  { %v1833_v22 = vmul.f32 0.080537446, %v5688_v12  ;;  %3549 = vrcp.f32 %v1764_v35  ;;  %vm1641_vm7 = vcmp.eq.f32.partialorder %v5578_v46, 0.0  ;;  %vm1996_vm6 = vcmp.gt.f32.partialorder %v5622_v37, 0.0 }
 0x21a   :  { %v3540_v36 = vpop.eup %3539  ;;  %v2057_v26 = vmul.f32 0.080537446, %v5702_v63  ;;  %v5724_v14 = vsub.f32 %v5664_v47, %v8107_v45  ;;  %v8111_v47 = vand.u32 2147483648, %v5572_v29 }
 0x21b   :  { %v3542_v49 = vpop.eup %3541  ;;  %v3367_v51 = vadd.f32 -0.13877685, %v1833_v22  ;;  %v1816_v43 = vmul.f32 %v3540_v36, %v3362_v25 }
 0x21c   :  { %v3544_v20 = vpop.eup %3543  ;;  %v3387_v39 = vadd.f32 -0.13877685, %v2057_v26  ;;  %v2001_v52 = vmul.f32 %v3542_v49, %v8108_v3  ;;  %v8109_v49 = vmin.f32 %v5317_v58, %v5583_v41 }
 0x21d   :  { %v3546_v22 = vpop.eup %3545  ;;  %v1845_v25 = vmul.f32 %v3367_v51, %v5688_v12  ;;  %v1817_v36 = vmul.f32 %v3544_v20, %v3363_v31  ;;  %v5737_v45 = vsel %vm1792_vm3, %v1816_v43, %v5630_v42 }
 0x21e   :  { %v2069_v26 = vmul.f32 %v3387_v39, %v5702_v63  ;;  %v5743_v3 = vmul.f32 %v5737_v45, %v5737_v45  ;;  %v2002_v2 = vmul.f32 %v3546_v22, %v8109_v49  ;;  %v5750_v20 = vsel %vm1995_vm4, %v2001_v52, 0.0  ;;  %v3548_v49 = vpop.eup %3547 }
 0x21f   :  { %v1851_v51 = vadd.f32 0.19977711, %v1845_v25  ;;  %v5755_v35 = vsel %vm1793_vm5, %v1817_v36, %v5637_v13  ;;  %v5759_v39 = vand.u32 2147483647, %v5724_v14  ;;  %v1560_v22 = vsel %vm1559_vm11, %v5572_v29, %v1558_v28  ;;  %v8110_v36 = vld [vmem:[#allocation38_spill] sm:$0xff] }
 0x220   :  { %v2075_v31 = vadd.f32 0.19977711, %v2069_v26  ;;  %v5763_v43 = vmul.f32 %v5755_v35, %v5755_v35  ;;  %v1834_v6 = vmul.f32 0.080537446, %v5743_v3  ;;  %v5766_v52 = vsel %vm1996_vm6, %v2002_v2, 0.0 }
 0x221   :  { %v1857_v25 = vmul.f32 %v1851_v51, %v5688_v12  ;;  %v5773_v37 = vadd.f32 %v1547_v50, %v8110_v36  ;;  %v1611_v26 = vmul.f32 %v5523_v0, %v5523_v0  ;;  %v2026_v2 = vadd.f32 1.0, %v5766_v52 }
 0x222   :  { %v2081_v10 = vmul.f32 %v2075_v31, %v5702_v63  ;;  %v1835_v53 = vmul.f32 0.080537446, %v5763_v43  ;;  %v3368_v58 = vadd.f32 -0.13877685, %v1834_v6  ;;  %v1640_v28 = vsel %vm1639_vm12, %v5578_v46, %v1638_v60  ;;  %v8113_v60 = vld [vmem:[#allocation41_spill] sm:$0xff] }
 0x223   :  { %v3373_v41 = vadd.f32 -0.3333295, %v1857_v25  ;;  %v1612_v50 = vmul.f32 %v5551_v59, %v5551_v59  ;;  %v5787_v51 = vmax.f32 %v5349_v23, %v5759_v39  ;;  %3551 = vrcp.f32 %v2026_v2  ;;  %v3550_v2 = vpop.eup %3549 }
 0x224   :  { %v3393_v36 = vadd.f32 -0.3333295, %v2081_v10  ;;  %v3369_v0 = vadd.f32 -0.13877685, %v1835_v53  ;;  %v1846_v31 = vmul.f32 %v3368_v58, %v5743_v3  ;;  %3553 = vrsqrt.f32 %v5773_v37 }
 0x225   :  { %v1869_v6 = vmul.f32 %v3373_v41, %v5688_v12  ;;  %v5798_v33 = vsel %vm1561_vm1, %v8111_v47, %v1560_v22  ;;  %v8112_v12 = vand.u32 2147483648, %v5578_v46  ;;  %v5810_v44 = vadd.f32 %v1611_v26, %v8113_v60 }
 0x226   :  { %v2093_v10 = vmul.f32 %v3393_v36, %v5702_v63  ;;  %v1847_v53 = vmul.f32 %v3369_v0, %v5763_v43  ;;  %v1852_v58 = vadd.f32 0.19977711, %v1846_v31  ;;  %v5817_v22 = vadd.f32 %v1612_v50, %v5311_v18  ;;  %v1202_v36 = vpop.permute.xlu0 %1201 }
 0x227   :  { %v1875_v41 = vmul.f32 %v1869_v6, %v5680_v1  ;;  %v5807_v25 = vsel %vm1641_vm7, %v8112_v12, %v1640_v28  ;;  %vm1566_vm1 = vcmp.eq.f32.partialorder %v5669_v62, inf  ;;  %vm1776_vm7 = vcmp.gt.f32.partialorder %v5707_v55, 0.0  ;;  %v8115_v6 = vld [vmem:[#allocation16_spill] sm:$0xff] }
 0x228   :  { %v2099_v47 = vmul.f32 %v2093_v10, %v5693_v17  ;;  %v1853_v63 = vadd.f32 0.19977711, %v1847_v53  ;;  %v1858_v0 = vmul.f32 %v1852_v58, %v5743_v3  ;;  %v8114_v46 = vmin.f32 %v5340_v34, %v5675_v15  ;;  %v8117_v53 = vld [vmem:[#allocation27_spill] sm:$0xff] }
 0x229   :  { %v1881_v31 = vadd.f32 %v1875_v41, %v5680_v1  ;;  %v1988_v28 = vmax.f32 %v5787_v51, 1e-30  ;;  %vm1917_vm11 = vcmp.lt.f32.partialorder %v8115_v6, 0.0  ;;  %vm2126_vm12 = vcmp.gt.f32.partialorder %v5759_v39, %v5349_v23  ;;  %v8116_v1 = vld [vmem:[#allocation19_spill] sm:$0xff] }
 0x22a   :  { %v1782_v26 = vmul.f32 %v3550_v2, %v8114_v46  ;;  %v2105_v60 = vadd.f32 %v2099_v47, %v5693_v17  ;;  %v1859_v18 = vmul.f32 %v1853_v63, %v5763_v43  ;;  %v3374_v50 = vadd.f32 -0.3333295, %v1858_v0 }
 0x22b   :  { %vm2141_vm4 = vcmp.lt.f32.partialorder %v8116_v1, 0.0  ;;  %v1887_v10 = vadd.f32 0.7853982, %v1881_v31  ;;  %3555 = vrcp.f32 %v1988_v28  ;;  %v1244_v58 = vadd.f32 %v1202_v36, %v8117_v53 }
 0x22c   :  { %v5832_v55 = vsel %vm1776_vm7, %v1782_v26, 0.0  ;;  %v2111_v2 = vadd.f32 0.7853982, %v2105_v60  ;;  %v1565_v41 = vmul.f32 %v3548_v49, %v5669_v62  ;;  %v3375_v12 = vadd.f32 -0.3333295, %v1859_v18 }
 0x22d   :  { %v1870_v17 = vmul.f32 %v3374_v50, %v5743_v3  ;;  %v1893_v47 = vsel %vm1791_vm9, %v1887_v10, %v1881_v31  ;;  %vm1935_vm6 = vcmp.lt.f32.partialorder %v5398_v40, 0.0  ;;  %v3380_v63 = vadd.f32 -1.0, %v5766_v52  ;;  %v3552_v26 = vpop.eup %3551  ;;  %v8118_v50 = vld [vmem:[#allocation10_spill] sm:$0xff] }
 0x22e   :  { %v2025_v0 = vadd.f32 1.0, %v5750_v20  ;;  %v1806_v46 = vadd.f32 1.0, %v5832_v55  ;;  %v1905_v28 = vsub.f32 1.5707964, %v1893_v47  ;;  %v2117_v36 = vsel %vm2015_vm10, %v2111_v2, %v2105_v60  ;;  %v3554_v49 = vpop.eup %3553  ;;  %v8119_v60 = vld [vmem:[#allocation20_spill] sm:$0xff] }
 0x22f   :  { %vm2159_vm7 = vcmp.lt.f32.partialorder %v5410_v11, 0.0  ;;  %v1871_v3 = vmul.f32 %v3375_v12, %v5763_v43  ;;  %v1876_v24 = vmul.f32 %v1870_v17, %v5737_v45  ;;  %v2129_v31 = vsub.f32 1.5707964, %v2117_v36  ;;  %v8120_v17 = vld [vmem:[#allocation15_spill] sm:$0xff] }
 0x230   :  { %v2038_v18 = vmul.f32 %v3552_v26, %v3380_v63  ;;  %3557 = vrcp.f32 %v1806_v46  ;;  %v1262_v10 = vadd.f32 %v1244_v58, %v8118_v50  ;;  %v1911_v53 = vsel %vm1899_vm13, %v1905_v28, %v1893_v47 }
 0x231   :  { %v1877_v29 = vmul.f32 %v1871_v3, %v5755_v35  ;;  %v1882_v56 = vadd.f32 %v1876_v24, %v5737_v45  ;;  %vm2014_vm9 = vcmp.gt.f32.partialorder %v5766_v52, 0.41421357  ;;  %vm1918_vm10 = vcmp.lt.f32.partialorder %v8119_v60, 0.0 }
 0x232   :  { %v1923_v43 = vsub.f32 3.1415927, %v1911_v53  ;;  %v2135_v2 = vsel %vm2123_vm14, %v2129_v31, %v2117_v36  ;;  %3559 = vrcp.f32 %v2025_v0  ;;  %v5862_v58 = vsel %vm2014_vm9, %v2038_v18, %v5766_v52 }
 0x233   :  { %v2147_v30 = vsub.f32 3.1415927, %v2135_v2  ;;  %v5867_v27 = vsel %vm1566_vm1, %v5669_v62, %v1565_v41  ;;  %v1883_v45 = vadd.f32 %v1877_v29, %v5755_v35  ;;  %v1888_v12 = vadd.f32 0.7853982, %v1882_v56 }
 0x234   :  { %vm1919_vm13 = vcmp.lt.f32.partialorder %v8120_v17, 0.0  ;;  %v1929_v32 = vsel %vm1917_vm11, %v1923_v43, %v1911_v53  ;;  %v1572_v21 = vmul.f32 %v3554_v49, %v5773_v37  ;;  %v5876_v47 = vmul.f32 %v5862_v58, %v5862_v58 }
 0x235   :  { %v1491_v63 = vrot.slane %v1262_v10, 2  ;;  %v1941_v0 = vsub.f32 0.0, %v1929_v32  ;;  %v2153_v41 = vsel %vm2141_vm4, %v2147_v30, %v2135_v2  ;;  %v1889_v46 = vadd.f32 0.7853982, %v1883_v45  ;;  %v3556_v29 = vpop.eup %3555 }
 0x236   :  { %vm1936_vm14 = vcmp.lt.f32.partialorder %v5444_v5, 0.0  ;;  %v1894_v35 = vsel %vm1792_vm3, %v1888_v12, %v1882_v56  ;;  %v2165_v6 = vsub.f32 0.0, %v2153_v41  ;;  %vm1573_vm1 = vcmp.eq.f32.partialorder %v5773_v37, inf }
 0x237   :  { %v1906_v26 = vsub.f32 1.5707964, %v1894_v35  ;;  %3561 = vrsqrt.f32 %v5817_v22  ;;  %vm2000_vm11 = vcmp.gt.f32.partialorder %v5787_v51, 0.0  ;;  %v5888_v28 = vsel %vm1935_vm6, %v1941_v0, %v1929_v32 }
 0x238   :  { %v1895_v1 = vsel %vm1793_vm5, %v1889_v46, %v1883_v45  ;;  %vm1937_vm4 = vcmp.lt.f32.partialorder %v5463_v48, 0.0  ;;  %v2056_v42 = vmul.f32 0.080537446, %v5876_v47  ;;  %v8121_v36 = vmin.f32 %v5349_v23, %v5759_v39 }
 0x239   :  { %v2171_v24 = vsel %vm2159_vm7, %v2165_v6, %v2153_v41  ;;  %v1907_v49 = vsub.f32 1.5707964, %v1895_v1  ;;  %v1912_v40 = vsel %vm1900_vm15, %v1906_v26, %v1894_v35  ;;  %v3364_v51 = vadd.f32 -1.0, %v5832_v55 }
 0x23a   :  { %v2006_v3 = vmul.f32 %v3556_v29, %v8121_v36  ;;  %vm1568_vm3 = vcmp.eq.f32.partialorder %v5669_v62, 0.0  ;;  %v1924_v13 = vsub.f32 3.1415927, %v1912_v40  ;;  %v3386_v31 = vadd.f32 -0.13877685, %v2056_v42  ;;  %v3558_v56 = vpop.eup %3557 }
 0x23b   :  { %v8122_v50 = vrot.slane %v5618_v38, 2  ;;  %vm1575_vm5 = vcmp.eq.f32.partialorder %v5773_v37, 0.0  ;;  %v1913_v54 = vsel %vm1901_vm2, %v1907_v49, %v1895_v1  ;;  %3563 = vrsqrt.f32 %v5696_v9 }
 0x23c   :  { %v5904_v18 = vsel %vm2000_vm11, %v2006_v3, 0.0  ;;  %vm1794_vm15 = vcmp.gt.f32.partialorder %v5832_v55, 0.41421357  ;;  %v1925_v11 = vsub.f32 3.1415927, %v1913_v54  ;;  %v1930_v43 = vsel %vm1918_vm10, %v1924_v13, %v1912_v40  ;;  %v3560_v45 = vpop.eup %3559  ;;  %v1206_v3 = vpop.permute.xlu0 %1205 }
 0x23d   :  { %v1492_v53 = vsel %vm7830_vm0, %v8122_v50, %v1491_v63  ;;  %v2030_v8 = vadd.f32 1.0, %v5904_v18  ;;  %v2068_v2 = vmul.f32 %v3386_v31, %v5876_v47  ;;  %v1818_v30 = vmul.f32 %v3558_v56, %v3364_v51 }
 0x23e   :  { %v1942_v12 = vsub.f32 0.0, %v1930_v43  ;;  %v5920_v32 = vsub.f32 %v5618_v38, %v1492_v53  ;;  %v5922_v4 = vsub.f32 %v1262_v10, %v1491_v63  ;;  %v1931_v16 = vsel %vm1919_vm13, %v1925_v11, %v1913_v54 }
 0x23f   :  { %3565 = vrcp.f32 %v2030_v8  ;;  %v3379_v0 = vadd.f32 -1.0, %v5750_v20  ;;  %v2074_v41 = vadd.f32 0.19977711, %v2068_v2  ;;  %v5930_v60 = vsel %vm1794_vm15, %v1818_v30, %v5832_v55 }
 0x240   :  { %v1943_v46 = vsub.f32 0.0, %v1931_v16  ;;  %v5934_v35 = vsel %vm1936_vm14, %v1942_v12, %v1930_v43  ;;  %v5938_v38 = vmul.f32 %v5930_v60, %v5930_v60  ;;  %v1549_v10 = vmul.f32 %v5920_v32, %v5920_v32 }
 0x241   :  { %v1574_v17 = vsel %vm1573_vm1, %v5773_v37, %v1572_v21  ;;  %v2037_v63 = vmul.f32 %v3560_v45, %v3379_v0  ;;  %v2080_v29 = vmul.f32 %v2074_v41, %v5876_v47  ;;  %v5947_v6 = vand.u32 2147483647, %v5920_v32  ;;  %v3562_v5 = vpop.eup %3561 }
 0x242   :  { %v1949_v26 = vsel %vm1937_vm4, %v1943_v46, %v1931_v16  ;;  %v1836_v1 = vmul.f32 0.080537446, %v5938_v38  ;;  %v5953_v42 = vadd.f32 %v1549_v10, %v5375_v57  ;;  %v5956_v36 = vand.u32 2147483647, %v5922_v4  ;;  %v1194_v10 = vpop.permute.xlu1 %1193 }
 0x243   :  { %v5958_v21 = vadd.f32 %v2171_v24, %v1949_v26  ;;  %v3392_v40 = vadd.f32 -0.3333295, %v2080_v29  ;;  %v5963_v51 = vmax.f32 %v5396_v19, %v5947_v6  ;;  %v8124_v48 = vand.u32 2147483648, %v5669_v62  ;;  %v8127_v26 = vld [vmem:[#allocation8_spill] sm:$0xff] }
 0x244   :  { %3567 = vrsqrt.f32 %v5810_v44  ;;  %vm2013_vm2 = vcmp.gt.f32.partialorder %v5750_v20, 0.41421357  ;;  %v3370_v24 = vadd.f32 -0.13877685, %v1836_v1  ;;  %v8125_v13 = vand.u32 2147483648, %v5773_v37 }
 0x245   :  { %8123 = vst [vmem:[#allocation40_spill] sm:$0xff] %v5958_v21  ;;  %v5970_v57 = vsel %vm1568_vm3, %v8124_v48, %v5867_v27  ;;  %v5983_v50 = vsel %vm2013_vm2, %v2037_v63, %v5750_v20  ;;  %v2092_v62 = vmul.f32 %v3392_v40, %v5876_v47  ;;  %v8126_v27 = vld [vmem:[#allocation29_spill] sm:$0xff]  ;;  %v3564_v56 = vpop.eup %3563  ;;  %v3384_v8 = vadd.f32 -1.0, %v5904_v18  ;;  %v8163_v21 = vld [vmem:[#allocation31_spill] sm:$0xff] }
 0x246   :  { %v5978_v31 = vsel %vm1575_vm5, %v8125_v13, %v1574_v17  ;;  %v1246_v53 = vadd.f32 %v1206_v3, %v8126_v27  ;;  %v1848_v54 = vmul.f32 %v3370_v24, %v5938_v38  ;;  %3569 = vrsqrt.f32 %v5953_v42  ;;  %v8128_v24 = vld [vmem:[#allocation28_spill] sm:$0xff]  ;;  %v8129_v27 = vld [vmem:[#allocation46_spill] sm:$0xff] }
 0x247   :  { %v5992_v37 = vmax.f32 %v5401_v61, %v5956_v36  ;;  %v2098_v11 = vmul.f32 %v2092_v62, %v5862_v58  ;;  %v1759_v43 = vmin.f32 %v5396_v19, %v5947_v6  ;;  %v1760_v47 = vmin.f32 %v5401_v61, %v5956_v36 }
 0x248   :  { %v1765_v2 = vmax.f32 %v5963_v51, 1e-30  ;;  %v6002_v45 = vmul.f32 %v5983_v50, %v5983_v50  ;;  %v1854_v12 = vadd.f32 0.19977711, %v1848_v54  ;;  %v1616_v16 = vmul.f32 %v5724_v14, %v5724_v14 }
 0x249   :  { %v3566_v30 = vpop.eup %3565  ;;  %v1766_v0 = vmax.f32 %v5992_v37, 1e-30  ;;  %v2104_v41 = vadd.f32 %v2098_v11, %v5862_v58  ;;  %vm1903_vm6 = vcmp.gt.f32.partialorder %v5947_v6, %v5396_v19  ;;  %vm2140_vm7 = vcmp.lt.f32.partialorder %v5282_v7, 0.0 }
 0x24a   :  { %v2042_v46 = vmul.f32 %v3566_v30, %v3384_v8  ;;  %3571 = vrcp.f32 %v1765_v2  ;;  %v1860_v17 = vmul.f32 %v1854_v12, %v5938_v38  ;;  %vm2018_vm10 = vcmp.gt.f32.partialorder %v5904_v18, 0.41421357  ;;  %v8130_v30 = vld [vmem:[#allocation26_spill] sm:$0xff] }
 0x24b   :  { %3573 = vrcp.f32 %v1766_v0  ;;  %vm1904_vm13 = vcmp.gt.f32.partialorder %v5956_v36, %v5401_v61  ;;  %v2110_v63 = vadd.f32 0.7853982, %v2104_v41  ;;  %v1579_v29 = vmul.f32 %v3564_v56, %v5696_v9 }
 0x24c   :  { %v6019_v58 = vsel %vm2018_vm10, %v2042_v46, %v5904_v18  ;;  %v1264_v1 = vadd.f32 %v1246_v53, %v8127_v26  ;;  %v6023_v3 = vmul.f32 %v3562_v5, %v5817_v22  ;;  %v3376_v40 = vadd.f32 -0.3333295, %v1860_v17  ;;  %v8148_v18 = vld [vmem:[#allocation17_spill] sm:$0xff] }
 0x24d   :  { %v6027_v48 = vmul.f32 %v6019_v58, %v6019_v58  ;;  %v1240_v13 = vadd.f32 %v1194_v10, %v8128_v24  ;;  %v2116_v62 = vsel %vm2014_vm9, %v2110_v63, %v2104_v41  ;;  %vm2158_vm14 = vcmp.lt.f32.partialorder %v5551_v59, 0.0  ;;  %v8138_v63 = vld [vmem:[#allocation52_spill] sm:$0xff] }
 0x24e   :  { %vm1580_vm1 = vcmp.eq.f32.partialorder %v5696_v9, inf  ;;  %v6035_v56 = vadd.f32 %v1616_v16, %v8129_v27  ;;  %v1494_v53 = vrot.slane %v1264_v1, 2  ;;  %v6037_v5 = vpop.eup %3567  ;;  %v2055_v54 = vmul.f32 0.080537446, %v6002_v45  ;;  %v8132_v16 = vld [vmem:[#allocation11_spill] sm:$0xff] }
 0x24f   :  { %v2128_v8 = vsub.f32 1.5707964, %v2116_v62  ;;  %v1872_v11 = vmul.f32 %v3376_v40, %v5938_v38  ;;  %v2060_v2 = vmul.f32 0.080537446, %v6027_v48  ;;  %v1581_v52 = vsel %vm1580_vm1, %v5696_v9, %v1579_v29 }
 0x250   :  { %vm1582_vm9 = vcmp.eq.f32.partialorder %v5696_v9, 0.0  ;;  %v8131_v12 = vrot.slane %v8130_v30, 2  ;;  %v8133_v41 = vrot.slane %v8132_v16, 2  ;;  %v3570_v10 = vpop.eup %3569  ;;  %v1583_v38 = vand.u32 2147483648, %v5696_v9  ;;  %v8136_v9 = vld [vmem:[#allocation43_spill] sm:$0xff] }
 0x251   :  { %v2134_v26 = vsel %vm2122_vm8, %v2128_v8, %v2116_v62  ;;  %v1878_v40 = vmul.f32 %v1872_v11, %v5930_v60  ;;  %v3390_v29 = vadd.f32 -0.13877685, %v2060_v2  ;;  %3575 = vrsqrt.f32 %v6035_v56  ;;  %v8137_v2 = vld [vmem:[#allocation9_spill] sm:$0xff] }
 0x252   :  { %v1495_v0 = vsel %vm7830_vm0, %v8131_v12, %v1494_v53  ;;  %v1497_v46 = vsel %vm7830_vm0, %v1494_v53, %v8133_v41  ;;  %v2146_v24 = vsub.f32 3.1415927, %v2134_v26  ;;  %v3385_v16 = vadd.f32 -0.13877685, %v2055_v54 }
 0x253   :  { %v6057_v27 = vsub.f32 %v8130_v30, %v1495_v0  ;;  %v6059_v12 = vsub.f32 %v1264_v1, %v1497_v46  ;;  %v6061_v53 = vsel %vm1582_vm9, %v1583_v38, %v1581_v52  ;;  %v1884_v41 = vadd.f32 %v1878_v40, %v5930_v60  ;;  %v8139_v40 = vld [vmem:[#allocation34_spill] sm:$0xff] }
 0x254   :  { %v2072_v62 = vmul.f32 %v3390_v29, %v6027_v48  ;;  %v3572_v8 = vpop.eup %3571  ;;  %vm1920_vm8 = vcmp.lt.f32.partialorder %v8136_v9, 0.0  ;;  %v2152_v11 = vsel %vm2140_vm7, %v2146_v24, %v2134_v26  ;;  %vm1777_vm11 = vcmp.gt.f32.partialorder %v5963_v51, 0.0  ;;  %v8142_v51 = vld [vmem:[#allocation53_spill] sm:$0xff] }
 0x255   :  { %v6070_v30 = vadd.f32 %v1240_v13, %v8137_v2  ;;  %v1614_v1 = vmul.f32 %v6057_v27, %v6057_v27  ;;  %v3574_v54 = vpop.eup %3573  ;;  %v2164_v52 = vsub.f32 0.0, %v2152_v11  ;;  %v1890_v0 = vadd.f32 0.7853982, %v1884_v41 }
 0x256   :  { %v2078_v60 = vadd.f32 0.19977711, %v2072_v62  ;;  %v1586_v46 = vmul.f32 %v3570_v10, %v5953_v42  ;;  %v1783_v17 = vmul.f32 %v3572_v8, %v1759_v43  ;;  %v1784_v7 = vmul.f32 %v3574_v54, %v1760_v47 }
 0x257   :  { %v1615_v13 = vmul.f32 %v6059_v12, %v6059_v12  ;;  %v6084_v26 = vadd.f32 %v1614_v1, %v8138_v63  ;;  %v2170_v38 = vsel %vm2158_vm14, %v2164_v52, %v2152_v11  ;;  %v1896_v10 = vsel %vm1794_vm15, %v1890_v0, %v1884_v41  ;;  %v6113_v11 = vpop.permute.xlu1 %1209 }
 0x258   :  { %vm1938_vm4 = vcmp.lt.f32.partialorder %v8139_v40, 0.0  ;;  %v2084_v43 = vmul.f32 %v2078_v60, %v6027_v48  ;;  %vm1778_vm3 = vcmp.gt.f32.partialorder %v5992_v37, 0.0  ;;  %v6094_v47 = vadd.f32 %v2170_v38, %v5934_v35  ;;  %v8144_v38 = vld [vmem:[#allocation44_spill] sm:$0xff] }
 0x259   :  { %v1908_v29 = vsub.f32 1.5707964, %v1896_v10  ;;  %v6098_v24 = vsel %vm1777_vm11, %v1783_v17, 0.0  ;;  %v6100_v62 = vsel %vm1778_vm3, %v1784_v7, 0.0  ;;  %vm1587_vm5 = vcmp.eq.f32.partialorder %v5953_v42, inf }
 0x25a   :  { %8140 = vst [vmem:[#allocation38_spill] sm:$0xff] %v6094_v47  ;;  %v3396_v59 = vadd.f32 -0.3333295, %v2084_v43  ;;  %3577 = vrsqrt.f32 %v6084_v26  ;;  %v2067_v55 = vmul.f32 %v3385_v16, %v6002_v45  ;;  %vm8141_vm15 = vcmp.gt.f32.partialorder %v5675_v15, %v5340_v34 }
 0x25b   :  { %v1914_v37 = vsel %vm8141_vm15, %v1908_v29, %v1896_v10  ;;  %v1588_v35 = vsel %vm1587_vm5, %v5953_v42, %v1586_v46  ;;  %v1807_v41 = vadd.f32 1.0, %v6098_v24  ;;  %v6111_v8 = vadd.f32 %v1615_v13, %v8142_v51  ;;  %v6120_v52 = vpop.eup %3575  ;;  %v8143_v13 = vld [vmem:[#allocation54_spill] sm:$0xff] }
 0x25c   :  { %v1926_v2 = vsub.f32 3.1415927, %v1914_v37  ;;  %v2096_v1 = vmul.f32 %v3396_v59, %v6027_v48  ;;  %v1808_v54 = vadd.f32 1.0, %v6100_v62  ;;  %v6118_v16 = vand.u32 2147483647, %v6057_v27  ;;  %v1192_v59 = vpop.permute.xlu0 %1191 }
 0x25d   :  { %vm1589_vm7 = vcmp.eq.f32.partialorder %v5953_v42, 0.0  ;;  %v1590_v34 = vand.u32 2147483648, %v5953_v42  ;;  %3579 = vrcp.f32 %v1807_v41  ;;  %v2073_v48 = vadd.f32 0.19977711, %v2067_v55  ;;  %v1214_v55 = vpop.permute.xlu1 %1213 }
 0x25e   :  { %v1932_v0 = vsel %vm1920_vm8, %v1926_v2, %v1914_v37  ;;  %v2102_v60 = vmul.f32 %v2096_v1, %v6019_v58  ;;  %3581 = vrcp.f32 %v1808_v54  ;;  %v6132_v7 = vand.u32 2147483647, %v6059_v12 }
 0x25f   :  { %v1944_v46 = vsub.f32 0.0, %v1932_v0  ;;  %v6128_v17 = vsel %vm1589_vm7, %v1590_v34, %v1588_v35  ;;  %3583 = vrsqrt.f32 %v6111_v8  ;;  %v6137_v63 = vmax.f32 %v8143_v13, %v6118_v16  ;;  %v8146_v34 = vld [vmem:[#allocation30_spill] sm:$0xff] }
 0x260   :  { %v2108_v42 = vadd.f32 %v2102_v60, %v6019_v58  ;;  %vm2124_vm14 = vcmp.gt.f32.partialorder %v6118_v16, %v8143_v13  ;;  %vm2144_vm1 = vcmp.lt.f32.partialorder %v8144_v38, 0.0  ;;  %vm1795_vm9 = vcmp.gt.f32.partialorder %v6098_v24, 0.41421357  ;;  %v8145_v58 = vld [vmem:[#allocation55_spill] sm:$0xff]  ;;  %v8147_v60 = vld [vmem:[#allocation14_spill] sm:$0xff] }
 0x261   :  { %v6146_v10 = vsel %vm1938_vm4, %v1944_v46, %v1932_v0  ;;  %v6151_v43 = vmax.f32 %v8145_v58, %v6132_v7  ;;  %vm2125_vm8 = vcmp.gt.f32.partialorder %v6132_v7, %v8145_v58  ;;  %vm1796_vm11 = vcmp.gt.f32.partialorder %v6100_v62, 0.41421357 }
 0x262   :  { %v2114_v37 = vadd.f32 0.7853982, %v2108_v42  ;;  %v3365_v40 = vadd.f32 -1.0, %v6098_v24  ;;  %v3366_v35 = vadd.f32 -1.0, %v6100_v62  ;;  %v1986_v41 = vmax.f32 %v6137_v63, 1e-30 }
 0x263   :  { %vm1646_vm4 = vcmp.eq.f32.partialorder %v6084_v26, inf  ;;  %vm1648_vm3 = vcmp.eq.f32.partialorder %v6084_v26, 0.0  ;;  %v1987_v51 = vmax.f32 %v6151_v43, 1e-30  ;;  %v2079_v2 = vmul.f32 %v2073_v48, %v6002_v45 }
 0x264   :  { %v3578_v1 = vpop.eup %3577  ;;  %v2120_v54 = vsel %vm2018_vm10, %v2114_v37, %v2108_v42  ;;  %vm2162_vm5 = vcmp.lt.f32.partialorder %v5724_v14, 0.0  ;;  %3585 = vrcp.f32 %v1986_v41  ;;  %v1239_v0 = vadd.f32 %v1192_v59, %v8146_v34 }
 0x265   :  { %v1250_v46 = vadd.f32 %v1214_v55, %v8147_v60  ;;  %v2132_v49 = vsub.f32 1.5707964, %v2120_v54  ;;  %v1645_v29 = vmul.f32 %v3578_v1, %v6084_v26  ;;  %3587 = vrcp.f32 %v1987_v51 }
 0x266   :  { %v3391_v9 = vadd.f32 -0.3333295, %v2079_v2  ;;  %v1649_v15 = vand.u32 2147483648, %v6084_v26  ;;  %vm1653_vm15 = vcmp.eq.f32.partialorder %v6111_v8, inf  ;;  %vm1655_vm7 = vcmp.eq.f32.partialorder %v6111_v8, 0.0 }
 0x267   :  { %v1257_v48 = vadd.f32 %v1239_v0, %v8148_v18  ;;  %v3580_v42 = vpop.eup %3579  ;;  %v2138_v59 = vsel %vm2126_vm12, %v2132_v49, %v2120_v54  ;;  %v1647_v55 = vsel %vm1646_vm4, %v6084_v26, %v1645_v29  ;;  %v1656_v37 = vand.u32 2147483648, %v6111_v8  ;;  %v8150_v29 = vld [vmem:[#allocation21_spill] sm:$0xff] }
 0x268   :  { %v2091_v41 = vmul.f32 %v3391_v9, %v6002_v45  ;;  %v3582_v51 = vpop.eup %3581  ;;  %v2150_v2 = vsub.f32 3.1415927, %v2138_v59  ;;  %v1819_v1 = vmul.f32 %v3580_v42, %v3365_v40  ;;  %v1650_v34 = vsel %vm1648_vm3, %v1649_v15, %v1647_v55 }
 0x269   :  { %vm1998_vm10 = vcmp.gt.f32.partialorder %v6137_v63, 0.0  ;;  %v1483_v0 = vrot.slane %v1257_v48, 2  ;;  %v3584_v60 = vpop.eup %3583  ;;  %v1820_v23 = vmul.f32 %v3582_v51, %v3366_v35  ;;  %v6187_v39 = vadd.f32 %v1650_v34, %v6061_v53 }
 0x26a   :  { %v2097_v49 = vmul.f32 %v2091_v41, %v5983_v50  ;;  %v6191_v54 = vadd.f32 %v1250_v46, %v8150_v29  ;;  %vm1632_vm12 = vcmp.eq.f32.partialorder %v5817_v22, inf  ;;  %v2156_v45 = vsel %vm2144_vm1, %v2150_v2, %v2138_v59 }
 0x26b   :  { %8149 = vst [vmem:[#allocation41_spill] sm:$0xff] %v6187_v39  ;;  %v6199_v26 = vsel %vm1795_vm9, %v1819_v1, %v6098_v24  ;;  %v1652_v15 = vmul.f32 %v3584_v60, %v6111_v8  ;;  %v8151_v53 = vrot.slane %v6070_v30, 2  ;;  %v2168_v40 = vsub.f32 0.0, %v2156_v45  ;;  %v8152_v1 = vld [vmem:[#allocation39_spill] sm:$0xff] }
 0x26c   :  { %v6208_v35 = vsel %vm1796_vm11, %v1820_v23, %v6100_v62  ;;  %v6212_v38 = vmul.f32 %v6199_v26, %v6199_v26  ;;  %v2103_v46 = vadd.f32 %v2097_v49, %v5983_v50  ;;  %vm1999_vm1 = vcmp.gt.f32.partialorder %v6151_v43, 0.0  ;;  %v8159_v43 = vld [vmem:[#allocation63_spill] sm:$0xff] }
 0x26d   :  { %v1485_v9 = vsel %vm7830_vm0, %v1483_v0, %v8151_v53  ;;  %v6217_v18 = vmul.f32 %v6208_v35, %v6208_v35  ;;  %v1654_v42 = vsel %vm1653_vm15, %v6111_v8, %v1652_v15  ;;  %v6227_v55 = vsel %vm2162_vm5, %v2168_v40, %v2156_v45 }
 0x26e   :  { %v6223_v59 = vsub.f32 %v1257_v48, %v1485_v9  ;;  %v1837_v41 = vmul.f32 0.080537446, %v6212_v38  ;;  %v1657_v50 = vsel %vm1655_vm7, %v1656_v37, %v1654_v42  ;;  %v2109_v51 = vadd.f32 0.7853982, %v2103_v46  ;;  %v3586_v2 = vpop.eup %3585  ;;  %v8156_v9 = vld [vmem:[#allocation59_spill] sm:$0xff]  ;;  %v8157_v42 = vld [vmem:[#allocation58_spill] sm:$0xff] }
 0x26f   :  { %vm2139_vm4 = vcmp.lt.f32.partialorder %v8152_v1, 0.0  ;;  %vm1634_vm3 = vcmp.eq.f32.partialorder %v5817_v22, 0.0  ;;  %v1838_v34 = vmul.f32 0.080537446, %v6217_v18  ;;  %v6236_v48 = vadd.f32 %v1657_v50, %v6128_v17  ;;  %v3588_v60 = vpop.eup %3587 }
 0x270   :  { %v1677_v14 = vmul.f32 %v6223_v59, %v6223_v59  ;;  %v6241_v0 = vand.u32 2147483647, %v6223_v59  ;;  %v3371_v8 = vadd.f32 -0.13877685, %v1837_v41  ;;  %v8154_v37 = vmin.f32 %v8143_v13, %v6118_v16 }
 0x271   :  { %8153 = vst [vmem:[#allocation16_spill] sm:$0xff] %v6236_v48  ;;  %v2115_v49 = vsel %vm2013_vm2, %v2109_v51, %v2103_v46  ;;  %v7825_v29 = vrot.slane %v6191_v54, 2  ;;  %vm1625_vm5 = vcmp.eq.f32.partialorder %v5810_v44, inf  ;;  %v3372_v17 = vadd.f32 -0.13877685, %v1838_v34  ;;  %v8158_v46 = vld [vmem:[#allocation60_spill] sm:$0xff] }
 0x272   :  { %v2004_v23 = vmul.f32 %v3586_v2, %v8154_v37  ;;  %v8155_v45 = vmin.f32 %v8145_v58, %v6132_v7  ;;  %v2127_v53 = vsub.f32 1.5707964, %v2115_v49  ;;  %v6254_v40 = vadd.f32 %v1677_v14, %v8156_v9 }
 0x273   :  { %vm2157_vm15 = vcmp.lt.f32.partialorder %v8157_v42, 0.0  ;;  %v1849_v41 = vmul.f32 %v3371_v8, %v6212_v38  ;;  %v6264_v50 = vmax.f32 %v8158_v46, %v6241_v0  ;;  %v6270_v2 = vadd.f32 %v5807_v25, %v5978_v31  ;;  %v1196_v31 = vpop.permute.xlu0 %1195 }
 0x274   :  { %v2005_v15 = vmul.f32 %v3588_v60, %v8155_v45  ;;  %v6260_v20 = vsel %vm1998_vm10, %v2004_v23, 0.0  ;;  %v1635_v34 = vand.u32 2147483648, %v5817_v22  ;;  %v1850_v14 = vmul.f32 %v3372_v17, %v6217_v18  ;;  %v8160_v45 = vld [vmem:[#allocation42_spill] sm:$0xff] }
 0x275   :  { %v1624_v60 = vmul.f32 %v6037_v5, %v5810_v44  ;;  %v1633_v8 = vsel %vm1632_vm12, %v5817_v22, %v6023_v3  ;;  %v1855_v37 = vadd.f32 0.19977711, %v1849_v41  ;;  %v2028_v25 = vadd.f32 1.0, %v6260_v20 }
 0x276   :  { %v6276_v63 = vsel %vm1999_vm1, %v2005_v15, 0.0  ;;  %vm1627_vm2 = vcmp.eq.f32.partialorder %v5810_v44, 0.0  ;;  %v1856_v23 = vadd.f32 0.19977711, %v1850_v14  ;;  %vm8161_vm7 = vcmp.gt.f32.partialorder %v8159_v43, %v8160_v45  ;;  %v8162_v14 = vld [vmem:[#allocation13_spill] sm:$0xff] }
 0x277   :  { %v2029_v17 = vadd.f32 1.0, %v6276_v63  ;;  %v2133_v15 = vsel %vm8161_vm7, %v2127_v53, %v2115_v49  ;;  %3589 = vrsqrt.f32 %v6254_v40  ;;  %v1861_v5 = vmul.f32 %v1855_v37, %v6212_v38 }
 0x278   :  { %3591 = vrcp.f32 %v2028_v25  ;;  %v2145_v9 = vsub.f32 3.1415927, %v2133_v15  ;;  %v6295_v3 = vsub.f32 %v6191_v54, %v7825_v29  ;;  %v1862_v41 = vmul.f32 %v1856_v23, %v6217_v18 }
 0x279   :  { %3593 = vrcp.f32 %v2029_v17  ;;  %v1248_v51 = vadd.f32 %v6113_v11, %v8162_v14  ;;  %v1241_v43 = vadd.f32 %v1196_v31, %v8163_v21  ;;  %v1636_v49 = vsel %vm1634_vm3, %v1635_v34, %v1633_v8  ;;  %v8164_v31 = vld [vmem:[#allocation24_spill] sm:$0xff] }
 0x27a   :  { %v3377_v53 = vadd.f32 -0.3333295, %v1861_v5  ;;  %v2151_v37 = vsel %vm2139_vm4, %v2145_v9, %v2133_v15  ;;  %v2205_v25 = vmax.f32 %v6264_v50, 1e-30  ;;  %v1550_v45 = vmul.f32 %v5922_v4, %v5922_v4  ;;  %v1212_v15 = vpop.permute.xlu0 %1211  ;;  %v8167_v14 = vld [vmem:[#allocation12_spill] sm:$0xff] }
 0x27b   :  { %v3378_v29 = vadd.f32 -0.3333295, %v1862_v41  ;;  %v2163_v23 = vsub.f32 0.0, %v2151_v37  ;;  %v1626_v21 = vsel %vm1625_vm5, %v5810_v44, %v1624_v60  ;;  %v6315_v11 = vand.u32 2147483647, %v6295_v3 }
 0x27c   :  { %v1873_v22 = vmul.f32 %v3377_v53, %v6212_v38  ;;  %3595 = vrcp.f32 %v2205_v25  ;;  %v6318_v1 = vadd.f32 %v1636_v49, %v5970_v57  ;;  %v1259_v17 = vadd.f32 %v1241_v43, %v8164_v31  ;;  %v8165_v38 = vld [vmem:[#allocation68_spill] sm:$0xff] }
 0x27d   :  { %v1874_v34 = vmul.f32 %v3378_v29, %v6217_v18  ;;  %v2169_v8 = vsel %vm2157_vm15, %v2163_v23, %v2151_v37  ;;  %v6330_v9 = vmax.f32 %v8165_v38, %v6315_v11  ;;  %v2204_v57 = vmin.f32 %v8165_v38, %v6315_v11  ;;  %v8166_v29 = vld [vmem:[#allocation49_spill] sm:$0xff]  ;;  %v8170_v23 = vld [vmem:[#allocation47_spill] sm:$0xff] }
 0x27e   :  { %v1879_v5 = vmul.f32 %v1873_v22, %v6199_v26  ;;  %v6326_v60 = vadd.f32 %v2169_v8, %v5888_v28  ;;  %v6336_v18 = vmul.f32 %v6120_v52, %v6035_v56  ;;  %v6339_v42 = vadd.f32 %v1550_v45, %v8166_v29  ;;  %v8169_v52 = vld [vmem:[#allocation32_spill] sm:$0xff] }
 0x27f   :  { %v1880_v41 = vmul.f32 %v1874_v34, %v6208_v35  ;;  %v6343_v43 = vadd.f32 %v1248_v51, %v8167_v14  ;;  %v8168_v49 = vand.u32 2147483648, %v5810_v44  ;;  %v2210_v37 = vmax.f32 %v6330_v9, 1e-30  ;;  %v8171_v44 = vld [vmem:[#allocation48_spill] sm:$0xff] }
 0x280   :  { %v1885_v28 = vadd.f32 %v1879_v5, %v6199_v26  ;;  %v6354_v25 = vadd.f32 %v1212_v15, %v8169_v52  ;;  %vm1921_vm12 = vcmp.lt.f32.partialorder %v8170_v23, 0.0  ;;  %v3382_v51 = vadd.f32 -1.0, %v6260_v20 }
 0x281   :  { %v6350_v53 = vsel %vm1627_vm2, %v8168_v49, %v1626_v21  ;;  %v3590_v45 = vpop.eup %3589  ;;  %v1886_v22 = vadd.f32 %v1880_v41, %v6208_v35  ;;  %v1486_v26 = vrot.slane %v1259_v17, 2  ;;  %vm1922_vm4 = vcmp.lt.f32.partialorder %v8171_v44, 0.0 }
 0x282   :  { %v3592_v34 = vpop.eup %3591  ;;  %v1891_v21 = vadd.f32 0.7853982, %v1885_v28  ;;  %vm2016_vm3 = vcmp.gt.f32.partialorder %v6260_v20, 0.41421357  ;;  %v3383_v8 = vadd.f32 -1.0, %v6276_v63  ;;  %3597 = vrcp.f32 %v2210_v37 }
 0x283   :  { %v3594_v31 = vpop.eup %3593  ;;  %v1892_v15 = vadd.f32 0.7853982, %v1886_v22  ;;  %vm2017_vm5 = vcmp.gt.f32.partialorder %v6276_v63, 0.41421357  ;;  %v2040_v35 = vmul.f32 %v3592_v34, %v3382_v51  ;;  %v8172_v5 = vrot.slane %v6070_v30, 2 }
 0x284   :  { %v1897_v41 = vsel %vm1795_vm9, %v1891_v21, %v1885_v28  ;;  %vm1939_vm15 = vcmp.lt.f32.partialorder %v5920_v32, 0.0  ;;  %v2041_v14 = vmul.f32 %v3594_v31, %v3383_v8  ;;  %vm1691_vm2 = vcmp.eq.f32.partialorder %v6254_v40, inf }
 0x285   :  { %v1487_v29 = vsel %vm7830_vm0, %v8172_v5, %v1486_v26  ;;  %v1898_v37 = vsel %vm1796_vm11, %v1892_v15, %v1886_v22  ;;  %v1909_v52 = vsub.f32 1.5707964, %v1897_v41  ;;  %vm1940_vm7 = vcmp.lt.f32.partialorder %v5922_v4, 0.0  ;;  %v8179_v4 = vld [vmem:[#allocation70_spill] sm:$0xff] }
 0x286   :  { %v6373_v49 = vsub.f32 %v6070_v30, %v1487_v29  ;;  %v6381_v51 = vsel %vm2016_vm3, %v2040_v35, %v6260_v20  ;;  %vm2217_vm9 = vcmp.gt.f32.partialorder %v6264_v50, 0.0  ;;  %v3596_v24 = vpop.eup %3595  ;;  %v1910_v28 = vsub.f32 1.5707964, %v1898_v37 }
 0x287   :  { %v6387_v30 = vsel %vm2017_vm5, %v2041_v14, %v6276_v63  ;;  %v2052_v62 = vmul.f32 %v6381_v51, %v6381_v51  ;;  %v1690_v22 = vmul.f32 %v3590_v45, %v6254_v40  ;;  %v1915_v34 = vsel %vm1903_vm6, %v1909_v52, %v1897_v41 }
 0x288   :  { %8173 = vst [vmem:[#allocation19_spill] sm:$0xff] %v6373_v49  ;;  %v2053_v21 = vmul.f32 %v6387_v30, %v6387_v30  ;;  %v8174_v8 = vmin.f32 %v8158_v46, %v6241_v0  ;;  %v6400_v15 = vsub.f32 %v1259_v17, %v1486_v26  ;;  %v1916_v35 = vsel %vm1904_vm13, %v1910_v28, %v1898_v37 }
 0x289   :  { %v1927_v5 = vsub.f32 3.1415927, %v1915_v34  ;;  %v2058_v29 = vmul.f32 0.080537446, %v2052_v62  ;;  %v1678_v45 = vmul.f32 %v6373_v49, %v6373_v49  ;;  %v1928_v19 = vsub.f32 3.1415927, %v1916_v35 }
 0x28a   :  { %v2223_v31 = vmul.f32 %v3596_v24, %v8174_v8  ;;  %8175 = vst [vmem:[#allocation27_spill] sm:$0xff] %v6400_v15  ;;  %v2059_v6 = vmul.f32 0.080537446, %v2053_v21  ;;  %v1694_v41 = vand.u32 2147483648, %v6254_v40  ;;  %v1692_v61 = vsel %vm1691_vm2, %v6254_v40, %v1690_v22 }
 0x28b   :  { %v1933_v17 = vsel %vm1921_vm12, %v1927_v5, %v1915_v34  ;;  %v3388_v26 = vadd.f32 -0.13877685, %v2058_v29  ;;  %v1682_v36 = vmul.f32 %v6295_v3, %v6295_v3  ;;  %v1934_v37 = vsel %vm1922_vm4, %v1928_v19, %v1916_v35  ;;  %v8176_v34 = vld [vmem:[#allocation69_spill] sm:$0xff] }
 0x28c   :  { %v6410_v14 = vsel %vm2217_vm9, %v2223_v31, 0.0  ;;  %v1945_v52 = vsub.f32 0.0, %v1933_v17  ;;  %v3389_v24 = vadd.f32 -0.13877685, %v2059_v6  ;;  %v3598_v28 = vpop.eup %3597  ;;  %v1946_v8 = vsub.f32 0.0, %v1934_v37  ;;  %v8177_v6 = vld [vmem:[#allocation61_spill] sm:$0xff] }
 0x28d   :  { %v2247_v50 = vadd.f32 1.0, %v6410_v14  ;;  %v2070_v31 = vmul.f32 %v3388_v26, %v2052_v62  ;;  %v1679_v23 = vmul.f32 %v6400_v15, %v6400_v15  ;;  %v6425_v5 = vadd.f32 %v1678_v45, %v8176_v34 }
 0x28e   :  { %v6429_v22 = vsel %vm1939_vm15, %v1945_v52, %v1933_v17  ;;  %v2071_v29 = vmul.f32 %v3389_v24, %v2053_v21  ;;  %v2228_v44 = vmul.f32 %v3598_v28, %v2204_v57  ;;  %v1952_v35 = vsel %vm1940_vm7, %v1946_v8, %v1934_v37 }
 0x28f   :  { %3599 = vrcp.f32 %v2247_v50  ;;  %v2076_v19 = vadd.f32 0.19977711, %v2070_v31  ;;  %v6437_v26 = vadd.f32 %v1682_v36, %v8177_v6  ;;  %vm2222_vm6 = vcmp.gt.f32.partialorder %v6330_v9, 0.0  ;;  %v8180_v50 = vld [vmem:[#allocation37_spill] sm:$0xff]  ;;  %v8181_v31 = vld [vmem:[#allocation23_spill] sm:$0xff]  ;;  %v8184_v6 = vld [vmem:[#allocation22_spill] sm:$0xff] }
 0x290   :  { %v6441_v45 = vadd.f32 %v6227_v55, %v1952_v35  ;;  %v2077_v32 = vadd.f32 0.19977711, %v2071_v29  ;;  %vm1693_vm13 = vcmp.eq.f32.partialorder %v6254_v40, 0.0  ;;  %v6444_v17 = vsel %vm2222_vm6, %v2228_v44, 0.0 }
 0x291   :  { %3601 = vrsqrt.f32 %v6339_v42  ;;  %v2082_v57 = vmul.f32 %v2076_v19, %v2052_v62  ;;  %v1695_v52 = vsel %vm1693_vm13, %v1694_v41, %v1692_v61  ;;  %v6448_v37 = vadd.f32 %v1679_v23, %v8179_v4  ;;  %v8183_v19 = vld [vmem:[#allocation18_spill] sm:$0xff] }
 0x292   :  { %8178 = vst [vmem:[#allocation10_spill] sm:$0xff] %v6441_v45  ;;  %v2083_v24 = vmul.f32 %v2077_v32, %v2053_v21  ;;  %v1665_v36 = vadd.f32 %v6350_v53, %v5798_v33  ;;  %v2252_v9 = vadd.f32 1.0, %v6444_v17  ;;  %3603 = vrsqrt.f32 %v6425_v5 }
 0x293   :  { %v3394_v55 = vadd.f32 -0.3333295, %v2082_v57  ;;  %v1498_v40 = vrot.slane %v6343_v43, 2  ;;  %3605 = vrsqrt.f32 %v6437_v26  ;;  %v6458_v28 = vadd.f32 %v6354_v25, %v8180_v50  ;;  %v8185_v57 = vld [vmem:[#allocation72_spill] sm:$0xff]  ;;  %v8186_v50 = vld [vmem:[#allocation50_spill] sm:$0xff] }
 0x294   :  { %v3395_v41 = vadd.f32 -0.3333295, %v2083_v24  ;;  %v6460_v61 = vadd.f32 %v1695_v52, %v1665_v36  ;;  %vm7827_vm11 = vcmp.gt.f32.partialorder %v6410_v14, 0.41421357  ;;  %3607 = vrcp.f32 %v2252_v9 }
 0x295   :  { %v2094_v33 = vmul.f32 %v3394_v55, %v2052_v62  ;;  %v3397_v53 = vadd.f32 -1.0, %v6410_v14  ;;  %3609 = vrsqrt.f32 %v6448_v37  ;;  %v6466_v8 = vand.u32 2147483647, %v6373_v49  ;;  %v8182_v62 = vld [vmem:[#allocation71_spill] sm:$0xff] }
 0x296   :  { %vm2462_vm12 = vcmp.lt.s32.totalorder %v8181_v31, 16  ;;  %v2095_v23 = vmul.f32 %v3395_v41, %v2053_v21  ;;  %v3402_v25 = vadd.f32 -1.0, %v6444_v17  ;;  %vm1698_vm4 = vcmp.eq.f32.partialorder %v6425_v5, inf }
 0x297   :  { %v6472_v34 = vand.u32 2147483647, %v6400_v15  ;;  %v2100_v29 = vmul.f32 %v2094_v33, %v6381_v51  ;;  %vm1700_vm15 = vcmp.eq.f32.partialorder %v6425_v5, 0.0  ;;  %v6478_v44 = vmax.f32 %v8182_v62, %v6466_v8 }
 0x298   :  { %vm2457_vm7 = vcmp.ge.s32.totalorder %v8183_v19, 0  ;;  %vm2466_vm9 = vcmp.ge.s32.totalorder %v8184_v6, 0  ;;  %v2101_v32 = vmul.f32 %v2095_v23, %v6387_v30  ;;  %vm2240_vm6 = vcmp.gt.f32.partialorder %v6444_v17, 0.41421357 }
 0x299   :  { %v3600_v21 = vpop.eup %3599  ;;  %v6490_v52 = vmax.f32 %v8185_v57, %v6472_v34  ;;  %v2106_v24 = vadd.f32 %v2100_v29, %v6381_v51  ;;  %v1701_v9 = vand.u32 2147483648, %v6425_v5  ;;  %v2206_v55 = vmax.f32 %v6478_v44, 1e-30  ;;  %v8187_v51 = vld [vmem:[#allocation51_spill] sm:$0xff] }
 0x29a   :  { %v2259_v36 = vmul.f32 %v3600_v21, %v3397_v53  ;;  %v2107_v41 = vadd.f32 %v2101_v32, %v6387_v30  ;;  %vm1705_vm1 = vcmp.eq.f32.partialorder %v6448_v37, inf  ;;  %v1499_v23 = vrot.slane %v6458_v28, 2 }
 0x29b   :  { %v2207_v33 = vmax.f32 %v6490_v52, 1e-30  ;;  %v6504_v4 = vpop.eup %3601  ;;  %vm2470_vm13 = vcmp.lt.s32.totalorder %v8184_v6, 16  ;;  %v2112_v53 = vadd.f32 0.7853982, %v2106_v24  ;;  %vm1707_vm2 = vcmp.eq.f32.partialorder %v6448_v37, 0.0 }
 0x29c   :  { %v6511_v29 = vsel %vm7827_vm11, %v2259_v36, %v6410_v14  ;;  %3611 = vrcp.f32 %v2206_v55  ;;  %v3604_v30 = vpop.eup %3603  ;;  %v2113_v21 = vadd.f32 0.7853982, %v2107_v41  ;;  %v1500_v35 = vsel %vm7830_vm0, %v1498_v40, %v1499_v23 }
 0x29d   :  { %v6516_v32 = vmul.f32 %v6511_v29, %v6511_v29  ;;  %3613 = vrcp.f32 %v2207_v33  ;;  %v6519_v47 = vpop.eup %3605  ;;  %v2118_v15 = vsel %vm2016_vm3, %v2112_v53, %v2106_v24  ;;  %vm2160_vm11 = vcmp.lt.f32.partialorder %v6057_v27, 0.0 }
 0x29e   :  { %v1697_v36 = vmul.f32 %v3604_v30, %v6425_v5  ;;  %v8188_v55 = vrot.slane %v6191_v54, 2  ;;  %v6529_v45 = vsub.f32 %v6343_v43, %v1500_v35  ;;  %v3608_v48 = vpop.eup %3607  ;;  %v2119_v40 = vsel %vm2017_vm5, %v2113_v21, %v2107_v41  ;;  %vm6553_vm5 = vmand %vm2462_vm12, %vm2466_vm9 }
 0x29f   :  { %v2130_v33 = vsub.f32 1.5707964, %v2118_v15  ;;  %vm2161_vm10 = vcmp.lt.f32.partialorder %v6059_v12, 0.0  ;;  %v2277_v20 = vmul.f32 0.080537446, %v6516_v32  ;;  %v1708_v24 = vand.u32 2147483648, %v6448_v37  ;;  %v3610_v53 = vpop.eup %3609 }
 0x2a0   :  { %v1502_v49 = vsel %vm7830_vm0, %v1499_v23, %v8188_v55  ;;  %v2131_v30 = vsub.f32 1.5707964, %v2119_v40  ;;  %v2264_v39 = vmul.f32 %v3608_v48, %v3402_v25  ;;  %v1699_v54 = vsel %vm1698_vm4, %v6425_v5, %v1697_v36 }
 0x2a1   :  { %vm2218_vm3 = vcmp.gt.f32.partialorder %v6478_v44, 0.0  ;;  %v6541_v43 = vsub.f32 %v6458_v28, %v1502_v49  ;;  %v2136_v63 = vsel %vm2124_vm14, %v2130_v33, %v2118_v15  ;;  %v3403_v35 = vadd.f32 -0.13877685, %v2277_v20  ;;  %vm6580_vm14 = vmand %vm2457_vm7, %vm2466_vm9  ;;  %v8197_v20 = vld [vmem:[#allocation73_spill] sm:$0xff] }
 0x2a2   :  { %v1702_v41 = vsel %vm1700_vm15, %v1701_v9, %v1699_v54  ;;  %v1704_v23 = vmul.f32 %v3610_v53, %v6448_v37  ;;  %vm1660_vm4 = vcmp.eq.f32.partialorder %v6035_v56, inf  ;;  %v2137_v16 = vsel %vm2125_vm8, %v2131_v30, %v2119_v40 }
 0x2a3   :  { %v2148_v13 = vsub.f32 3.1415927, %v2136_v63  ;;  %v6564_v49 = vsel %vm2240_vm6, %v2264_v39, %v6444_v17  ;;  %v1680_v15 = vmul.f32 %v6529_v45, %v6529_v45  ;;  %v2149_v5 = vsub.f32 3.1415927, %v2137_v16 }
 0x2a4   :  { %v2289_v28 = vmul.f32 %v3403_v35, %v6516_v32  ;;  %v6571_v31 = vmul.f32 %v6564_v49, %v6564_v49  ;;  %v1706_v7 = vsel %vm1705_vm1, %v6448_v37, %v1704_v23  ;;  %vm8193_vm8 = vcmp.lt.f32.partialorder %v8186_v50, 0.0  ;;  %vm6594_vm1 = vmand %vm6553_vm5, %vm2470_vm13 }
 0x2a5   :  { %v2154_v39 = vsel %vm8193_vm8, %v2148_v13, %v2136_v63  ;;  %v1709_v25 = vsel %vm1707_vm2, %v1708_v24, %v1706_v7  ;;  %v1732_v9 = vadd.f32 %v1702_v41, %v6318_v1  ;;  %vm2219_vm12 = vcmp.gt.f32.partialorder %v6490_v52, 0.0  ;;  %vm6618_vm2 = vmand %vm6580_vm14, %vm2470_vm13 }
 0x2a6   :  { %vm1662_vm15 = vcmp.eq.f32.partialorder %v6035_v56, 0.0  ;;  %vm8196_vm7 = vcmp.lt.f32.partialorder %v8187_v51, 0.0  ;;  %v2166_v21 = vsub.f32 0.0, %v2154_v39  ;;  %v2295_v37 = vadd.f32 0.19977711, %v2289_v28  ;;  %v3612_v1 = vpop.eup %3611 }
 0x2a7   :  { %v2155_v50 = vsel %vm8196_vm7, %v2149_v5, %v2137_v16  ;;  %v2282_v36 = vmul.f32 0.080537446, %v6571_v31  ;;  %v1733_v40 = vadd.f32 %v1709_v25, %v6270_v2  ;;  %v1681_v33 = vmul.f32 %v6541_v43, %v6541_v43  ;;  %v3614_v53 = vpop.eup %3613  ;;  %v8204_v25 = vld [vmem:[#allocation74_spill] sm:$0xff] }
 0x2a8   :  { %v2167_v55 = vsub.f32 0.0, %v2155_v50  ;;  %v6606_v24 = vadd.f32 %v1680_v15, %v8197_v20  ;;  %v2172_v30 = vsel %vm2160_vm11, %v2166_v21, %v2154_v39  ;;  %v2301_v51 = vmul.f32 %v2295_v37, %v6516_v32  ;;  %vm6638_vm11 = vmand %vm2466_vm9, %vm2470_vm13 }
 0x2a9   :  { %v3408_v54 = vadd.f32 -0.13877685, %v2282_v36  ;;  %v8198_v63 = vmin.f32 %v8182_v62, %v6466_v8  ;;  %v6625_v27 = vadd.f32 %v2172_v30, %v6146_v10  ;;  %v8201_v23 = vmin.f32 %v8185_v57, %v6472_v34  ;;  %v8206_v30 = vld [vmem:[#allocation33_spill] sm:$0xff] }
 0x2aa   :  { %v2173_v41 = vsel %vm2161_vm10, %v2167_v55, %v2155_v50  ;;  %v6632_v16 = vsel %vm6594_vm1, %v1733_v40, 0.0  ;;  %v3409_v10 = vadd.f32 -0.3333295, %v2301_v51  ;;  %v1663_v6 = vand.u32 2147483648, %v6035_v56  ;;  %v8205_v40 = vld [vmem:[#allocation56_spill] sm:$0xff] }
 0x2ab   :  { %v2224_v35 = vmul.f32 %v3612_v1, %v8198_v63  ;;  %v2225_v48 = vmul.f32 %v3614_v53, %v8201_v23  ;;  %v6643_v12 = vadd.f32 %v2173_v41, %v6429_v22  ;;  %v2294_v15 = vmul.f32 %v3408_v54, %v6571_v31  ;;  %2552 = vrot.lane.b32.xlu1 %v6632_v16, %s3716_s23 }
 0x2ac   :  { %2493 = vrot.lane.b32.xlu0 %v6632_v16, %s3712_s20  ;;  %v1593_v22 = vmul.f32 %v6504_v4, %v6339_v42  ;;  %v1661_v7 = vsel %vm1660_vm4, %v6035_v56, %v6336_v18  ;;  %v2313_v58 = vmul.f32 %v3409_v10, %v6516_v32  ;;  %v6668_v50 = vadd.f32 %v1681_v33, %v8204_v25 }
 0x2ad   :  { %v6648_v5 = vsel %vm2218_vm3, %v2224_v35, 0.0  ;;  %v6659_v28 = vsel %vm2219_vm12, %v2225_v48, 0.0  ;;  %v2300_v39 = vadd.f32 0.19977711, %v2294_v15  ;;  %v6673_v4 = vsel %vm6618_vm2, %v6460_v61, 0.0 }
 0x2ae   :  { %v2248_v44 = vadd.f32 1.0, %v6648_v5  ;;  %v2249_v52 = vadd.f32 1.0, %v6659_v28  ;;  %v6678_v21 = vsel %vm6638_vm11, %v1732_v9, 0.0  ;;  %vm1594_vm10 = vcmp.eq.f32.partialorder %v6339_v42, inf }
 0x2af   :  { %v2319_v18 = vmul.f32 %v2313_v58, %v6511_v29  ;;  %v2306_v32 = vmul.f32 %v2300_v39, %v6571_v31  ;;  %2491 = vrot.lane.b32.xlu1 %v6678_v21, %s3712_s20  ;;  %v6690_v61 = vsel %vm1662_vm15, %v1663_v6, %v1661_v7  ;;  %v6693_v9 = vsel %vm1594_vm10, %v6339_v42, %v1593_v22  ;;  %v8209_v7 = vld [vmem:[#allocation57_spill] sm:$0xff] }
 0x2b0   :  { %3615 = vrcp.f32 %v2248_v44  ;;  %2489 = vrot.lane.b32.xlu0 %v6673_v4, %s3712_s20  ;;  %v1597_v37 = vand.u32 2147483648, %v6339_v42  ;;  %v6699_v55 = vand.u32 2147483647, %v6529_v45  ;;  %vm2361_vm9 = vcmp.lt.f32.partialorder %v8205_v40, 0.0 }
 0x2b1   :  { %3617 = vrsqrt.f32 %v6606_v24  ;;  %v2325_v36 = vadd.f32 %v2319_v18, %v6511_v29  ;;  %v3414_v1 = vadd.f32 -0.3333295, %v2306_v32  ;;  %v1725_v56 = vmul.f32 %v6519_v47, %v6437_v26  ;;  %v8207_v47 = vld [vmem:[#allocation25_spill] sm:$0xff] }
 0x2b2   :  { %3619 = vrcp.f32 %v2249_v52  ;;  %vm1726_vm13 = vcmp.eq.f32.partialorder %v6437_v26, inf  ;;  %v6706_v33 = vand.u32 2147483647, %v6541_v43  ;;  %v6709_v20 = vrot.slane %v6632_v16, 1 }
 0x2b3   :  { %3621 = vrsqrt.f32 %v6668_v50  ;;  %v2331_v29 = vadd.f32 0.7853982, %v2325_v36  ;;  %v2318_v53 = vmul.f32 %v3414_v1, %v6571_v31  ;;  %v6714_v51 = vmax.f32 %v8206_v30, %v6699_v55 }
 0x2b4   :  { %v2202_v54 = vmin.f32 %v8206_v30, %v6699_v55  ;;  %v6720_v63 = vmax.f32 %v8207_v47, %v6706_v33  ;;  %v2203_v35 = vmin.f32 %v8207_v47, %v6706_v33  ;;  %vm2346_vm3 = vcmp.gt.f32.partialorder %v6699_v55, %v8206_v30  ;;  %2763 = vrot.lane.b32.xlu0 %v6709_v20, %s3716_s23 }
 0x2b5   :  { %vm2347_vm5 = vcmp.gt.f32.partialorder %v6706_v33, %v8207_v47  ;;  %vm8208_vm4 = vcmp.gt.f32.partialorder %v6410_v14, 0.41421357  ;;  %vm2379_vm14 = vcmp.lt.f32.partialorder %v6223_v59, 0.0  ;;  %v2324_v41 = vmul.f32 %v2318_v53, %v6564_v49  ;;  %2733 = vrot.lane.b32.xlu1 %v6709_v20, %s3712_s20 }
 0x2b6   :  { %v2337_v31 = vsel %vm8208_vm4, %v2331_v29, %v2325_v36  ;;  %v2208_v23 = vmax.f32 %v6714_v51, 1e-30  ;;  %v6738_v48 = vrot.slane %v6673_v4, 7  ;;  %v6743_v15 = vsel %vm1726_vm13, %v6437_v26, %v1725_v56 }
 0x2b7   :  { %v2349_v10 = vsub.f32 1.5707964, %v2337_v31  ;;  %vm2236_vm8 = vcmp.gt.f32.partialorder %v6648_v5, 0.41421357  ;;  %v2209_v14 = vmax.f32 %v6720_v63, 1e-30  ;;  %v2330_v6 = vadd.f32 %v2324_v41, %v6564_v49 }
 0x2b8   :  { %vm2237_vm12 = vcmp.gt.f32.partialorder %v6659_v28, 0.41421357  ;;  %v3398_v22 = vadd.f32 -1.0, %v6648_v5  ;;  %3623 = vrcp.f32 %v2208_v23  ;;  %vm2366_vm15 = vcmp.lt.f32.partialorder %v8209_v7, 0.0  ;;  %2550 = vrot.lane.b32.xlu0 %v6678_v21, %s3716_s23 }
 0x2b9   :  { %vm8210_vm7 = vcmp.gt.f32.partialorder %v6241_v0, %v8158_v46  ;;  %v3399_v39 = vadd.f32 -1.0, %v6659_v28  ;;  %vm1712_vm10 = vcmp.eq.f32.partialorder %v6606_v24, inf  ;;  %3625 = vrcp.f32 %v2209_v14  ;;  %2548 = vrot.lane.b32.xlu1 %v6673_v4, %s3716_s23 }
 0x2ba   :  { %v3616_v44 = vpop.eup %3615  ;;  %v2355_v58 = vsel %vm8210_vm7, %v2349_v10, %v2337_v31  ;;  %v2336_v52 = vadd.f32 0.7853982, %v2330_v6  ;;  %vm1714_vm13 = vcmp.eq.f32.partialorder %v6606_v24, 0.0  ;;  %v1715_v46 = vand.u32 2147483648, %v6606_v24 }
 0x2bb   :  { %v3618_v49 = vpop.eup %3617  ;;  %v2367_v25 = vsub.f32 3.1415927, %v2355_v58  ;;  %v2260_v18 = vmul.f32 %v3616_v44, %v3398_v22  ;;  %vm1719_vm4 = vcmp.eq.f32.partialorder %v6668_v50, inf  ;;  %vm1721_vm7 = vcmp.eq.f32.partialorder %v6668_v50, 0.0 }
 0x2bc   :  { %v3620_v32 = vpop.eup %3619  ;;  %v1711_v0 = vmul.f32 %v3618_v49, %v6606_v24  ;;  %v2342_v56 = vsel %vm2240_vm6, %v2336_v52, %v2330_v6  ;;  %vm2384_vm0 = vcmp.lt.f32.partialorder %v6295_v3, 0.0  ;;  %v1722_v6 = vand.u32 2147483648, %v6668_v50  ;;  %v8212_v52 = vld [vmem:[#allocation41_spill] sm:$0xff] }
 0x2bd   :  { %v3622_v36 = vpop.eup %3621  ;;  %v2373_v1 = vsel %vm2361_vm9, %v2367_v25, %v2355_v58  ;;  %v2261_v29 = vmul.f32 %v3620_v32, %v3399_v39  ;;  %v6773_v53 = vsel %vm2236_vm8, %v2260_v18, %v6648_v5  ;;  %v2354_v41 = vsub.f32 1.5707964, %v2342_v56 }
 0x2be   :  { %v2385_v31 = vsub.f32 0.0, %v2373_v1  ;;  %v2272_v23 = vmul.f32 %v6773_v53, %v6773_v53  ;;  %v1713_v40 = vsel %vm1712_vm10, %v6606_v24, %v1711_v0  ;;  %v1718_v14 = vmul.f32 %v3622_v36, %v6668_v50 }
 0x2bf   :  { %v6783_v17 = vsel %vm2237_vm12, %v2261_v29, %v6659_v28  ;;  %v1716_v10 = vsel %vm1714_vm13, %v1715_v46, %v1713_v40  ;;  %vm8211_vm6 = vcmp.gt.f32.partialorder %v6315_v11, %v8165_v38  ;;  %vm2220_vm9 = vcmp.gt.f32.partialorder %v6714_v51, 0.0 }
 0x2c0   :  { %v2391_v22 = vsel %vm2379_vm14, %v2385_v31, %v2373_v1  ;;  %v2360_v44 = vsel %vm8211_vm6, %v2354_v41, %v2342_v56  ;;  %v2273_v58 = vmul.f32 %v6783_v17, %v6783_v17  ;;  %v2278_v39 = vmul.f32 0.080537446, %v2272_v23 }
 0x2c1   :  { %v2397_v49 = vadd.f32 %v2391_v22, %v6326_v60  ;;  %v2372_v25 = vsub.f32 3.1415927, %v2360_v44  ;;  %v1720_v24 = vsel %vm1719_vm4, %v6668_v50, %v1718_v14  ;;  %v1734_v18 = vadd.f32 %v1716_v10, %v8212_v52  ;;  %v8213_v60 = vld [vmem:[#allocation16_spill] sm:$0xff]  ;;  %v8214_v22 = vld [vmem:[#allocation10_spill] sm:$0xff] }
 0x2c2   :  { %v2279_v32 = vmul.f32 0.080537446, %v2273_v58  ;;  %v3404_v59 = vadd.f32 -0.13877685, %v2278_v39  ;;  %v1723_v0 = vsel %vm1721_vm7, %v1722_v6, %v1720_v24  ;;  %v3624_v11 = vpop.eup %3623  ;;  %vm2221_vm14 = vcmp.gt.f32.partialorder %v6720_v63, 0.0 }
 0x2c3   :  { %v2403_v38 = vmul.f32 57.29578, %v2397_v49  ;;  %v2378_v46 = vsel %vm2366_vm15, %v2372_v25, %v2360_v44  ;;  %v1735_v36 = vadd.f32 %v1723_v0, %v8213_v60  ;;  %v6809_v1 = vsel %vm6618_vm2, %v1734_v18, 0.0  ;;  %v3626_v56 = vpop.eup %3625 }
 0x2c4   :  { %v2390_v29 = vsub.f32 0.0, %v2378_v46  ;;  %v3405_v31 = vadd.f32 -0.13877685, %v2279_v32  ;;  %v2290_v41 = vmul.f32 %v3404_v59, %v2272_v23  ;;  %v2226_v50 = vmul.f32 %v3624_v11, %v2202_v54  ;;  %2611 = vrot.lane.b32.xlu0 %v6809_v1, %s3712_s20 }
 0x2c5   :  { %v2409_v40 = vadd.f32 180.0, %v2403_v38  ;;  %v2227_v2 = vmul.f32 %v3626_v56, %v2203_v35  ;;  %v6822_v7 = vsel %vm6638_vm11, %v1735_v36, 0.0  ;;  %v2520_v13 = vrot.slane %v6678_v21, 1 }
 0x2c6   :  { %v2396_v10 = vsel %vm2384_vm0, %v2390_v29, %v2378_v46  ;;  %v2291_v14 = vmul.f32 %v3405_v31, %v2273_v58  ;;  %v2296_v6 = vadd.f32 0.19977711, %v2290_v41  ;;  %v6828_v54 = vsel %vm2220_vm9, %v2226_v50, 0.0  ;;  %2613 = vrot.lane.b32.xlu1 %v6822_v7, %s3712_s20 }
 0x2c7   :  { %v2415_v63 = vmul.f32 0.022222223, %v2409_v40  ;;  %v6833_v44 = vadd.f32 %v2396_v10, %v8214_v22  ;;  %v6835_v35 = vsel %vm2221_vm14, %v2227_v2, 0.0  ;;  %vm1596_vm2 = vcmp.eq.f32.partialorder %v6339_v42, 0.0 }
 0x2c8   :  { %v1729_v3 = vand.u32 2147483648, %v6437_v26  ;;  %v2297_v39 = vadd.f32 0.19977711, %v2291_v14  ;;  %v2302_v49 = vmul.f32 %v2296_v6, %v2272_v23  ;;  %2789 = vrot.lane.b32.xlu0 %v6738_v48, %s3716_s23  ;;  %v1598_v51 = vsel %vm1596_vm2, %v1597_v37, %v6693_v9 }
 0x2c9   :  { %v2421_v25 = vadd.f32 16.5, %v2415_v63  ;;  %vm1728_vm0 = vcmp.eq.f32.partialorder %v6437_v26, 0.0  ;;  %v2250_v24 = vadd.f32 1.0, %v6828_v54  ;;  %v2251_v59 = vadd.f32 1.0, %v6835_v35 }
 0x2ca   :  { %v1730_v52 = vsel %vm1728_vm0, %v1729_v3, %v6743_v15  ;;  %v2303_v18 = vmul.f32 %v2297_v39, %v2273_v58  ;;  %v3410_v32 = vadd.f32 -0.3333295, %v2302_v49  ;;  %2819 = vrot.lane.b32.xlu1 %v6738_v48, %s3712_s20  ;;  %v2519_v11 = vrot.slane %v6673_v4, 1 }
 0x2cb   :  { %v3426_v0 = vtrunc.f32 %v2421_v25  ;;  %3627 = vrcp.f32 %v2250_v24  ;;  %vm8215_vm11 = vcmask 1046528   ;;  %v1670_v26 = vadd.f32 %v6690_v61, %v1598_v51 }
 0x2cc   :  { %v6854_v42 = vsel %vm8215_vm11, %v2520_v13, %v6709_v20  ;;  %v3411_v9 = vadd.f32 -0.3333295, %v2303_v18  ;;  %v2314_v37 = vmul.f32 %v3410_v32, %v2272_v23  ;;  %3629 = vrcp.f32 %v2251_v59  ;;  %vm8216_vm15 = vmmov %vm8215_vm11 }
 0x2cd   :  { %2731 = vrot.lane.b32.xlu0 %v6854_v42, %s3712_s20  ;;  %v3427_v15 = vcvt.f32.s32 %v3426_v0  ;;  %v2521_v38 = vsel %vm8216_vm15, %v2519_v11, %v2520_v13  ;;  %v1736_v46 = vadd.f32 %v1730_v52, %v1670_v26  ;;  %v2580_v61 = vrot.slane %v6678_v21, 7  ;;  %v8219_v0 = vld [vmem:[#allocation64_spill] sm:$0xff]  ;;  %vm8222_vm2 = vmmov %vm8215_vm11 }
 0x2ce   :  { %v2315_v60 = vmul.f32 %v3411_v9, %v2273_v58  ;;  %v2320_v36 = vmul.f32 %v2314_v37, %v6773_v53  ;;  %2729 = vrot.lane.b32.xlu1 %v2521_v38, %s3712_s20  ;;  %v2582_v23 = vrot.slane %v6632_v16, 7  ;;  %vm7831_vm10 = vcmask 1040384   ;;  %v8217_v58 = vld [vmem:[#allocation62_spill] sm:$0xff] }
 0x2cf   :  { %v6862_v56 = vand.u32 7, %v3427_v15  ;;  %v2439_v29 = vadd.s32 4, %v3427_v15  ;;  %vm2362_vm13 = vcmp.lt.f32.partialorder %v8217_v58, 0.0  ;;  %v2527_v10 = vsub.f32 %v6673_v4, %v2521_v38 }
 0x2d0   :  { %v2321_v31 = vmul.f32 %v2315_v60, %v6783_v17  ;;  %v2326_v41 = vadd.f32 %v2320_v36, %v6773_v53  ;;  %v6878_v14 = vsel %vm6594_vm1, %v1736_v46, 0.0  ;;  %v6882_v53 = vsel %vm7831_vm10, %v6738_v48, %v2580_v61 }
 0x2d1   :  { %2759 = vrot.lane.b32.xlu0 %v2521_v38, %s3716_s23  ;;  %v6869_v50 = vand.u32 7, %v2439_v29  ;;  %v6885_v6 = vsel %vm7831_vm10, %v2580_v61, %v2582_v23  ;;  %vm2530_vm4 = vcmp.eq.s32.totalorder %v6862_v56, 1  ;;  %v3400_v22 = vadd.f32 -1.0, %v6828_v54 }
 0x2d2   :  { %v2327_v40 = vadd.f32 %v2321_v31, %v6783_v17  ;;  %v2332_v2 = vadd.f32 0.7853982, %v2326_v41  ;;  %2761 = vrot.lane.b32.xlu1 %v6854_v42, %s3716_s23  ;;  %v6893_v19 = vsel %vm2530_vm4, %v2527_v10, 0.0  ;;  %vm2238_vm1 = vcmp.gt.f32.partialorder %v6828_v54, 0.41421357 }
 0x2d3   :  { %v3401_v39 = vadd.f32 -1.0, %v6835_v35  ;;  %vm2539_vm7 = vcmp.eq.s32.totalorder %v6869_v50, 1  ;;  %v2641_v25 = vrot.slane %v6809_v1, 1  ;;  %v2642_v59 = vrot.slane %v6822_v7, 1 }
 0x2d4   :  { %v2333_v17 = vadd.f32 0.7853982, %v2327_v40  ;;  %v2338_v63 = vsel %vm2236_vm8, %v2332_v2, %v2326_v41  ;;  %v6903_v24 = vsel %vm2539_vm7, %v2527_v10, 0.0  ;;  %vm8218_vm8 = vcmp.gt.f32.partialorder %v6466_v8, %v8182_v62  ;;  %v8221_v62 = vld [vmem:[#allocation19_spill] sm:$0xff] }
 0x2d5   :  { %2793 = vrot.lane.b32.xlu0 %v6885_v6, %s3716_s23  ;;  %v3628_v13 = vpop.eup %3627  ;;  %v2350_v3 = vsub.f32 1.5707964, %v2338_v63  ;;  %vm2363_vm6 = vcmp.lt.f32.partialorder %v8219_v0, 0.0  ;;  %vm8220_vm9 = vcmp.gt.f32.partialorder %v6472_v34, %v8185_v57  ;;  %vm2380_vm14 = vcmp.lt.f32.partialorder %v8221_v62, 0.0 }
 0x2d6   :  { %v3630_v49 = vpop.eup %3629  ;;  %v2339_v5 = vsel %vm2237_vm12, %v2333_v17, %v2327_v40  ;;  %v2262_v51 = vmul.f32 %v3628_v13, %v3400_v22  ;;  %2791 = vrot.lane.b32.xlu1 %v6882_v53, %s3716_s23  ;;  %vm2239_vm12 = vcmp.gt.f32.partialorder %v6835_v35, 0.41421357  ;;  %v6936_v34 = vrot.slane %v6878_v14, 1  ;;  %v8223_v40 = vld [vmem:[#allocation27_spill] sm:$0xff] }
 0x2d7   :  { %v2351_v52 = vsub.f32 1.5707964, %v2339_v5  ;;  %v2356_v18 = vsel %vm8218_vm8, %v2350_v3, %v2338_v63  ;;  %v2263_v32 = vmul.f32 %v3630_v49, %v3401_v39  ;;  %v2643_v60 = vsel %vm8222_vm2, %v2641_v25, %v2642_v59  ;;  %v8226_v3 = vld [vmem:[#allocation40_spill] sm:$0xff] }
 0x2d8   :  { %v2368_v28 = vsub.f32 3.1415927, %v2356_v18  ;;  %v6914_v11 = vsel %vm2238_vm1, %v2262_v51, %v6828_v54  ;;  %v2587_v36 = vsub.f32 %v6673_v4, %v6738_v48  ;;  %vm2590_vm0 = vcmp.eq.s32.totalorder %v6862_v56, 3  ;;  %v8224_v48 = vld [vmem:[#allocation38_spill] sm:$0xff] }
 0x2d9   :  { %2821 = vrot.lane.b32.xlu0 %v6882_v53, %s3712_s20  ;;  %v2357_v8 = vsel %vm8220_vm9, %v2351_v52, %v2339_v5  ;;  %v6925_v26 = vsel %vm2239_vm12, %v2263_v32, %v6835_v35  ;;  %v2274_v9 = vmul.f32 %v6914_v11, %v6914_v11  ;;  %vm2599_vm11 = vcmp.eq.s32.totalorder %v6869_v50, 3 }
 0x2da   :  { %v2369_v37 = vsub.f32 3.1415927, %v2357_v8  ;;  %v2374_v15 = vsel %vm2362_vm13, %v2368_v28, %v2356_v18  ;;  %v2275_v38 = vmul.f32 %v6925_v26, %v6925_v26  ;;  %2823 = vrot.lane.b32.xlu1 %v6885_v6, %s3712_s20  ;;  %v6949_v58 = vsel %vm2590_vm0, %v2587_v36, 0.0  ;;  %vm8225_vm13 = vmmov %vm8222_vm2 }
 0x2db   :  { %v2386_v57 = vsub.f32 0.0, %v2374_v15  ;;  %v2280_v46 = vmul.f32 0.080537446, %v2274_v9  ;;  %vm2381_vm15 = vcmp.lt.f32.partialorder %v8223_v40, 0.0  ;;  %v6954_v17 = vsel %vm2599_vm11, %v2587_v36, 0.0 }
 0x2dc   :  { %v2375_v29 = vsel %vm2363_vm6, %v2369_v37, %v2357_v8  ;;  %v2281_v61 = vmul.f32 0.080537446, %v2275_v38  ;;  %v6958_v13 = vsel %vm8225_vm13, %v2642_v59, %v6936_v34  ;;  %v6964_v25 = vrot.slane %v6809_v1, 7 }
 0x2dd   :  { %2615 = vrot.lane.b32.xlu0 %v6878_v14, %s3712_s20  ;;  %v2387_v23 = vsub.f32 0.0, %v2375_v29  ;;  %v2392_v31 = vsel %vm2380_vm14, %v2386_v57, %v2374_v15  ;;  %v3406_v41 = vadd.f32 -0.13877685, %v2280_v46  ;;  %v2649_v59 = vsub.f32 %v6809_v1, %v2643_v60 }
 0x2de   :  { %v2398_v2 = vadd.f32 %v2392_v31, %v8224_v48  ;;  %v3407_v10 = vadd.f32 -0.13877685, %v2281_v61  ;;  %2849 = vrot.lane.b32.xlu1 %v2643_v60, %s3712_s20  ;;  %vm2652_vm4 = vcmp.eq.s32.totalorder %v6862_v56, 5  ;;  %vm2661_vm7 = vcmp.eq.s32.totalorder %v6869_v50, 5 }
 0x2df   :  { %v2393_v63 = vsel %vm2381_vm15, %v2387_v23, %v2375_v29  ;;  %v2292_v22 = vmul.f32 %v3406_v41, %v2274_v9  ;;  %v2708_v15 = vsub.f32 %v6809_v1, %v6964_v25  ;;  %vm2711_vm8 = vcmp.eq.s32.totalorder %v6862_v56, 7 }
 0x2e0   :  { %v2399_v39 = vadd.f32 %v2393_v63, %v8226_v3  ;;  %v2404_v49 = vmul.f32 57.29578, %v2398_v2  ;;  %v2293_v5 = vmul.f32 %v3407_v10, %v2275_v38  ;;  %vm2720_vm6 = vcmp.eq.s32.totalorder %v6869_v50, 7 }
 0x2e1   :  { %2851 = vrot.lane.b32.xlu0 %v6958_v13, %s3712_s20  ;;  %v2298_v51 = vadd.f32 0.19977711, %v2292_v22  ;;  %v6978_v29 = vsel %vm2652_vm4, %v2649_v59, 0.0  ;;  %v6982_v23 = vsel %vm2720_vm6, %v2708_v15, 0.0  ;;  %v6984_v31 = vsel %vm2661_vm7, %v2649_v59, 0.0 }
 0x2e2   :  { %v2405_v52 = vmul.f32 57.29578, %v2399_v39  ;;  %v2410_v18 = vadd.f32 180.0, %v2404_v49  ;;  %v2299_v32 = vadd.f32 0.19977711, %v2293_v5  ;;  %2853 = vrot.lane.b32.xlu1 %v6936_v34, %s3712_s20  ;;  %v2589_v33 = vsub.f32 %v6632_v16, %v6885_v6 }
 0x2e3   :  { %v2304_v0 = vmul.f32 %v2298_v51, %v2274_v9  ;;  %vm2382_vm11 = vcmp.lt.f32.partialorder %v6529_v45, 0.0  ;;  %vm2383_vm13 = vcmp.lt.f32.partialorder %v6541_v43, 0.0  ;;  %v2650_v43 = vsub.f32 %v6822_v7, %v6958_v13 }
 0x2e4   :  { %v2411_v28 = vadd.f32 180.0, %v2405_v52  ;;  %v2416_v8 = vmul.f32 0.022222223, %v2410_v18  ;;  %v2305_v62 = vmul.f32 %v2299_v32, %v2275_v38  ;;  %v2701_v52 = vrot.slane %v6822_v7, 7  ;;  %v8228_v18 = vld [vmem:[#allocation66_spill] sm:$0xff] }
 0x2e5   :  { %2879 = vrot.lane.b32.xlu0 %v2643_v60, %s3716_s23  ;;  %v3412_v37 = vadd.f32 -0.3333295, %v2304_v0  ;;  %v6980_v60 = vsel %vm2711_vm8, %v2708_v15, 0.0  ;;  %vm2365_vm14 = vcmp.lt.f32.partialorder %v8228_v18, 0.0 }
 0x2e6   :  { %v2417_v57 = vmul.f32 0.022222223, %v2411_v28  ;;  %v2422_v46 = vadd.f32 16.5, %v2416_v8  ;;  %v3413_v36 = vadd.f32 -0.3333295, %v2305_v62  ;;  %2881 = vrot.lane.b32.xlu1 %v6958_v13, %s3716_s23  ;;  %v2528_v28 = vsub.f32 %v6678_v21, %v6854_v42 }
 0x2e7   :  { %v2316_v61 = vmul.f32 %v3412_v37, %v2274_v9  ;;  %v2703_v8 = vrot.slane %v6878_v14, 7  ;;  %v2702_v54 = vsel %vm7831_vm10, %v6964_v25, %v2701_v52  ;;  %v2588_v42 = vsub.f32 %v6678_v21, %v6882_v53 }
 0x2e8   :  { %v2423_v41 = vadd.f32 16.5, %v2417_v57  ;;  %v3428_v40 = vtrunc.f32 %v2422_v46  ;;  %v2317_v48 = vmul.f32 %v3413_v36, %v2275_v38  ;;  %v8227_v38 = vld [vmem:[#allocation65_spill] sm:$0xff]  ;;  %v2529_v57 = vsub.f32 %v6632_v16, %v6709_v20 }
 0x2e9   :  { %2883 = vrot.lane.b32.xlu0 %v6936_v34, %s3716_s23  ;;  %v2322_v2 = vmul.f32 %v2316_v61, %v6914_v11  ;;  %vm2364_vm9 = vcmp.lt.f32.partialorder %v8227_v38, 0.0  ;;  %v2704_v36 = vsel %vm7831_vm10, %v2701_v52, %v2703_v8  ;;  %v2709_v13 = vsub.f32 %v6822_v7, %v2702_v54 }
 0x2ea   :  { %v3429_v10 = vcvt.f32.s32 %v3428_v40  ;;  %v3430_v63 = vtrunc.f32 %v2423_v41  ;;  %v2323_v22 = vmul.f32 %v2317_v48, %v6925_v26  ;;  %2670 = vrot.lane.b32.xlu1 %v6809_v1, %s3716_s23  ;;  %v2710_v38 = vsub.f32 %v6878_v14, %v2704_v36 }
 0x2eb   :  { %v2328_v9 = vadd.f32 %v2322_v2, %v6914_v11 }
 0x2ec   :  { %v3431_v3 = vcvt.f32.s32 %v3430_v63  ;;  %v2440_v39 = vadd.s32 4, %v3429_v10  ;;  %v2329_v49 = vadd.f32 %v2323_v22, %v6925_v26  ;;  %v6997_v5 = vand.u32 7, %v3429_v10 }
 0x2ed   :  { %2672 = vrot.lane.b32.xlu0 %v6822_v7, %s3716_s23  ;;  %v2334_v51 = vadd.f32 0.7853982, %v2328_v9 }
 0x2ee   :  { %v7001_v32 = vand.u32 7, %v3431_v3  ;;  %v2441_v0 = vadd.s32 4, %v3431_v3  ;;  %v2335_v11 = vadd.f32 0.7853982, %v2329_v49  ;;  %2674 = vrot.lane.b32.xlu1 %v6878_v14, %s3716_s23  ;;  %v7005_v26 = vand.u32 7, %v2440_v39 }
 0x2ef   :  { %v2340_v59 = vsel %vm2238_vm1, %v2334_v51, %v2328_v9  ;;  %vm2531_vm2 = vcmp.eq.s32.totalorder %v6997_v5, 1 }
 0x2f0   :  { %v7012_v62 = vand.u32 7, %v2441_v0  ;;  %v2341_v37 = vsel %vm2239_vm12, %v2335_v11, %v2329_v49  ;;  %v2352_v15 = vsub.f32 1.5707964, %v2340_v59  ;;  %vm2532_vm1 = vcmp.eq.s32.totalorder %v7001_v32, 1 }
 0x2f1   :  { %2909 = vrot.lane.b32.xlu0 %v6964_v25, %s3716_s23  ;;  %v2353_v46 = vsub.f32 1.5707964, %v2341_v37  ;;  %v7031_v20 = vsel %vm2532_vm1, %v2529_v57, 0.0  ;;  %vm2540_vm0 = vcmp.eq.s32.totalorder %v7005_v26, 1  ;;  %v7039_v53 = vsel %vm2531_vm2, %v2528_v28, 0.0 }
 0x2f2   :  { %v2358_v35 = vsel %vm2346_vm3, %v2352_v15, %v2340_v59  ;;  %2911 = vrot.lane.b32.xlu1 %v2702_v54, %s3716_s23  ;;  %vm2541_vm12 = vcmp.eq.s32.totalorder %v7012_v62, 1  ;;  %v7041_v40 = vsel %vm2540_vm0, %v2528_v28, 0.0  ;;  %vm2591_vm3 = vcmp.eq.s32.totalorder %v6997_v5, 3 }
 0x2f3   :  { %v2359_v61 = vsel %vm2347_vm5, %v2353_v46, %v2341_v37  ;;  %v2370_v41 = vsub.f32 3.1415927, %v2358_v35  ;;  %v2544_v30 = vsel %vm2541_vm12, %v2529_v57, 0.0  ;;  %vm2600_vm5 = vcmp.eq.s32.totalorder %v7005_v26, 3 }
 0x2f4   :  { %v2371_v55 = vsub.f32 3.1415927, %v2359_v61  ;;  %v7053_v10 = vsel %vm2591_vm3, %v2588_v42, 0.0  ;;  %v7055_v63 = vsel %vm2600_vm5, %v2588_v42, 0.0  ;;  %vm2592_vm15 = vcmp.eq.s32.totalorder %v7001_v32, 3 }
 0x2f5   :  { %2913 = vrot.lane.b32.xlu0 %v2704_v36, %s3716_s23  ;;  %v2376_v48 = vsel %vm2364_vm9, %v2370_v41, %v2358_v35  ;;  %v2595_v9 = vsel %vm2592_vm15, %v2589_v33, 0.0  ;;  %vm2601_vm4 = vcmp.eq.s32.totalorder %v7012_v62, 3  ;;  %v2651_v49 = vsub.f32 %v6878_v14, %v6936_v34 }
 0x2f6   :  { %v2377_v47 = vsel %vm2365_vm14, %v2371_v55, %v2359_v61  ;;  %v2388_v2 = vsub.f32 0.0, %v2376_v48  ;;  %2939 = vrot.lane.b32.xlu1 %v6964_v25, %s3712_s20  ;;  %v2604_v39 = vsel %vm2601_vm4, %v2589_v33, 0.0  ;;  %vm2654_vm7 = vcmp.eq.s32.totalorder %v7001_v32, 5 }
 0x2f7   :  { %v2389_v22 = vsub.f32 0.0, %v2377_v47  ;;  %vm2663_vm8 = vcmp.eq.s32.totalorder %v7012_v62, 5  ;;  %v7072_v51 = vsel %vm2654_vm7, %v2651_v49, 0.0  ;;  %vm2713_vm6 = vcmp.eq.s32.totalorder %v7001_v32, 7 }
 0x2f8   :  { %v2394_v6 = vsel %vm2382_vm11, %v2388_v2, %v2376_v48  ;;  %vm2722_vm9 = vcmp.eq.s32.totalorder %v7012_v62, 7  ;;  %vm2653_vm14 = vcmp.eq.s32.totalorder %v6997_v5, 5  ;;  %vm2662_vm1 = vcmp.eq.s32.totalorder %v7005_v26, 5 }
 0x2f9   :  { %2941 = vrot.lane.b32.xlu0 %v2702_v54, %s3712_s20  ;;  %v2395_v3 = vsel %vm2383_vm13, %v2389_v22, %v2377_v47  ;;  %v2400_v25 = vadd.f32 %v2394_v6, %v6625_v27  ;;  %v7074_v27 = vsel %vm2663_vm8, %v2651_v49, 0.0  ;;  %v7081_v34 = vsel %vm2722_vm9, %v2710_v38, 0.0 }
 0x2fa   :  { %v2401_v45 = vadd.f32 %v2395_v3, %v6643_v12  ;;  %2943 = vrot.lane.b32.xlu1 %v2704_v36, %s3712_s20  ;;  %v7079_v12 = vsel %vm2713_vm6, %v2710_v38, 0.0  ;;  %v7083_v52 = vsel %vm2653_vm14, %v2650_v43, 0.0  ;;  %v7087_v18 = vsel %vm2662_vm1, %v2650_v43, 0.0 }
 0x2fb   :  { %vm2712_vm2 = vcmp.eq.s32.totalorder %v6997_v5, 7  ;;  %vm2721_vm12 = vcmp.eq.s32.totalorder %v7005_v26, 7  ;;  %v2408_v15 = vmul.f32 57.29578, %v6833_v44  ;;  %vm2503_vm0 = vcmp.eq.s32.totalorder %v7001_v32, 0 }
 0x2fc   :  { %v7091_v0 = vsel %vm2712_vm2, %v2709_v13, 0.0  ;;  %v7093_v11 = vsel %vm2721_vm12, %v2709_v13, 0.0  ;;  %vm2512_vm3 = vcmp.eq.s32.totalorder %v7012_v62, 0  ;;  %vm2501_vm5 = vcmp.eq.s32.totalorder %v6862_v56, 0 }
 0x2fd   :  { %vm2502_vm11 = vcmp.eq.s32.totalorder %v6997_v5, 0  ;;  %vm2510_vm15 = vcmp.eq.s32.totalorder %v6869_v50, 0  ;;  %vm2562_vm13 = vcmp.eq.s32.totalorder %v7001_v32, 2  ;;  %vm2571_vm4 = vcmp.eq.s32.totalorder %v7012_v62, 2 }
 0x2fe   :  { %v2406_v48 = vmul.f32 57.29578, %v2400_v25  ;;  %vm2511_vm7 = vcmp.eq.s32.totalorder %v7005_v26, 0  ;;  %vm2560_vm8 = vcmp.eq.s32.totalorder %v6862_v56, 2  ;;  %vm2569_vm6 = vcmp.eq.s32.totalorder %v6869_v50, 2 }
 0x2ff   :  { %vm2561_vm9 = vcmp.eq.s32.totalorder %v6997_v5, 2  ;;  %vm2570_vm14 = vcmp.eq.s32.totalorder %v7005_v26, 2  ;;  %vm2623_vm1 = vcmp.eq.s32.totalorder %v6862_v56, 4  ;;  %vm2632_vm2 = vcmp.eq.s32.totalorder %v6869_v50, 4 }
 0x300   :  { %vm2624_vm12 = vcmp.eq.s32.totalorder %v6997_v5, 4 }
 0x31d   :  { %v2553_v59 = vpop.permute.xlu1 %2552 }
 0x31e   :  { %v2494_v28 = vpop.permute.xlu0 %2493  ;;  %v2559_v8 = vsub.f32 %v6632_v16, %v2553_v59  ;;  %v2414_v59 = vadd.f32 180.0, %v2408_v15 }
 0x31f   :  { %v2500_v37 = vsub.f32 %v6632_v16, %v2494_v28 }
 0x320   :  { %v2565_v36 = vsel %vm2562_vm13, %v2559_v8, 0.0  ;;  %v2574_v61 = vsel %vm2571_vm4, %v2559_v8, 0.0  ;;  %v2407_v8 = vmul.f32 57.29578, %v2401_v45 }
 0x321   :  { %v2506_v57 = vsel %vm2503_vm0, %v2500_v37, 0.0  ;;  %v2515_v46 = vsel %vm2512_vm3, %v2500_v37, 0.0  ;;  %v2492_v44 = vpop.permute.xlu1 %2491  ;;  %v2412_v37 = vadd.f32 180.0, %v2406_v48  ;;  %vm2633_vm0 = vcmp.eq.s32.totalorder %v7005_v26, 4 }
 0x322   :  { %v2538_v54 = vadd.f32 %v7031_v20, %v2506_v57  ;;  %v2547_v35 = vadd.f32 %v2544_v30, %v2515_v46  ;;  %v2490_v42 = vpop.permute.xlu0 %2489  ;;  %v2499_v41 = vsub.f32 %v6678_v21, %v2492_v44  ;;  %v2420_v46 = vmul.f32 0.022222223, %v2414_v59 }
 0x323   :  { %v2498_v55 = vsub.f32 %v6673_v4, %v2490_v42 }
 0x324   :  { %v2568_v33 = vadd.f32 %v2565_v36, %v2538_v54  ;;  %v2577_v47 = vadd.f32 %v2574_v61, %v2547_v35  ;;  %v2505_v2 = vsel %vm2502_vm11, %v2499_v41, 0.0  ;;  %v2514_v22 = vsel %vm2511_vm7, %v2499_v41, 0.0 }
 0x325   :  { %v2504_v20 = vsel %vm2501_vm5, %v2498_v55, 0.0  ;;  %v2513_v30 = vsel %vm2510_vm15, %v2498_v55, 0.0  ;;  %v2537_v6 = vadd.f32 %v7039_v53, %v2505_v2  ;;  %v2546_v3 = vadd.f32 %v7041_v40, %v2514_v22 }
 0x326   :  { %v2536_v25 = vadd.f32 %v6893_v19, %v2504_v20  ;;  %v2545_v49 = vadd.f32 %v6903_v24, %v2513_v30  ;;  %v7119_v43 = vpop.permute.xlu0 %2763  ;;  %v7121_v38 = vadd.f32 %v2595_v9, %v2568_v33  ;;  %v7123_v13 = vadd.f32 %v2604_v39, %v2577_v47 }
 0x327   :  { %v7125_v28 = vpop.permute.xlu1 %2733  ;;  %v2413_v40 = vadd.f32 180.0, %v2407_v8  ;;  %v2418_v9 = vmul.f32 0.022222223, %v2412_v37  ;;  %v2426_v42 = vadd.f32 16.5, %v2420_v46 }
 0x329   :  { %v2419_v48 = vmul.f32 0.022222223, %v2413_v40  ;;  %v2424_v33 = vadd.f32 16.5, %v2418_v9  ;;  %v3436_v22 = vtrunc.f32 %v2426_v42 }
 0x32a   :  { %v2551_v57 = vpop.permute.xlu0 %2550 }
 0x32b   :  { %v2549_v53 = vpop.permute.xlu1 %2548  ;;  %v2558_v19 = vsub.f32 %v6678_v21, %v2551_v57  ;;  %v2425_v30 = vadd.f32 16.5, %v2419_v48  ;;  %v3432_v59 = vtrunc.f32 %v2424_v33 }
 0x32c   :  { %v2557_v24 = vsub.f32 %v6673_v4, %v2549_v53 }
 0x32d   :  { %v2564_v39 = vsel %vm2561_vm9, %v2558_v19, 0.0  ;;  %v2573_v45 = vsel %vm2570_vm14, %v2558_v19, 0.0  ;;  %v3433_v37 = vcvt.f32.s32 %v3432_v59  ;;  %v3434_v57 = vtrunc.f32 %v2425_v30 }
 0x32e   :  { %v2563_v15 = vsel %vm2560_vm8, %v2557_v24, 0.0  ;;  %v2572_v54 = vsel %vm2569_vm6, %v2557_v24, 0.0  ;;  %v2567_v35 = vadd.f32 %v2564_v39, %v2537_v6  ;;  %v2576_v44 = vadd.f32 %v2573_v45, %v2546_v3 }
 0x32f   :  { %v2566_v36 = vadd.f32 %v2563_v15, %v2536_v25  ;;  %v2575_v61 = vadd.f32 %v2572_v54, %v2545_v49 }
 0x330   :  { %v2597_v41 = vadd.f32 %v7053_v10, %v2567_v35  ;;  %v2606_v55 = vadd.f32 %v7055_v63, %v2576_v44  ;;  %v3437_v10 = vcvt.f32.s32 %v3436_v22  ;;  %v3435_v44 = vcvt.f32.s32 %v3434_v57 }
 0x331   :  { %v2596_v47 = vadd.f32 %v6949_v58, %v2566_v36  ;;  %v2605_v2 = vadd.f32 %v6954_v17, %v2575_v61  ;;  %v2442_v36 = vadd.s32 4, %v3433_v37 }
 0x332   :  { %v2444_v45 = vadd.s32 4, %v3437_v10  ;;  %v7155_v42 = vand.u32 7, %v3437_v10  ;;  %v2443_v48 = vadd.s32 4, %v3435_v44 }
 0x333   :  { %v7163_v33 = vand.u32 7, %v2442_v36 }
 0x334   :  { %vm2743_vm3 = vcmp.eq.s32.totalorder %v7155_v42, 0  ;;  %vm2773_vm11 = vcmp.eq.s32.totalorder %v7155_v42, 1  ;;  %v7175_v22 = vand.u32 7, %v2443_v48 }
 0x335   :  { %vm2840_vm9 = vcmp.eq.s32.totalorder %v7163_v33, 3  ;;  %vm2810_vm14 = vcmp.eq.s32.totalorder %v7163_v33, 2 }
 0x336   :  { %v2612_v20 = vpop.permute.xlu0 %2611  ;;  %vm2841_vm10 = vcmp.eq.s32.totalorder %v7175_v22, 3 }
 0x337   :  { %v2620_v6 = vsub.f32 %v6809_v1, %v2612_v20 }
 0x338   :  { %v2614_v3 = vpop.permute.xlu1 %2613 }
 0x339   :  { %v2621_v63 = vsub.f32 %v6822_v7, %v2614_v3  ;;  %v2626_v25 = vsel %vm2623_vm1, %v2620_v6, 0.0  ;;  %v2635_v49 = vsel %vm2632_vm2, %v2620_v6, 0.0  ;;  %vm2750_vm1 = vcmp.eq.s32.totalorder %v7163_v33, 0 }
 0x33a   :  { %v2629_v58 = vadd.f32 %v2626_v25, %v2596_v47  ;;  %v2638_v17 = vadd.f32 %v2635_v49, %v2605_v2  ;;  %v2790_v8 = vpop.permute.xlu0 %2789  ;;  %v2770_v47 = vsub.f32 %v6632_v16, %v7119_v43 }
 0x33b   :  { %v2627_v46 = vsel %vm2624_vm12, %v2621_v63, 0.0  ;;  %v2636_v53 = vsel %vm2633_vm0, %v2621_v63, 0.0  ;;  %v2798_v30 = vsub.f32 %v6673_v4, %v2790_v8  ;;  %vm2781_vm0 = vcmp.eq.s32.totalorder %v7175_v22, 1 }
 0x33c   :  { %v2630_v19 = vadd.f32 %v2627_v46, %v2597_v41  ;;  %v2639_v24 = vadd.f32 %v2636_v53, %v2606_v55  ;;  %v2820_v40 = vpop.permute.xlu1 %2819  ;;  %v7144_v9 = vadd.f32 %v6978_v29, %v2629_v58  ;;  %v7147_v39 = vadd.f32 %v6984_v31, %v2638_v17 }
 0x33d   :  { %v7157_v41 = vand.u32 7, %v2444_v45  ;;  %v7159_v29 = vand.u32 7, %v3433_v37  ;;  %v7161_v31 = vand.u32 7, %v3435_v44  ;;  %v2776_v20 = vsel %vm2773_vm11, %v2770_v47, 0.0 }
 0x33e   :  { %v7150_v54 = vadd.f32 %v7083_v52, %v2630_v19  ;;  %v7153_v35 = vadd.f32 %v7087_v18, %v2639_v24  ;;  %v2740_v18 = vsub.f32 %v6632_v16, %v7125_v28  ;;  %v2828_v10 = vsub.f32 %v6673_v4, %v2820_v40 }
 0x33f   :  { %v2732_v15 = vpop.permute.xlu0 %2731  ;;  %vm2752_vm5 = vcmp.eq.s32.totalorder %v7157_v41, 0  ;;  %vm2782_vm15 = vcmp.eq.s32.totalorder %v7157_v41, 1  ;;  %vm2831_vm13 = vcmp.eq.s32.totalorder %v7159_v29, 3  ;;  %vm2801_vm4 = vcmp.eq.s32.totalorder %v7159_v29, 2 }
 0x340   :  { %v2730_v61 = vpop.permute.xlu1 %2729  ;;  %vm2741_vm7 = vcmp.eq.s32.totalorder %v7159_v29, 0  ;;  %vm2742_vm8 = vcmp.eq.s32.totalorder %v7161_v31, 0  ;;  %vm2772_vm6 = vcmp.eq.s32.totalorder %v7161_v31, 1  ;;  %vm2771_vm2 = vcmp.eq.s32.totalorder %v7159_v29, 1 }
 0x341   :  { %v2746_v28 = vsel %vm2743_vm3, %v2740_v18, 0.0  ;;  %v2755_v6 = vsel %vm2752_vm5, %v2740_v18, 0.0  ;;  %v2785_v3 = vsel %vm2782_vm15, %v2770_v47, 0.0  ;;  %v2738_v63 = vsub.f32 %v6673_v4, %v2730_v61 }
 0x342   :  { %vm2751_vm11 = vcmp.eq.s32.totalorder %v7175_v22, 0  ;;  %vm2780_vm5 = vcmp.eq.s32.totalorder %v7163_v33, 1  ;;  %v2779_v58 = vadd.f32 %v2776_v20, %v2746_v28  ;;  %v2739_v17 = vsub.f32 %v6678_v21, %v2732_v15 }
 0x343   :  { %v2760_v55 = vpop.permute.xlu0 %2759  ;;  %vm2802_vm15 = vcmp.eq.s32.totalorder %v7161_v31, 2  ;;  %vm2811_vm12 = vcmp.eq.s32.totalorder %v7175_v22, 2  ;;  %v2788_v37 = vadd.f32 %v2785_v3, %v2755_v6  ;;  %v2804_v57 = vsel %vm2801_vm4, %v2798_v30, 0.0 }
 0x344   :  { %v2762_v52 = vpop.permute.xlu1 %2761  ;;  %v2768_v59 = vsub.f32 %v6673_v4, %v2760_v55  ;;  %vm2832_vm3 = vcmp.eq.s32.totalorder %v7161_v31, 3  ;;  %v2834_v19 = vsel %vm2831_vm13, %v2828_v10, 0.0  ;;  %v2843_v24 = vsel %vm2840_vm9, %v2828_v10, 0.0 }
 0x345   :  { %v2769_v49 = vsub.f32 %v6678_v21, %v2762_v52  ;;  %v2813_v40 = vsel %vm2810_vm14, %v2798_v30, 0.0  ;;  %v2744_v45 = vsel %vm2741_vm7, %v2738_v63, 0.0  ;;  %vm2833_vm4 = vcmp.eq.s32.totalorder %v7155_v42, 3 }
 0x346   :  { %v2774_v46 = vsel %vm2771_vm2, %v2768_v59, 0.0  ;;  %v2783_v53 = vsel %vm2780_vm5, %v2768_v59, 0.0  ;;  %vm2842_vm2 = vcmp.eq.s32.totalorder %v7157_v41, 3  ;;  %v2753_v44 = vsel %vm2750_vm1, %v2738_v63, 0.0 }
 0x347   :  { %v2794_v2 = vpop.permute.xlu0 %2793  ;;  %v2775_v36 = vsel %vm2772_vm6, %v2769_v49, 0.0  ;;  %v2745_v48 = vsel %vm2742_vm8, %v2739_v17, 0.0  ;;  %v2784_v52 = vsel %vm2781_vm0, %v2769_v49, 0.0  ;;  %v2777_v18 = vadd.f32 %v2774_v46, %v2744_v45 }
 0x348   :  { %v2792_v43 = vpop.permute.xlu1 %2791  ;;  %v2800_v61 = vsub.f32 %v6632_v16, %v2794_v2  ;;  %v2786_v47 = vadd.f32 %v2783_v53, %v2753_v44  ;;  %vm2861_vm13 = vcmp.eq.s32.totalorder %v7159_v29, 4  ;;  %vm2870_vm7 = vcmp.eq.s32.totalorder %v7163_v33, 4 }
 0x349   :  { %vm2862_vm9 = vcmp.eq.s32.totalorder %v7161_v31, 4  ;;  %v2754_v2 = vsel %vm2751_vm11, %v2739_v17, 0.0  ;;  %v2799_v20 = vsub.f32 %v6678_v21, %v2792_v43  ;;  %vm8229_vm6 = vcmp.eq.s32.totalorder %v7001_v32, 4 }
 0x34a   :  { %vm8230_vm8 = vcmp.eq.s32.totalorder %v7012_v62, 4  ;;  %v2778_v6 = vadd.f32 %v2775_v36, %v2745_v48  ;;  %vm2863_vm14 = vcmp.eq.s32.totalorder %v7155_v42, 4  ;;  %vm2891_vm11 = vcmp.eq.s32.totalorder %v7159_v29, 5 }
 0x34b   :  { %v2822_v25 = vpop.permute.xlu0 %2821  ;;  %v2787_v49 = vadd.f32 %v2784_v52, %v2754_v2  ;;  %vm8231_vm5 = vcmp.eq.s32.totalorder %v7155_v42, 2  ;;  %v2816_v46 = vadd.f32 %v2813_v40, %v2786_v47  ;;  %vm2892_vm1 = vcmp.eq.s32.totalorder %v7161_v31, 5 }
 0x34c   :  { %v2824_v8 = vpop.permute.xlu1 %2823  ;;  %v2829_v3 = vsub.f32 %v6678_v21, %v2822_v25  ;;  %v2806_v17 = vsel %vm8231_vm5, %v2800_v61, 0.0  ;;  %vm2901_vm0 = vcmp.eq.s32.totalorder %v7175_v22, 5  ;;  %v2805_v44 = vsel %vm2802_vm15, %v2799_v20, 0.0 }
 0x34d   :  { %v2809_v36 = vadd.f32 %v2806_v17, %v2779_v58  ;;  %vm2682_vm5 = vcmp.eq.s32.totalorder %v6862_v56, 6  ;;  %vm2691_vm15 = vcmp.eq.s32.totalorder %v6869_v50, 6  ;;  %v2846_v2 = vadd.f32 %v2843_v24, %v2816_v46 }
 0x34f   :  { %v2616_v15 = vpop.permute.xlu0 %2615 }
 0x350   :  { %v2622_v55 = vsub.f32 %v6878_v14, %v2616_v15  ;;  %v2850_v28 = vpop.permute.xlu1 %2849 }
 0x352   :  { %v2628_v30 = vsel %vm8229_vm6, %v2622_v55, 0.0  ;;  %v2637_v59 = vsel %vm8230_vm8, %v2622_v55, 0.0  ;;  %vm8232_vm6 = vcmp.eq.s32.totalorder %v7157_v41, 2  ;;  %vm2900_vm8 = vcmp.eq.s32.totalorder %v7163_v33, 5 }
 0x353   :  { %v2631_v10 = vadd.f32 %v2628_v30, %v7121_v38  ;;  %v2640_v63 = vadd.f32 %v2637_v59, %v7123_v13  ;;  %v2852_v43 = vpop.permute.xlu0 %2851  ;;  %v2815_v25 = vsel %vm8232_vm6, %v2800_v61, 0.0  ;;  %v2830_v38 = vsub.f32 %v6632_v16, %v2824_v8 }
 0x354   :  { %v2807_v13 = vadd.f32 %v2804_v57, %v2777_v18  ;;  %v2854_v53 = vpop.permute.xlu1 %2853  ;;  %v2814_v8 = vsel %vm2811_vm12, %v2799_v20, 0.0  ;;  %v2858_v57 = vsub.f32 %v6809_v1, %v2850_v28  ;;  %v2859_v40 = vsub.f32 %v6822_v7, %v2852_v43 }
 0x355   :  { %v7259_v45 = vadd.f32 %v7072_v51, %v2631_v10  ;;  %v7262_v15 = vadd.f32 %v7074_v27, %v2640_v63  ;;  %v2818_v61 = vadd.f32 %v2815_v25, %v2788_v37  ;;  %v2835_v55 = vsel %vm2832_vm3, %v2829_v3, 0.0 }
 0x356   :  { %v2844_v51 = vsel %vm2841_vm10, %v2829_v3, 0.0  ;;  %v2836_v48 = vsel %vm2833_vm4, %v2830_v38, 0.0  ;;  %v2845_v52 = vsel %vm2842_vm2, %v2830_v38, 0.0  ;;  %v2860_v58 = vsub.f32 %v6878_v14, %v2854_v53 }
 0x357   :  { %v2880_v27 = vpop.permute.xlu0 %2879  ;;  %v2808_v18 = vadd.f32 %v2805_v44, %v2778_v6  ;;  %v2817_v47 = vadd.f32 %v2814_v8, %v2787_v49  ;;  %v2837_v28 = vadd.f32 %v2834_v19, %v2807_v13  ;;  %vm2893_vm10 = vcmp.eq.s32.totalorder %v7155_v42, 5 }
 0x358   :  { %v2888_v37 = vsub.f32 %v6809_v1, %v2880_v27  ;;  %v2882_v20 = vpop.permute.xlu1 %2881  ;;  %vm2683_vm12 = vcmp.eq.s32.totalorder %v6997_v5, 6  ;;  %vm2692_vm3 = vcmp.eq.s32.totalorder %v7005_v26, 6  ;;  %v2864_v30 = vsel %vm2861_vm13, %v2858_v57, 0.0 }
 0x359   :  { %v2873_v59 = vsel %vm2870_vm7, %v2858_v57, 0.0  ;;  %v2865_v3 = vsel %vm2862_vm9, %v2859_v40, 0.0  ;;  %v2889_v6 = vsub.f32 %v6822_v7, %v2882_v20  ;;  %v2839_v19 = vadd.f32 %v2836_v48, %v2809_v36 }
 0x35a   :  { %v2848_v24 = vadd.f32 %v2845_v52, %v2818_v61  ;;  %v2838_v10 = vadd.f32 %v2835_v55, %v2808_v18  ;;  %v2847_v63 = vadd.f32 %v2844_v51, %v2817_v47  ;;  %vm2902_vm4 = vcmp.eq.s32.totalorder %v7157_v41, 5 }
 0x35b   :  { %v2884_v43 = vpop.permute.xlu0 %2883  ;;  %vm2684_vm2 = vcmp.eq.s32.totalorder %v7001_v32, 6  ;;  %vm2693_vm6 = vcmp.eq.s32.totalorder %v7012_v62, 6  ;;  %v2866_v49 = vsel %vm2863_vm14, %v2860_v58, 0.0  ;;  %vm8233_vm13 = vcmp.eq.s32.totalorder %v7157_v41, 4 }
 0x35c   :  { %v2875_v17 = vsel %vm8233_vm13, %v2860_v58, 0.0  ;;  %vm8234_vm7 = vcmp.eq.s32.totalorder %v7175_v22, 4  ;;  %v2894_v38 = vsel %vm2891_vm11, %v2888_v37, 0.0  ;;  %v2867_v13 = vadd.f32 %v2864_v30, %v2837_v28  ;;  %v2671_v8 = vpop.permute.xlu1 %2670 }
 0x35d   :  { %v2874_v25 = vsel %vm8234_vm7, %v2859_v40, 0.0  ;;  %v2876_v46 = vadd.f32 %v2873_v59, %v2846_v2  ;;  %v2868_v53 = vadd.f32 %v2865_v3, %v2838_v10  ;;  %v2903_v44 = vsel %vm2900_vm8, %v2888_v37, 0.0 }
 0x35e   :  { %vm2921_vm9 = vcmp.eq.s32.totalorder %v7159_v29, 6  ;;  %v2895_v57 = vsel %vm2892_vm1, %v2889_v6, 0.0  ;;  %v2904_v36 = vsel %vm2901_vm0, %v2889_v6, 0.0  ;;  %v2679_v40 = vsub.f32 %v6809_v1, %v2671_v8 }
 0x35f   :  { %v2890_v61 = vsub.f32 %v6878_v14, %v2884_v43  ;;  %vm2930_vm14 = vcmp.eq.s32.totalorder %v7163_v33, 6  ;;  %v2869_v55 = vadd.f32 %v2866_v49, %v2839_v19  ;;  %v2878_v51 = vadd.f32 %v2875_v17, %v2848_v24  ;;  %v2673_v52 = vpop.permute.xlu0 %2672 }
 0x360   :  { %v2877_v27 = vadd.f32 %v2874_v25, %v2847_v63  ;;  %v2897_v48 = vadd.f32 %v2894_v38, %v2867_v13  ;;  %vm2922_vm11 = vcmp.eq.s32.totalorder %v7161_v31, 6  ;;  %vm2931_vm8 = vcmp.eq.s32.totalorder %v7175_v22, 6  ;;  %v2675_v59 = vpop.permute.xlu1 %2674 }
 0x361   :  { %v2906_v58 = vadd.f32 %v2903_v44, %v2876_v46  ;;  %v2685_v37 = vsel %vm2682_vm5, %v2679_v40, 0.0  ;;  %v2694_v18 = vsel %vm2691_vm15, %v2679_v40, 0.0  ;;  %v2680_v47 = vsub.f32 %v6822_v7, %v2673_v52 }
 0x362   :  { %v2898_v28 = vadd.f32 %v2895_v57, %v2868_v53  ;;  %v2907_v2 = vadd.f32 %v2904_v36, %v2877_v27  ;;  %v2688_v20 = vadd.f32 %v2685_v37, %v7144_v9  ;;  %v2697_v30 = vadd.f32 %v2694_v18, %v7147_v39 }
 0x363   :  { %v2896_v3 = vsel %vm2893_vm10, %v2890_v61, 0.0  ;;  %v2681_v6 = vsub.f32 %v6878_v14, %v2675_v59  ;;  %v2686_v56 = vsel %vm2683_vm12, %v2680_v47, 0.0  ;;  %v2695_v50 = vsel %vm2692_vm3, %v2680_v47, 0.0  ;;  %v2910_v10 = vpop.permute.xlu0 %2909 }
 0x364   :  { %v2717_v19 = vadd.f32 %v6980_v60, %v2688_v20  ;;  %v2726_v24 = vadd.f32 %v6982_v23, %v2697_v30  ;;  %v2689_v9 = vadd.f32 %v2686_v56, %v7150_v54  ;;  %v2698_v39 = vadd.f32 %v2695_v50, %v7153_v35  ;;  %v2912_v49 = vpop.permute.xlu1 %2911 }
 0x365   :  { %vm2951_vm1 = vcmp.eq.s32.totalorder %v7159_v29, 7  ;;  %vm2960_vm0 = vcmp.eq.s32.totalorder %v7163_v33, 7  ;;  %vm2923_vm5 = vcmp.eq.s32.totalorder %v7155_v42, 6  ;;  %v2905_v5 = vsel %vm2902_vm4, %v2890_v61, 0.0 }
 0x366   :  { %v2687_v26 = vsel %vm2684_vm2, %v2681_v6, 0.0  ;;  %v2696_v60 = vsel %vm2693_vm6, %v2681_v6, 0.0  ;;  %v2918_v23 = vsub.f32 %v6809_v1, %v2910_v10  ;;  %vm2932_vm15 = vcmp.eq.s32.totalorder %v7157_v41, 6 }
 0x367   :  { %v2969_v54 = vmin.f32 %v2717_v19, %v2726_v24  ;;  %v2690_v35 = vadd.f32 %v2687_v26, %v7259_v45  ;;  %v2699_v63 = vadd.f32 %v2696_v60, %v7262_v15  ;;  %v2718_v43 = vadd.f32 %v7091_v0, %v2689_v9  ;;  %v2914_v15 = vpop.permute.xlu0 %2913 }
 0x368   :  { %v2899_v17 = vadd.f32 %v2896_v3, %v2869_v55  ;;  %v2727_v25 = vadd.f32 %v7093_v11, %v2698_v39  ;;  %v2919_v32 = vsub.f32 %v6822_v7, %v2912_v49  ;;  %v2924_v62 = vsel %vm2921_vm9, %v2918_v23, 0.0  ;;  %v2940_v57 = vpop.permute.xlu1 %2939 }
 0x369   :  { %vm2975_vm10 = vcmp.gt.f32.partialorder %v2969_v54, 0.0  ;;  %v2719_v38 = vadd.f32 %v7079_v12, %v2690_v35  ;;  %v2728_v13 = vadd.f32 %v7081_v34, %v2699_v63  ;;  %v2933_v45 = vsel %vm2930_vm14, %v2918_v23, 0.0 }
 0x36a   :  { %vm2953_vm12 = vcmp.eq.s32.totalorder %v7155_v42, 7  ;;  %vm2962_vm3 = vcmp.eq.s32.totalorder %v7157_v41, 7  ;;  %vm2952_vm4 = vcmp.eq.s32.totalorder %v7161_v31, 7  ;;  %vm2961_vm2 = vcmp.eq.s32.totalorder %v7175_v22, 7 }
 0x36b   :  { %v7360_v0 = vsel %vm2975_vm10, %v6673_v4, 0.0  ;;  %v2970_v11 = vmin.f32 %v2718_v43, %v2727_v25  ;;  %v2925_v12 = vsel %vm2922_vm11, %v2919_v32, 0.0  ;;  %v2934_v34 = vsel %vm2931_vm8, %v2919_v32, 0.0  ;;  %v2942_v27 = vpop.permute.xlu0 %2941 }
 0x36c   :  { %v2908_v46 = vadd.f32 %v2905_v5, %v2878_v51  ;;  %v2971_v53 = vmin.f32 %v2719_v38, %v2728_v13  ;;  %v2928_v44 = vadd.f32 %v2925_v12, %v2898_v28  ;;  %v2927_v8 = vadd.f32 %v2924_v62, %v2897_v48  ;;  %v2944_v28 = vpop.permute.xlu1 %2943 }
 0x36d   :  { %vm2976_vm6 = vcmp.gt.f32.partialorder %v2970_v11, 0.0  ;;  %v2948_v36 = vsub.f32 %v6809_v1, %v2940_v57  ;;  %v2920_v40 = vsub.f32 %v6878_v14, %v2914_v15  ;;  %vm2987_vm13 = vcmp.gt.f32.partialorder %v7360_v0, 100.0 }
 0x36e   :  { %vm2977_vm7 = vcmp.gt.f32.partialorder %v2971_v53, 0.0  ;;  %v7370_v4 = vsel %vm2976_vm6, %v6678_v21, 0.0  ;;  %v2937_v61 = vadd.f32 %v2934_v34, %v2907_v2  ;;  %v2936_v55 = vadd.f32 %v2933_v45, %v2906_v58 }
 0x36f   :  { %v7373_v51 = vsel %vm2977_vm7, %v6632_v16, 0.0  ;;  %v2954_v48 = vsel %vm2951_vm1, %v2948_v36, 0.0  ;;  %v2963_v52 = vsel %vm2960_vm0, %v2948_v36, 0.0  ;;  %v2926_v37 = vsel %vm2923_vm5, %v2920_v40, 0.0 }
 0x370   :  { %v2957_v18 = vadd.f32 %v2954_v48, %v2927_v8  ;;  %v2966_v47 = vadd.f32 %v2963_v52, %v2936_v55  ;;  %v2935_v21 = vsel %vm2932_vm15, %v2920_v40, 0.0  ;;  %v3717_v58 = vmov 0.0  }
 0x371   :  { %v7386_v16 = vsel %vm2987_vm13, 1.0, %v3717_v58  ;;  %v2929_v29 = vadd.f32 %v2926_v37, %v2899_v17  ;;  %v2950_v2 = vsub.f32 %v6878_v14, %v2944_v28  ;;  %v2949_v33 = vsub.f32 %v6822_v7, %v2942_v27 }
 0x372   :  { %vm2988_vm9 = vcmp.gt.f32.partialorder %v7370_v4, 100.0  ;;  %v2972_v20 = vmin.f32 %v2957_v18, %v2966_v47  ;;  %v2938_v30 = vadd.f32 %v2935_v21, %v2908_v46  ;;  %vm2989_vm14 = vcmp.gt.f32.partialorder %v7373_v51, 100.0 }
 0x373   :  { %v7394_v59 = vsel %vm2988_vm9, 1.0, %v3717_v58  ;;  %v2956_v3 = vsel %vm2953_vm12, %v2950_v2, 0.0  ;;  %v2965_v6 = vsel %vm2962_vm3, %v2950_v2, 0.0  ;;  %v2955_v56 = vsel %vm2952_vm4, %v2949_v33, 0.0 }
 0x374   :  { %v2964_v50 = vsel %vm2961_vm2, %v2949_v33, 0.0  ;;  %vm2978_vm11 = vcmp.gt.f32.partialorder %v2972_v20, 0.0  ;;  %v2959_v19 = vadd.f32 %v2956_v3, %v2929_v29  ;;  %v2968_v24 = vadd.f32 %v2965_v6, %v2938_v30 }
 0x375   :  { %v2958_v9 = vadd.f32 %v2955_v56, %v2928_v44  ;;  %v7406_v39 = vsel %vm2978_vm11, %v6809_v1, 0.0  ;;  %v2967_v10 = vadd.f32 %v2964_v50, %v2937_v61  ;;  %v3453_v42 = vpack.i.bf16 %v7394_v59, %v7386_v16 }
 0x376   :  { %vm2990_vm8 = vcmp.gt.f32.partialorder %v7406_v39, 100.0  ;;  %v2974_v41 = vmin.f32 %v2959_v19, %v2968_v24  ;;  %v7414_v31 = vsel %vm2989_vm14, 1.0, %v3717_v58  ;;  %v3112_v26 = vrot.slane %v7394_v59, 2 }
 0x377   :  { %v2973_v22 = vmin.f32 %v2958_v9, %v2967_v10  ;;  %3454 = vrot.lane.b32.xlu1 %v3453_v42, %s3713_s0  ;;  %3449 = vrot.lane.b32.xlu0 %v3453_v42, %s3712_s20  ;;  %v7421_v1 = vsel %vm2990_vm8, 1.0, %v3717_v58  ;;  %v7427_v60 = vrot.slane %v7414_v31, 2  ;;  %v3111_v54 = vrot.slane %v7386_v16, 2 }
 0x378   :  { %vm2980_vm1 = vcmp.gt.f32.partialorder %v2974_v41, 0.0  ;;  %v3458_v5 = vpack.i.bf16 %v7421_v1, %v7414_v31  ;;  %v3066_v35 = vrot.slane %v7394_v59, 1  ;;  %v3065_v43 = vrot.slane %v7386_v16, 1 }
 0x379   :  { %v7430_v23 = vsel %vm2980_vm1, %v6878_v14, 0.0  ;;  %vm2979_vm0 = vcmp.gt.f32.partialorder %v2973_v22, 0.0  ;;  %v7440_v49 = vrot.slane %v7414_v31, 1  ;;  %vm3181_vm10 = vcmp.lt.f32.partialorder %v7360_v0, 10.0 }
 0x37a   :  { %vm2992_vm5 = vcmp.gt.f32.partialorder %v7430_v23, 100.0  ;;  %v7436_v63 = vsel %vm2979_vm0, %v6822_v7, 0.0  ;;  %vm8235_vm12 = vcmask 1045504   ;;  %vm8237_vm4 = vcmask 1046528  }
 0x37b   :  { %vm2991_vm15 = vcmp.gt.f32.partialorder %v7436_v63, 100.0  ;;  %3459 = vrot.lane.b32.xlu1 %v3458_v5, %s3712_s20  ;;  %v7447_v14 = vsel %vm2992_vm5, 1.0, %v3717_v58  ;;  %v7456_v17 = vsel %vm8235_vm12, %v3111_v54, %v3112_v26  ;;  %vm8236_vm3 = vmmov %vm8235_vm12  ;;  %v7463_v32 = vsel %vm8237_vm4, %v3065_v43, %v3066_v35 }
 0x37c   :  { %v7453_v7 = vsel %vm2991_vm15, 1.0, %v3717_v58  ;;  %v7460_v25 = vsel %vm8236_vm3, %v3112_v26, %v7427_v60  ;;  %v3070_v38 = vrot.slane %v7421_v1, 1  ;;  %vm8238_vm2 = vmmov %vm8237_vm4  ;;  %v7475_v11 = vrot.slane %v7447_v14, 2 }
 0x37d   :  { %v3473_v62 = vpack.i.bf16 %v7447_v14, %v7453_v7  ;;  %v3071_v13 = vrot.slane %v7453_v7, 1  ;;  %v7471_v45 = vsel %vm8238_vm2, %v3066_v35, %v7440_v49  ;;  %v3117_v15 = vrot.slane %v7453_v7, 2  ;;  %vm8239_vm6 = vmmov %vm8238_vm2 }
 0x37e   :  { %v3187_v12 = vsel %vm3181_vm10, 0.0, %v7360_v0  ;;  %vm3199_vm7 = vcmp.ge.f32.partialorder %v7360_v0, 10.0  ;;  %vm3205_vm11 = vcmp.le.f32.partialorder %v7360_v0, 100.0  ;;  %v3483_v53 = vpack.i.bf16 %v7460_v25, %v7456_v17 }
 0x37f   :  { %3474 = vrot.lane.b32.xlu1 %v3473_v62, %s3713_s0  ;;  %3464 = vrot.lane.b32.xlu0 %v3473_v62, %s3712_s20  ;;  %v7481_v34 = vsel %vm8239_vm6, %v3070_v38, %v3071_v13  ;;  %v7485_v46 = vsel %vm2987_vm13, 1.0, %v3187_v12  ;;  %vm7491_vm1 = vmand %vm3199_vm7, %vm3205_vm11  ;;  %v3478_v8 = vpack.i.bf16 %v7471_v45, %v7463_v32  ;;  %v7500_v36 = vrot.slane %v7447_v14, 1 }
 0x380   :  { %v3493_v57 = vpack.i.bf16 %v7481_v34, %v7440_v49  ;;  %v3116_v40 = vrot.slane %v7421_v1, 2  ;;  %vm8242_vm13 = vmmov %vm8236_vm3  ;;  %v3217_v61 = vsel %vm7491_vm1, 0.0, %v7485_v46  ;;  %vm3182_vm0 = vcmp.lt.f32.partialorder %v7370_v4, 10.0 }
 0x381   :  { %v7505_v0 = vsel %vm8242_vm13, %v3117_v15, %v7475_v11  ;;  %vm3200_vm10 = vcmp.ge.f32.partialorder %v7370_v4, 10.0  ;;  %v3188_v55 = vsel %vm3182_vm0, 0.0, %v7370_v4  ;;  %vm3206_vm12 = vcmp.le.f32.partialorder %v7370_v4, 100.0 }
 0x382   :  { %vm3184_vm3 = vcmp.lt.f32.partialorder %v7406_v39, 10.0  ;;  %vm3202_vm4 = vcmp.ge.f32.partialorder %v7406_v39, 10.0  ;;  %v7520_v27 = vsel %vm2988_vm9, 1.0, %v3188_v55  ;;  %vm7522_vm2 = vmand %vm3200_vm10, %vm3206_vm12  ;;  %vm3208_vm6 = vcmp.le.f32.partialorder %v7406_v39, 100.0 }
 0x383   :  { %3484 = vrot.lane.b32.xlu1 %v3483_v53, %s3712_s20  ;;  %3469 = vrot.lane.b32.xlu0 %v3458_v5, %s3713_s0  ;;  %v3190_v52 = vsel %vm3184_vm3, 0.0, %v7406_v39  ;;  %vm3183_vm7 = vcmp.lt.f32.partialorder %v7373_v51, 10.0  ;;  %v3218_v37 = vsel %vm7522_vm2, 0.0, %v7520_v27  ;;  %vm7536_vm9 = vmand %vm3202_vm4, %vm3208_vm6  ;;  %vm3201_vm11 = vcmp.ge.f32.partialorder %v7373_v51, 10.0 }
 0x384   :  { %v7534_v18 = vsel %vm2990_vm8, 1.0, %v3190_v52  ;;  %v3189_v47 = vsel %vm3183_vm7, 0.0, %v7373_v51  ;;  %vm3207_vm13 = vcmp.le.f32.partialorder %v7373_v51, 100.0  ;;  %vm3186_vm8 = vcmp.lt.f32.partialorder %v7430_v23, 10.0 }
 0x385   :  { %v3220_v21 = vsel %vm7536_vm9, 0.0, %v7534_v18  ;;  %v7547_v28 = vsel %vm2989_vm14, 1.0, %v3189_v47  ;;  %vm7553_vm0 = vmand %vm3201_vm11, %vm3207_vm13  ;;  %v3192_v2 = vsel %vm3186_vm8, 0.0, %v7430_v23  ;;  %vm3204_vm10 = vcmp.ge.f32.partialorder %v7430_v23, 10.0 }
 0x386   :  { %vm3210_vm12 = vcmp.le.f32.partialorder %v7430_v23, 100.0  ;;  %vm3185_vm14 = vcmp.lt.f32.partialorder %v7436_v63, 10.0  ;;  %v3219_v51 = vsel %vm7553_vm0, 0.0, %v7547_v28  ;;  %v7566_v33 = vsel %vm2992_vm5, 1.0, %v3192_v2 }
 0x387   :  { %3479 = vrot.lane.b32.xlu0 %v3478_v8, %s3713_s0  ;;  %3494 = vrot.lane.b32.xlu1 %v3493_v57, %s3713_s0  ;;  %vm7568_vm3 = vmand %vm3204_vm10, %vm3210_vm12  ;;  %v3191_v30 = vsel %vm3185_vm14, 0.0, %v7436_v63  ;;  %vm3203_vm4 = vcmp.ge.f32.partialorder %v7436_v63, 10.0  ;;  %v3508_v3 = vpack.i.bf16 %v7475_v11, %v7505_v0  ;;  %vm3209_vm5 = vcmp.le.f32.partialorder %v7436_v63, 100.0 }
 0x388   :  { %v3222_v6 = vsel %vm7568_vm3, 0.0, %v7566_v33  ;;  %v7581_v56 = vsel %vm2991_vm15, 1.0, %v3191_v30  ;;  %vm8251_vm6 = vcmask 1046528   ;;  %vm8252_vm7 = vcmask 1045504   ;;  %vm7587_vm11 = vmand %vm3203_vm4, %vm3209_vm5  ;;  %v8263_v33 = vld [vmem:[#allocation35_spill] sm:$0xff] }
 0x389   :  { %v3074_v50 = vsel %vm8251_vm6, %v3071_v13, %v7500_v36  ;;  %v3118_v19 = vsel %vm8252_vm7, %v3116_v40, %v3117_v15  ;;  %v3221_v9 = vsel %vm7587_vm11, 0.0, %v7581_v56  ;;  %vm8255_vm15 = vcmask 1040384   ;;  %vm8259_vm4 = vmmov %vm8252_vm7 }
 0x38a   :  { %v3498_v39 = vpack.i.bf16 %v7500_v36, %v3074_v50  ;;  %v3513_v10 = vpack.i.bf16 %v3118_v19, %v7427_v60  ;;  %vm8256_vm13 = vmmov %vm8255_vm15  ;;  %v1003_v56 = vadd.s32 8, %v8263_v33 }
 0x38b   :  { %3489 = vrot.lane.b32.xlu0 %v3483_v53, %s3713_s0  ;;  %3509 = vrot.lane.b32.xlu1 %v3508_v3, %s3712_s20  ;;  %vm8257_vm8 = vmmov %vm8256_vm13 }
 0x38c   :  { %vm8258_vm10 = vmmov %vm8257_vm8 }
 0x38d   :  { %vm8260_vm6 = vmmov %vm8259_vm4 }
 0x38f   :  { %3499 = vrot.lane.b32.xlu0 %v3498_v39, %s3713_s0  ;;  %3514 = vrot.lane.b32.xlu1 %v3513_v10, %s3713_s0 }
 0x393   :  { %3504 = vrot.lane.b32.xlu0 %v3513_v10, %s3712_s20 }
 0x397   :  { %3519 = vrot.lane.b32.xlu0 %v3508_v3, %s3713_s0 }
 0x3e9   :  { %v3455_v42 = vpop.permute.xlu1 %3454  ;;  %v3450_v41 = vpop.permute.xlu0 %3449 }
 0x3ea   :  { %v3631_v5 = vadd.low.f32.bf16 %v7386_v16, %v3450_v41  ;;  %v3632_v54 = vadd.high.f32.bf16 %v7394_v59, %v3450_v41 }
 0x3ec   :  { %v3633_v35 = vadd.low.f32.bf16 %v3631_v5, %v3455_v42  ;;  %v3634_v62 = vadd.high.f32.bf16 %v3632_v54, %v3455_v42 }
 0x3ed   :  { %v3460_v22 = vpop.permute.xlu1 %3459 }
 0x3ee   :  { %v3635_v38 = vadd.low.f32.bf16 %v7414_v31, %v3460_v22  ;;  %v3636_v13 = vadd.high.f32.bf16 %v7421_v1, %v3460_v22  ;;  %v3081_v8 = vadd.f32 %v3633_v35, %v7463_v32  ;;  %v3082_v16 = vadd.f32 %v3634_v62, %v7471_v45 }
 0x3f1   :  { %v3475_v26 = vpop.permute.xlu1 %3474  ;;  %v3465_v23 = vpop.permute.xlu0 %3464 }
 0x3f2   :  { %v3639_v40 = vadd.high.f32.bf16 %v7447_v14, %v3465_v23  ;;  %v3640_v59 = vadd.low.f32.bf16 %v7453_v7, %v3465_v23 }
 0x3f4   :  { %v3643_v3 = vadd.high.f32.bf16 %v3639_v40, %v3475_v26  ;;  %v3644_v32 = vadd.low.f32.bf16 %v3640_v59, %v3475_v26 }
 0x3f5   :  { %v3485_v63 = vpop.permute.xlu1 %3484  ;;  %v3470_v43 = vpop.permute.xlu0 %3469 }
 0x3f6   :  { %v3637_v15 = vadd.low.f32.bf16 %v3635_v38, %v3470_v43  ;;  %v3638_v57 = vadd.high.f32.bf16 %v3636_v13, %v3470_v43  ;;  %v3085_v5 = vadd.f32 %v3644_v32, %v3074_v50 }
 0x3f8   :  { %v3083_v47 = vadd.f32 %v3637_v15, %v7440_v49  ;;  %v3084_v31 = vadd.f32 %v3638_v57, %v7481_v34  ;;  %v3086_v49 = vadd.f32 %v3643_v3, %v7500_v36 }
 0x3f9   :  { %v3495_v12 = vpop.permute.xlu1 %3494  ;;  %v3480_v53 = vpop.permute.xlu0 %3479 }
 0x3fa   :  { %v3641_v55 = vadd.low.f32.bf16 %v3081_v8, %v3480_v53  ;;  %v3642_v52 = vadd.high.f32.bf16 %v3082_v16, %v3480_v53  ;;  %v3647_v42 = vadd.low.f32.bf16 %v3083_v47, %v3495_v12  ;;  %v3648_v41 = vadd.high.f32.bf16 %v3084_v31, %v3495_v12 }
 0x3fc   :  { %v3127_v1 = vadd.f32 %v3641_v55, %v7456_v17  ;;  %v3128_v30 = vadd.f32 %v3642_v52, %v7460_v25  ;;  %v3129_v25 = vadd.f32 %v3647_v42, %v7427_v60  ;;  %v3130_v26 = vadd.f32 %v3648_v41, %v3118_v19 }
 0x3fd   :  { %v3490_v2 = vpop.permute.xlu0 %3489  ;;  %v3510_v39 = vpop.permute.xlu1 %3509 }
 0x3fe   :  { %v3645_v10 = vadd.low.f32.bf16 %v3127_v1, %v3485_v63  ;;  %v3646_v45 = vadd.high.f32.bf16 %v3128_v30, %v3485_v63 }
 0x400   :  { %v3649_v7 = vadd.low.f32.bf16 %v3645_v10, %v3490_v2  ;;  %v3650_v22 = vadd.high.f32.bf16 %v3646_v45, %v3490_v2 }
 0x401   :  { %v3500_v14 = vpop.permute.xlu0 %3499  ;;  %v3515_v34 = vpop.permute.xlu1 %3514 }
 0x402   :  { %v3229_v23 = vrot.slane %v3649_v7, 7  ;;  %v3230_v54 = vrot.slane %v3650_v22, 7  ;;  %v3651_v35 = vadd.low.f32.bf16 %v3085_v5, %v3500_v14  ;;  %v3652_v17 = vadd.high.f32.bf16 %v3086_v49, %v3500_v14 }
 0x404   :  { %3239 = vrot.lane.b32.xlu1 %v3229_v23, %s3716_s23  ;;  %v3231_v63 = vsel %vm8255_vm15, %v3229_v23, %v3230_v54  ;;  %v3131_v62 = vadd.f32 %v3651_v35, %v7505_v0  ;;  %v3132_v38 = vadd.f32 %v3652_v17, %v7475_v11 }
 0x405   :  { %v3505_v43 = vpop.permute.xlu0 %3504  ;;  %3241 = vrot.lane.b32.xlu0 %v3231_v63, %s3716_s23 }
 0x406   :  { %v3653_v36 = vadd.low.f32.bf16 %v3129_v25, %v3505_v43  ;;  %v3654_v50 = vadd.high.f32.bf16 %v3130_v26, %v3505_v43  ;;  %v3655_v15 = vadd.low.f32.bf16 %v3131_v62, %v3510_v39  ;;  %v3656_v12 = vadd.high.f32.bf16 %v3132_v38, %v3510_v39 }
 0x408   :  { %v3657_v53 = vadd.low.f32.bf16 %v3653_v36, %v3515_v34  ;;  %v3658_v8 = vadd.high.f32.bf16 %v3654_v50, %v3515_v34 }
 0x409   :  { %v3520_v13 = vpop.permute.xlu0 %3519 }
 0x40a   :  { %v3232_v57 = vrot.slane %v3657_v53, 7  ;;  %v3234_v60 = vrot.slane %v3658_v8, 7  ;;  %v3659_v19 = vadd.low.f32.bf16 %v3655_v15, %v3520_v13  ;;  %v3660_v16 = vadd.high.f32.bf16 %v3656_v12, %v3520_v13 }
 0x40c   :  { %v3235_v40 = vrot.slane %v3659_v19, 7  ;;  %v3237_v59 = vrot.slane %v3660_v16, 7  ;;  %3245 = vrot.lane.b32.xlu0 %v3234_v60, %s3716_s23  ;;  %v3233_v0 = vsel %vm8256_vm13, %v3230_v54, %v3232_v57 }
 0x40d   :  { %3243 = vrot.lane.b32.xlu1 %v3233_v0, %s3716_s23 }
 0x40e   :  { %v3238_v11 = vsel %vm8257_vm8, %v3235_v40, %v3237_v59  ;;  %v3236_v55 = vsel %vm8258_vm10, %v3234_v60, %v3235_v40  ;;  %vm3281_vm10 = vcmp.lt.s32.totalorder %v1003_v56, 15 }
 0x410   :  { %3249 = vrot.lane.b32.xlu0 %v3238_v11, %s3716_s23 }
 0x411   :  { %3247 = vrot.lane.b32.xlu1 %v3236_v55, %s3716_s23 }
 0x476   :  { %v3240_v52 = vpop.permute.xlu1 %3239 }
 0x477   :  { %v3257_v47 = vsel %vm7491_vm1, %v3240_v52, 0.0  ;;  %v3242_v2 = vpop.permute.xlu0 %3241 }
 0x478   :  { %vm3263_vm12 = vcmp.gt.f32.partialorder %v3257_v47, 0.0  ;;  %v3258_v31 = vsel %vm7522_vm2, %v3242_v2, 0.0 }
 0x479   :  { %v3269_v1 = vsel %vm3263_vm12, 1.0, %v3217_v61  ;;  %vm3264_vm14 = vcmp.gt.f32.partialorder %v3258_v31, 0.0  ;;  %vm3338_vm12 = vcmask 130048  }
 0x47a   :  { %v3300_v30 = vrot.slane %v3269_v1, 2  ;;  %v3270_v3 = vsel %vm3264_vm14, 1.0, %v3218_v37 }
 0x47b   :  { %v3301_v32 = vrot.slane %v3270_v3, 2 }
 0x47d   :  { %v3302_v39 = vsel %vm8259_vm4, %v3300_v30, %v3301_v32 }
 0x47e   :  { %3310 = vrot.lane.b32.xlu1 %v3302_v39, %s3713_s0  ;;  %v3246_v10 = vpop.permute.xlu0 %3245 }
 0x47f   :  { %v3260_v45 = vsel %vm7536_vm9, %v3246_v10, 0.0  ;;  %v3244_v44 = vpop.permute.xlu1 %3243 }
 0x480   :  { %vm3266_vm5 = vcmp.gt.f32.partialorder %v3260_v45, 0.0  ;;  %v3259_v46 = vsel %vm7553_vm0, %v3244_v44, 0.0  ;;  %vm8261_vm0 = vmmov %vm8259_vm4 }
 0x481   :  { %v3272_v61 = vsel %vm3266_vm5, 1.0, %v3220_v21  ;;  %vm3265_vm1 = vcmp.gt.f32.partialorder %v3259_v46, 0.0  ;;  %vm8262_vm7 = vmmov %vm8261_vm0 }
 0x482   :  { %v3271_v27 = vsel %vm3265_vm1, 1.0, %v3219_v51  ;;  %v3250_v48 = vpop.permute.xlu0 %3249  ;;  %v3305_v29 = vrot.slane %v3272_v61, 2 }
 0x483   :  { %v3303_v37 = vrot.slane %v3271_v27, 2  ;;  %v3262_v42 = vsel %vm7568_vm3, %v3250_v48, 0.0  ;;  %v3248_v14 = vpop.permute.xlu1 %3247  ;;  %vm3278_vm3 = vcmp.gt.s32.totalorder %v8263_v33, 0 }
 0x484   :  { %vm3268_vm2 = vcmp.gt.f32.partialorder %v3262_v42, 0.0  ;;  %v3261_v41 = vsel %vm7587_vm11, %v3248_v14, 0.0 }
 0x485   :  { %v3274_v18 = vsel %vm3268_vm2, 1.0, %v3222_v6  ;;  %vm3267_vm9 = vcmp.gt.f32.partialorder %v3261_v41, 0.0  ;;  %v3304_v4 = vsel %vm8260_vm6, %v3301_v32, %v3303_v37  ;;  %v8264_v6 = vld [vmem:[#allocation36_spill] sm:$0xff] }
 0x486   :  { %v3308_v21 = vrot.slane %v3274_v18, 2  ;;  %v3273_v28 = vsel %vm3267_vm9, 1.0, %v3221_v9  ;;  %3312 = vrot.lane.b32.xlu0 %v3304_v4, %s3713_s0  ;;  %vm3284_vm15 = vcmp.gt.s32.totalorder %v8264_v6, 0  ;;  %vm3287_vm11 = vcmp.lt.s32.totalorder %v8264_v6, 15 }
 0x487   :  { %v3306_v51 = vrot.slane %v3273_v28, 2  ;;  %vm3285_vm13 = vmand %vm3278_vm3, %vm3284_vm15 }
 0x488   :  { %vm7676_vm8 = vmand %vm3285_vm13, %vm3287_vm11 }
 0x489   :  { %v3307_v7 = vsel %vm8261_vm0, %v3305_v29, %v3306_v51  ;;  %v3309_v20 = vsel %vm8262_vm7, %v3306_v51, %v3308_v21  ;;  %vm3286_vm4 = vmand %vm3281_vm10, %vm3284_vm15 }
 0x48a   :  { %3314 = vrot.lane.b32.xlu1 %v3307_v7, %s3713_s0  ;;  %3316 = vrot.lane.b32.xlu0 %v3309_v20, %s3713_s0  ;;  %vm3289_vm5 = vmand %vm3286_vm4, %vm3287_vm11 }
 0x4f0   :  { %v3311_v9 = vpop.permute.xlu1 %3310 }
 0x4f1   :  { %v3322_v22 = vsel %vm7676_vm8, %v3311_v9, 0.0 }
 0x4f2   :  { %vm3326_vm14 = vcmp.gt.f32.partialorder %v3322_v22, 0.0 }
 0x4f3   :  { %v3422_v5 = vsel %vm3326_vm14, 1.0, %v3717_v58 }
 0x4f4   :  { %3339 = vst.msk [vmem:[#allocation5] sm:$0xff] %vm3338_vm12, %v3422_v5 }
 0x4f8   :  { %v3313_v49 = vpop.permute.xlu0 %3312 }
 0x4f9   :  { %v3323_v23 = vsel %vm3289_vm5, %v3313_v49, 0.0 }
 0x4fa   :  { %vm3327_vm1 = vcmp.gt.f32.partialorder %v3323_v23, 0.0 }
 0x4fb   :  { %v3423_v54 = vsel %vm3327_vm1, 1.0, %v3717_v58 }
 0x4fc   :  { %3340 = vst.msk [vmem:[#allocation5 + $0x8] sm:$0xff] %vm3338_vm12, %v3423_v54  ;;  %v3315_v34 = vpop.permute.xlu1 %3314  ;;  %v3317_v35 = vpop.permute.xlu0 %3316 }
 0x4fd   :  { %v3324_v17 = vsel %vm7676_vm8, %v3315_v34, 0.0  ;;  %v3325_v43 = vsel %vm3289_vm5, %v3317_v35, 0.0 }
 0x4fe   :  { %vm3328_vm2 = vcmp.gt.f32.partialorder %v3324_v17, 0.0  ;;  %vm3329_vm9 = vcmp.gt.f32.partialorder %v3325_v43, 0.0 }
 0x4ff   :  { %v3424_v25 = vsel %vm3328_vm2, 1.0, %v3717_v58  ;;  %v3425_v26 = vsel %vm3329_vm9, 1.0, %v3717_v58 }
 0x500   :  { %3341 = vst.msk [vmem:[#allocation5 + $0x10] sm:$0xff] %vm3338_vm12, %v3424_v25  ;;  %3342 = vst.msk [vmem:[#allocation5 + $0x18] sm:$0xff] %vm3338_vm12, %v3425_v26 }
 0x501   :  { %3694 = shalt.err (!%p3691_p12)
}
 0x502   :  { %s3695_s29 = scalar_lea.hbm %s7708_s1, 512 }
 0x503   :  { %p3696_p13 = scmp.ne.s32.totalorder %s7708_s1, %s3695_s29  ;;  %p3699_p0 = scmp.lt.u32.totalorder %s3695_s29, %s7708_s1 }
 0x505   :  { %p3701_p1 = pnand %p3699_p0, %p3696_p13 }
 0x507   :  { %3704 = shalt.err (!%p3701_p1)
}
 0x508   :  { %3354 = dma.vmem_to_hbm [thread:$0]  %s3349_s25, 512, %s7708_s1, [#allocation4], %s3710_s16, %s3710_s16, %s3711_s17  }
 0x509   :  { %3707 = dma.done.wait [#allocation4], 512  }
 0x50a   :  { %3708 = vsyncadd [#allocation4], 4294966784 }
 0x50b   :  { %3358 = vsyncpa [#allocation3], 1 }
 0x50c   :  { %3359 = vsyncpa [#allocation4], 1 }

</bundles_post_ra>
